<compile_context>
chip_gen: v7x
topology: tpu7x:2x2x1
jax: 0.10.0
libtpu: 0.0.40
codegen_flags: <defaults>
</compile_context>

<pallas_src>
import functools

import jax
import jax.numpy as jnp
from jax.experimental import pallas as pl
from jax.experimental.pallas import tpu as pltpu


# --------------------------------------------------------------------------
# Helpers
# --------------------------------------------------------------------------

def _conv_out_size(w, padding, kernel, stride):
    return int((w + 2 * padding - (kernel - 1) - 1) / stride + 1)


_WEIGHT_ORDER = (
    "conv1_w", "conv1_b", "bn1_s", "bn1_t",
    "conv2_w", "conv2_b", "bn2_s", "bn2_t",
    "conv3_w", "conv3_b", "bn3_s", "bn3_t",
    "fc1_w", "fc1_b", "fc2_w", "fc2_b", "fc3_w", "fc3_b",
    "fc4_wx", "fc4_wv", "fc4_b", "head_w", "head_b",
)


def _resident_spec(shape):
    """Full-array block revisited every grid step -> DMA'd once, VMEM resident."""
    zeros = (0,) * len(shape)
    return pl.BlockSpec(shape, lambda g: zeros)


def _pick_batch_tile(b):
    if b <= 8:
        return b
    # multiple of 8, >= 2 grid steps (v7x megacore), capped for VMEM headroom
    return min(32, max(8, (b // 2) // 8 * 8))


# --------------------------------------------------------------------------
# The fused forward kernel
# --------------------------------------------------------------------------

def _dqn_kernel(
    # per-tile inputs
    p1_ref, v_ref, mask_ref,
    # conv1 / bn1
    w1_ref, b1_ref, s1_ref, t1_ref,
    # conv2 / bn2
    w2_ref, b2_ref, s2_ref, t2_ref,
    # conv3 / bn3
    w3_ref, b3_ref, s3_ref, t3_ref,
    # fc layers
    fc1w_ref, fc1b_ref, fc2w_ref, fc2b_ref, fc3w_ref, fc3b_ref,
    fc4wx_ref, fc4wv_ref, fc4b_ref, hw_ref, hb_ref,
    # output
    out_ref,
    # VMEM scratch
    xflat_ref,
    *, tb, gw, oh2, ow2, oh3, ow3,
):
    f32 = jnp.float32
    bf16 = jnp.bfloat16
    # anchor-row counts (rows are ordered (grid_position, batch_within_tile))
    r2 = ((oh2 - 1) * gw + ow2) * tb          # rows needed to cover conv2 out
    r3 = ((oh3 - 1) * gw + ow3) * tb          # rows needed to cover conv3 out

    # ---------------- conv1 -> relu -> bn1  (one batched matmul) ------------
    # Rows span the zero-padded conv2 input grid; the mask zeroes the halo so
    # conv2's zero padding is already materialised in y1's layout.
    a1 = jnp.dot(p1_ref[...], w1_ref[...], preferred_element_type=f32)
    y1 = (jnp.maximum(a1 + b1_ref[...], 0.0) * s1_ref[...] + t1_ref[...]) \
        * mask_ref[...]                                          # [RA, 16] f32

    # ---------------- conv2 (3x3, stride 1)  as 9 shifted-slice matmuls -----
    a2 = None
    for t in range(9):
        i, j = divmod(t, 3)
        off = (i * gw + j) * tb
        d = jnp.dot(y1[off:off + r2, :].astype(bf16),
                    w2_ref[t * 16:(t + 1) * 16, :],
                    preferred_element_type=f32)
        a2 = d if a2 is None else a2 + d
    y2 = jnp.maximum(a2 + b2_ref[...], 0.0) * s2_ref[...] + t2_ref[...]  # [r2, 32]

    # ---------------- conv3 (2x2, no padding) as 4 shifted-slice matmuls ----
    a3 = None
    for t in range(4):
        i, j = divmod(t, 2)
        off = (i * gw + j) * tb
        d = jnp.dot(y2[off:off + r3, :].astype(bf16),
                    w3_ref[t * 32:(t + 1) * 32, :],
                    preferred_element_type=f32)
        a3 = d if a3 is None else a3 + d
    y3 = jnp.maximum(a3 + b3_ref[...], 0.0) * s3_ref[...] + t3_ref[...]  # [r3, 32]

    # ------- flatten conv3 output into lane-dense [tb, oh3*ow3*32] ----------
    # One [tb, 32] store per valid spatial position (64 total, independent of tb).
    for h in range(oh3):
        for w in range(ow3):
            q = h * gw + w
            k = h * ow3 + w
            xflat_ref[:, k * 32:(k + 1) * 32] = y3[q * tb:(q + 1) * tb, :]

    # ---------------- fully connected part (whole batch tile) ---------------
    x1 = jnp.maximum(
        jnp.dot(xflat_ref[...].astype(bf16), fc3w_ref[...],
                preferred_element_type=f32) + fc3b_ref[...], 0.0)

    v1 = jnp.maximum(
        jnp.dot(v_ref[...].astype(bf16), fc1w_ref[...],
                preferred_element_type=f32) + fc1b_ref[...], 0.0)
    v2 = jnp.maximum(
        jnp.dot(v1.astype(bf16), fc2w_ref[...],
                preferred_element_type=f32) + fc2b_ref[...], 0.0)
    # Dropout(p=0.05) is identity in eval mode.

    # fc4 on concat([x1, v2]) == x1 @ W4x + v2 @ W4v + b   (concat eliminated)
    h4 = jnp.maximum(
        jnp.dot(x1.astype(bf16), fc4wx_ref[...], preferred_element_type=f32)
        + jnp.dot(v2.astype(bf16), fc4wv_ref[...], preferred_element_type=f32)
        + fc4b_ref[...], 0.0)

    out_ref[...] = (jnp.dot(h4.astype(bf16), hw_ref[...],
                            preferred_element_type=f32) + hb_ref[...])


# --------------------------------------------------------------------------
# Wrapper
# --------------------------------------------------------------------------

def _conv1_patches(x, tb, gh, gw):
    """x: [Bpad, C, H, W] (NCHW) -> [(Bpad//tb)*gh*gw*tb, 36*C] bf16 patches.

    Rows are ordered (tile, grid_position, batch_within_tile), where the grid
    is the zero-padded conv2 input grid (gh x gw = (oh1+2) x (ow1+2)).  The
    in-kernel conv1 matmul therefore directly produces that padded layout and
    conv2/conv3 can be evaluated with contiguous shifted slices.  Feature
    order is (kh, kw, c_in), matching the packed conv1 weight.
    """
    b, c, h, w = x.shape
    pb = 5                                        # conv1 pad (3) + stride (2)
    pa_h = max(0, 2 * (gh - 1) - (h - 1))
    pa_w = max(0, 2 * (gw - 1) - (w - 1))
    xp = jnp.pad(x, ((0, 0), (0, 0), (pb, pa_h), (pb, pa_w)))
    cols = []
    for i in range(6):
        for j in range(6):
            cols.append(xp[:, :, i:i + 2 * gh:2, j:j + 2 * gw:2])  # [B,C,gh,gw]
    col = jnp.stack(cols, axis=1)                 # [B, 36, C, gh, gw]
    col = col.transpose(0, 3, 4, 1, 2)            # [B, gh, gw, 36, C]
    g = b // tb
    col = col.reshape(g, tb, gh, gw, 36 * c)
    col = col.transpose(0, 2, 3, 1, 4)            # [G, gh, gw, tb, 36*C]
    return col.reshape(g * gh * gw * tb, 36 * c).astype(jnp.bfloat16)


def _halo_mask(gh, gw, oh1, ow1, tb):
    """[gh*gw*tb, 1] bf16 mask: 1 on the conv1-output interior, 0 on the halo."""
    hp = jnp.arange(gh).reshape(gh, 1, 1)
    wp = jnp.arange(gw).reshape(1, gw, 1)
    m = (hp >= 1) & (hp <= oh1) & (wp >= 1) & (wp <= ow1)
    m = jnp.broadcast_to(m, (gh, gw, tb)).astype(jnp.bfloat16)
    return m.reshape(gh * gw * tb, 1)


def dqn_forward(params, x, v, *, num_outputs):
    B, C, H, W = x.shape
    oh1, ow1 = _conv_out_size(H, 3, 6, 2), _conv_out_size(W, 3, 6, 2)
    oh2, ow2 = _conv_out_size(oh1, 1, 3, 1), _conv_out_size(ow1, 1, 3, 1)
    oh3, ow3 = _conv_out_size(oh2, 0, 2, 1), _conv_out_size(ow2, 0, 2, 1)
    gh, gw = oh1 + 2, ow1 + 2                 # padded conv2-input grid
    # the shifted-slice formulation relies on these (always true for this module)
    assert (oh2, ow2) == (oh1, ow1) and (oh3, ow3) == (oh2 - 1, ow2 - 1)

    tb = _pick_batch_tile(B)
    grid_n = -(-B // tb)                      # cdiv
    b_pad = grid_n * tb
    if b_pad != B:                            # ragged batch -> zero-pad
        x = jnp.pad(x, ((0, b_pad - B), (0, 0), (0, 0), (0, 0)))
        v = jnp.pad(v, ((0, b_pad - B), (0, 0)))

    p1 = _conv1_patches(x, tb, gh, gw)        # [grid_n*gh*gw*tb, 36*C] bf16
    mask = _halo_mask(gh, gw, oh1, ow1, tb)   # [gh*gw*tb, 1] bf16
    ra = gh * gw * tb

    weights = [params[k] for k in _WEIGHT_ORDER]
    npad = params["head_w"].shape[1]          # lane-padded head width

    kernel = functools.partial(
        _dqn_kernel, tb=tb, gw=gw, oh2=oh2, ow2=ow2, oh3=oh3, ow3=ow3)

    out = pl.pallas_call(
        kernel,
        out_shape=jax.ShapeDtypeStruct((b_pad, npad), jnp.float32),
        grid_spec=pltpu.PrefetchScalarGridSpec(
            num_scalar_prefetch=0,
            grid=(grid_n,),
            in_specs=[
                pl.BlockSpec((ra, p1.shape[1]), lambda g: (g, 0)),   # conv1 patches
                pl.BlockSpec((tb, 2), lambda g: (g, 0)),             # v
                pl.BlockSpec((ra, 1), lambda g: (0, 0)),             # halo mask
            ] + [_resident_spec(wt.shape) for wt in weights],
            out_specs=pl.BlockSpec((tb, npad), lambda g: (g, 0)),
            scratch_shapes=[
                pltpu.VMEM((tb, oh3 * ow3 * 32), jnp.float32),       # fc3 input
            ],
        ),
        compiler_params=pltpu.CompilerParams(
            dimension_semantics=("parallel",),
            vmem_limit_bytes=48 * 1024 * 1024),
    )(p1, v, mask, *weights)

    return out[:B, :num_outputs]


# --------------------------------------------------------------------------
# Parameter construction (random init in the kernel's packed layout)
# --------------------------------------------------------------------------

def init_params(key, input_channels, h, w, outputs):
    """Random parameters in the kernel's packed layout.

    Mapping from the PyTorch module (for loading a real checkpoint):
      conv{k}_w : torch convk.weight [OC,IC,KH,KW] -> permute(2,3,1,0)
                  -> reshape(KH*KW*IC, OC)            (rows ordered kh, kw, c_in)
      fc3_w     : torch fc3.weight [64, 32*OH*OW] -> reshape(64,32,OH,OW)
                  -> permute(2,3,1,0) -> reshape(OH*OW*32, 64)
                  (the kernel flattens conv3 output in (oh, ow, c) order)
      fc4_wx/wv : torch fc4.weight[:, :64].T  /  fc4.weight[:, 64:].T
      other fc  : torch weight.T; all biases stored as [1, N] float32
      bn{k}_s/t : gamma/sqrt(var+eps),  beta - mean*scale   (eval-mode BN)
      head_w/b  : zero-padded on the output dim to a multiple of 128 lanes
      All matmul weights are stored in bf16; biases / bn vectors stay float32.
    """
    out_h = _conv_out_size(_conv_out_size(_conv_out_size(h, 3, 6, 2), 1, 3, 1), 0, 2, 1)
    out_w = _conv_out_size(_conv_out_size(_conv_out_size(w, 3, 6, 2), 1, 3, 1), 0, 2, 1)
    npad = ((outputs + 127) // 128) * 128
    bf16 = jnp.bfloat16

    def uniform(k, shape, bound, dtype=jnp.float32):
        return jax.random.uniform(k, shape, jnp.float32, -bound, bound).astype(dtype)

    def bn(k, c):
        kg, kb, km, kv = jax.random.split(k, 4)
        gamma = jax.random.uniform(kg, (1, c), jnp.float32, 0.5, 1.5)
        beta = jax.random.uniform(kb, (1, c), jnp.float32, -0.5, 0.5)
        mean = jax.random.uniform(km, (1, c), jnp.float32, -0.1, 0.1)
        var = jax.random.uniform(kv, (1, c), jnp.float32, 0.5, 1.5)
        scale = gamma / jnp.sqrt(var + 1e-5)
        return scale, beta - mean * scale

    ks = jax.random.split(key, 24)
    p = {}

    c1_fan = input_channels * 36
    p["conv1_w"] = uniform(ks[0], (c1_fan, 16), 1.0 / c1_fan ** 0.5, bf16)
    p["conv1_b"] = uniform(ks[1], (1, 16), 1.0 / c1_fan ** 0.5)
    p["bn1_s"], p["bn1_t"] = bn(ks[2], 16)

    p["conv2_w"] = uniform(ks[3], (144, 32), 1.0 / 144 ** 0.5, bf16)
    p["conv2_b"] = uniform(ks[4], (1, 32), 1.0 / 144 ** 0.5)
    p["bn2_s"], p["bn2_t"] = bn(ks[5], 32)

    p["conv3_w"] = uniform(ks[6], (128, 32), 1.0 / 128 ** 0.5, bf16)
    p["conv3_b"] = uniform(ks[7], (1, 32), 1.0 / 128 ** 0.5)
    p["bn3_s"], p["bn3_t"] = bn(ks[8], 32)

    p["fc1_w"] = uniform(ks[9], (2, 32), 1.0 / 2 ** 0.5, bf16)
    p["fc1_b"] = uniform(ks[10], (1, 32), 1.0 / 2 ** 0.5)
    p["fc2_w"] = uniform(ks[11], (32, 64), 1.0 / 32 ** 0.5, bf16)
    p["fc2_b"] = uniform(ks[12], (1, 64), 1.0 / 32 ** 0.5)

    fc3_in = 32 * out_h * out_w
    p["fc3_w"] = uniform(ks[13], (fc3_in, 64), 1.0 / fc3_in ** 0.5, bf16)
    p["fc3_b"] = uniform(ks[14], (1, 64), 1.0 / fc3_in ** 0.5)

    p["fc4_wx"] = uniform(ks[15], (64, 64), 1.0 / 128 ** 0.5, bf16)
    p["fc4_wv"] = uniform(ks[16], (64, 64), 1.0 / 128 ** 0.5, bf16)
    p["fc4_b"] = uniform(ks[17], (1, 64), 1.0 / 128 ** 0.5)

    head_w = uniform(ks[18], (64, outputs), 1.0 / 64 ** 0.5)
    head_b = uniform(ks[19], (1, outputs), 1.0 / 64 ** 0.5)
    p["head_w"] = jnp.zeros((64, npad), jnp.float32).at[:, :outputs].set(head_w).astype(bf16)
    p["head_b"] = jnp.zeros((1, npad), jnp.float32).at[:, :outputs].set(head_b)
    return p


# --------------------------------------------------------------------------
# Demo
# --------------------------------------------------------------------------

if __name__ == "__main__":
    B, C, H, W = 2, 4, 16, 16
    OUTPUTS = 5

    key = jax.random.PRNGKey(0)
    kp, kx, kv = jax.random.split(key, 3)

    params = init_params(kp, C, H, W, OUTPUTS)
    x = jax.random.normal(kx, (B, C, H, W), jnp.float32)
    v = jax.random.normal(kv, (B, 2), jnp.float32)

    fwd = jax.jit(functools.partial(dqn_forward, num_outputs=OUTPUTS))
    out = fwd(params, x, v)
    jax.block_until_ready(out)
    assert out.shape == (B, OUTPUTS), out.shape
    print("KERNEL_OK")
</pallas_src>

<mosaic_0001>
module attributes {stable_mosaic.version = 11 : i64} {
  func.func @_dqn_kernel(%arg0: i32, %arg1: memref<242x144xbf16, #tpu.memory_space<vmem>>, %arg2: memref<2x2xf32, #tpu.memory_space<vmem>>, %arg3: memref<242x1xbf16, #tpu.memory_space<vmem>>, %arg4: memref<144x16xbf16, #tpu.memory_space<vmem>>, %arg5: memref<1x16xf32, #tpu.memory_space<vmem>>, %arg6: memref<1x16xf32, #tpu.memory_space<vmem>>, %arg7: memref<1x16xf32, #tpu.memory_space<vmem>>, %arg8: memref<144x32xbf16, #tpu.memory_space<vmem>>, %arg9: memref<1x32xf32, #tpu.memory_space<vmem>>, %arg10: memref<1x32xf32, #tpu.memory_space<vmem>>, %arg11: memref<1x32xf32, #tpu.memory_space<vmem>>, %arg12: memref<128x32xbf16, #tpu.memory_space<vmem>>, %arg13: memref<1x32xf32, #tpu.memory_space<vmem>>, %arg14: memref<1x32xf32, #tpu.memory_space<vmem>>, %arg15: memref<1x32xf32, #tpu.memory_space<vmem>>, %arg16: memref<2x32xbf16, #tpu.memory_space<vmem>>, %arg17: memref<1x32xf32, #tpu.memory_space<vmem>>, %arg18: memref<32x64xbf16, #tpu.memory_space<vmem>>, %arg19: memref<1x64xf32, #tpu.memory_space<vmem>>, %arg20: memref<2048x64xbf16, #tpu.memory_space<vmem>>, %arg21: memref<1x64xf32, #tpu.memory_space<vmem>>, %arg22: memref<64x64xbf16, #tpu.memory_space<vmem>>, %arg23: memref<64x64xbf16, #tpu.memory_space<vmem>>, %arg24: memref<1x64xf32, #tpu.memory_space<vmem>>, %arg25: memref<64x128xbf16, #tpu.memory_space<vmem>>, %arg26: memref<1x128xf32, #tpu.memory_space<vmem>>, %arg27: memref<2x128xf32, #tpu.memory_space<vmem>>, %arg28: memref<2x2048xf32, #tpu.memory_space<vmem>>) attributes {dimension_semantics = [#tpu.dimension_semantics<parallel>], iteration_bounds = array<i64: 1>, scalar_prefetch = 0 : i64, scratch_operands = 1 : i64, tpu.core_type = #tpu.core_type<tc>, window_params = [{transform_indices = @transform_0, window_bounds = array<i64: 242, 144>}, {transform_indices = @transform_1, window_bounds = array<i64: 2, 2>}, {pipeline_mode = #tpu.pipeline_mode<synchronous>, transform_indices = @transform_2, window_bounds = array<i64: 242, 1>}, {pipeline_mode = #tpu.pipeline_mode<synchronous>, transform_indices = @transform_3, window_bounds = array<i64: 144, 16>}, {pipeline_mode = #tpu.pipeline_mode<synchronous>, transform_indices = @transform_4, window_bounds = array<i64: 1, 16>}, {pipeline_mode = #tpu.pipeline_mode<synchronous>, transform_indices = @transform_5, window_bounds = array<i64: 1, 16>}, {pipeline_mode = #tpu.pipeline_mode<synchronous>, transform_indices = @transform_6, window_bounds = array<i64: 1, 16>}, {pipeline_mode = #tpu.pipeline_mode<synchronous>, transform_indices = @transform_7, window_bounds = array<i64: 144, 32>}, {pipeline_mode = #tpu.pipeline_mode<synchronous>, transform_indices = @transform_8, window_bounds = array<i64: 1, 32>}, {pipeline_mode = #tpu.pipeline_mode<synchronous>, transform_indices = @transform_9, window_bounds = array<i64: 1, 32>}, {pipeline_mode = #tpu.pipeline_mode<synchronous>, transform_indices = @transform_10, window_bounds = array<i64: 1, 32>}, {pipeline_mode = #tpu.pipeline_mode<synchronous>, transform_indices = @transform_11, window_bounds = array<i64: 128, 32>}, {pipeline_mode = #tpu.pipeline_mode<synchronous>, transform_indices = @transform_12, window_bounds = array<i64: 1, 32>}, {pipeline_mode = #tpu.pipeline_mode<synchronous>, transform_indices = @transform_13, window_bounds = array<i64: 1, 32>}, {pipeline_mode = #tpu.pipeline_mode<synchronous>, transform_indices = @transform_14, window_bounds = array<i64: 1, 32>}, {pipeline_mode = #tpu.pipeline_mode<synchronous>, transform_indices = @transform_15, window_bounds = array<i64: 2, 32>}, {pipeline_mode = #tpu.pipeline_mode<synchronous>, transform_indices = @transform_16, window_bounds = array<i64: 1, 32>}, {pipeline_mode = #tpu.pipeline_mode<synchronous>, transform_indices = @transform_17, window_bounds = array<i64: 32, 64>}, {pipeline_mode = #tpu.pipeline_mode<synchronous>, transform_indices = @transform_18, window_bounds = array<i64: 1, 64>}, {pipeline_mode = #tpu.pipeline_mode<synchronous>, transform_indices = @transform_19, window_bounds = array<i64: 2048, 64>}, {pipeline_mode = #tpu.pipeline_mode<synchronous>, transform_indices = @transform_20, window_bounds = array<i64: 1, 64>}, {pipeline_mode = #tpu.pipeline_mode<synchronous>, transform_indices = @transform_21, window_bounds = array<i64: 64, 64>}, {pipeline_mode = #tpu.pipeline_mode<synchronous>, transform_indices = @transform_22, window_bounds = array<i64: 64, 64>}, {pipeline_mode = #tpu.pipeline_mode<synchronous>, transform_indices = @transform_23, window_bounds = array<i64: 1, 64>}, {pipeline_mode = #tpu.pipeline_mode<synchronous>, transform_indices = @transform_24, window_bounds = array<i64: 64, 128>}, {pipeline_mode = #tpu.pipeline_mode<synchronous>, transform_indices = @transform_25, window_bounds = array<i64: 1, 128>}, {transform_indices = @transform_26, window_bounds = array<i64: 2, 128>}]} {
    %c0 = arith.constant 0 : index
    %c0_0 = arith.constant 0 : index
    %0 = vector.load %arg1[%c0, %c0_0] : memref<242x144xbf16, #tpu.memory_space<vmem>>, vector<242x144xbf16>
    %c0_1 = arith.constant 0 : index
    %c0_2 = arith.constant 0 : index
    %1 = vector.load %arg4[%c0_1, %c0_2] : memref<144x16xbf16, #tpu.memory_space<vmem>>, vector<144x16xbf16>
    %cst = arith.constant dense<0.000000e+00> : vector<242x16xf32>
    %2 = tpu.matmul %0, %1, %cst {dimension_numbers = #tpu.dot_dimension_numbers<[1], [0], [0], [1], [0, 0, 1, 1], [], []>} : vector<242x144xbf16>, vector<144x16xbf16>, vector<242x16xf32> -> vector<242x16xf32>
    %c0_3 = arith.constant 0 : index
    %c0_4 = arith.constant 0 : index
    %3 = vector.load %arg5[%c0_3, %c0_4] : memref<1x16xf32, #tpu.memory_space<vmem>>, vector<1x16xf32>
    %4 = vector.broadcast %3 : vector<1x16xf32> to vector<242x16xf32>
    %5 = arith.addf %2, %4 : vector<242x16xf32>
    %cst_5 = arith.constant 0.000000e+00 : f32
    %6 = vector.broadcast %cst_5 : f32 to vector<242x16xf32>
    %7 = arith.maximumf %5, %6 : vector<242x16xf32>
    %c0_6 = arith.constant 0 : index
    %c0_7 = arith.constant 0 : index
    %8 = vector.load %arg6[%c0_6, %c0_7] : memref<1x16xf32, #tpu.memory_space<vmem>>, vector<1x16xf32>
    %9 = vector.broadcast %8 : vector<1x16xf32> to vector<242x16xf32>
    %10 = arith.mulf %7, %9 : vector<242x16xf32>
    %c0_8 = arith.constant 0 : index
    %c0_9 = arith.constant 0 : index
    %11 = vector.load %arg7[%c0_8, %c0_9] : memref<1x16xf32, #tpu.memory_space<vmem>>, vector<1x16xf32>
    %12 = vector.broadcast %11 : vector<1x16xf32> to vector<242x16xf32>
    %13 = arith.addf %10, %12 : vector<242x16xf32>
    %c0_10 = arith.constant 0 : index
    %c0_11 = arith.constant 0 : index
    %14 = vector.load %arg3[%c0_10, %c0_11] : memref<242x1xbf16, #tpu.memory_space<vmem>>, vector<242x1xbf16>
    %15 = arith.extf %14 : vector<242x1xbf16> to vector<242x1xf32>
    %16 = vector.broadcast %15 : vector<242x1xf32> to vector<242x16xf32>
    %17 = arith.mulf %13, %16 : vector<242x16xf32>
    %18 = vector.extract_strided_slice %17 {offsets = [0, 0], sizes = [194, 16], strides = [1, 1]} : vector<242x16xf32> to vector<194x16xf32>
    %19 = arith.truncf %18 : vector<194x16xf32> to vector<194x16xbf16>
    %c0_12 = arith.constant 0 : index
    %c0_13 = arith.constant 0 : index
    %20 = vector.load %arg8[%c0_12, %c0_13] : memref<144x32xbf16, #tpu.memory_space<vmem>>, vector<16x32xbf16>
    %cst_14 = arith.constant dense<0.000000e+00> : vector<194x32xf32>
    %21 = tpu.matmul %19, %20, %cst_14 {dimension_numbers = #tpu.dot_dimension_numbers<[1], [0], [0], [1], [0, 0, 1, 1], [], []>} : vector<194x16xbf16>, vector<16x32xbf16>, vector<194x32xf32> -> vector<194x32xf32>
    %22 = vector.extract_strided_slice %17 {offsets = [2, 0], sizes = [194, 16], strides = [1, 1]} : vector<242x16xf32> to vector<194x16xf32>
    %23 = arith.truncf %22 : vector<194x16xf32> to vector<194x16xbf16>
    %c16 = arith.constant 16 : index
    %c0_15 = arith.constant 0 : index
    %24 = vector.load %arg8[%c16, %c0_15] : memref<144x32xbf16, #tpu.memory_space<vmem>>, vector<16x32xbf16>
    %cst_16 = arith.constant dense<0.000000e+00> : vector<194x32xf32>
    %25 = tpu.matmul %23, %24, %cst_16 {dimension_numbers = #tpu.dot_dimension_numbers<[1], [0], [0], [1], [0, 0, 1, 1], [], []>} : vector<194x16xbf16>, vector<16x32xbf16>, vector<194x32xf32> -> vector<194x32xf32>
    %26 = arith.addf %21, %25 : vector<194x32xf32>
    %27 = vector.extract_strided_slice %17 {offsets = [4, 0], sizes = [194, 16], strides = [1, 1]} : vector<242x16xf32> to vector<194x16xf32>
    %28 = arith.truncf %27 : vector<194x16xf32> to vector<194x16xbf16>
    %c32 = arith.constant 32 : index
    %c0_17 = arith.constant 0 : index
    %29 = vector.load %arg8[%c32, %c0_17] : memref<144x32xbf16, #tpu.memory_space<vmem>>, vector<16x32xbf16>
    %cst_18 = arith.constant dense<0.000000e+00> : vector<194x32xf32>
    %30 = tpu.matmul %28, %29, %cst_18 {dimension_numbers = #tpu.dot_dimension_numbers<[1], [0], [0], [1], [0, 0, 1, 1], [], []>} : vector<194x16xbf16>, vector<16x32xbf16>, vector<194x32xf32> -> vector<194x32xf32>
    %31 = arith.addf %26, %30 : vector<194x32xf32>
    %32 = vector.extract_strided_slice %17 {offsets = [22, 0], sizes = [194, 16], strides = [1, 1]} : vector<242x16xf32> to vector<194x16xf32>
    %33 = arith.truncf %32 : vector<194x16xf32> to vector<194x16xbf16>
    %c48 = arith.constant 48 : index
    %c0_19 = arith.constant 0 : index
    %34 = vector.load %arg8[%c48, %c0_19] : memref<144x32xbf16, #tpu.memory_space<vmem>>, vector<16x32xbf16>
    %cst_20 = arith.constant dense<0.000000e+00> : vector<194x32xf32>
    %35 = tpu.matmul %33, %34, %cst_20 {dimension_numbers = #tpu.dot_dimension_numbers<[1], [0], [0], [1], [0, 0, 1, 1], [], []>} : vector<194x16xbf16>, vector<16x32xbf16>, vector<194x32xf32> -> vector<194x32xf32>
    %36 = arith.addf %31, %35 : vector<194x32xf32>
    %37 = vector.extract_strided_slice %17 {offsets = [24, 0], sizes = [194, 16], strides = [1, 1]} : vector<242x16xf32> to vector<194x16xf32>
    %38 = arith.truncf %37 : vector<194x16xf32> to vector<194x16xbf16>
    %c64 = arith.constant 64 : index
    %c0_21 = arith.constant 0 : index
    %39 = vector.load %arg8[%c64, %c0_21] : memref<144x32xbf16, #tpu.memory_space<vmem>>, vector<16x32xbf16>
    %cst_22 = arith.constant dense<0.000000e+00> : vector<194x32xf32>
    %40 = tpu.matmul %38, %39, %cst_22 {dimension_numbers = #tpu.dot_dimension_numbers<[1], [0], [0], [1], [0, 0, 1, 1], [], []>} : vector<194x16xbf16>, vector<16x32xbf16>, vector<194x32xf32> -> vector<194x32xf32>
    %41 = arith.addf %36, %40 : vector<194x32xf32>
    %42 = vector.extract_strided_slice %17 {offsets = [26, 0], sizes = [194, 16], strides = [1, 1]} : vector<242x16xf32> to vector<194x16xf32>
    %43 = arith.truncf %42 : vector<194x16xf32> to vector<194x16xbf16>
    %c80 = arith.constant 80 : index
    %c0_23 = arith.constant 0 : index
    %44 = vector.load %arg8[%c80, %c0_23] : memref<144x32xbf16, #tpu.memory_space<vmem>>, vector<16x32xbf16>
    %cst_24 = arith.constant dense<0.000000e+00> : vector<194x32xf32>
    %45 = tpu.matmul %43, %44, %cst_24 {dimension_numbers = #tpu.dot_dimension_numbers<[1], [0], [0], [1], [0, 0, 1, 1], [], []>} : vector<194x16xbf16>, vector<16x32xbf16>, vector<194x32xf32> -> vector<194x32xf32>
    %46 = arith.addf %41, %45 : vector<194x32xf32>
    %47 = vector.extract_strided_slice %17 {offsets = [44, 0], sizes = [194, 16], strides = [1, 1]} : vector<242x16xf32> to vector<194x16xf32>
    %48 = arith.truncf %47 : vector<194x16xf32> to vector<194x16xbf16>
    %c96 = arith.constant 96 : index
    %c0_25 = arith.constant 0 : index
    %49 = vector.load %arg8[%c96, %c0_25] : memref<144x32xbf16, #tpu.memory_space<vmem>>, vector<16x32xbf16>
    %cst_26 = arith.constant dense<0.000000e+00> : vector<194x32xf32>
    %50 = tpu.matmul %48, %49, %cst_26 {dimension_numbers = #tpu.dot_dimension_numbers<[1], [0], [0], [1], [0, 0, 1, 1], [], []>} : vector<194x16xbf16>, vector<16x32xbf16>, vector<194x32xf32> -> vector<194x32xf32>
    %51 = arith.addf %46, %50 : vector<194x32xf32>
    %52 = vector.extract_strided_slice %17 {offsets = [46, 0], sizes = [194, 16], strides = [1, 1]} : vector<242x16xf32> to vector<194x16xf32>
    %53 = arith.truncf %52 : vector<194x16xf32> to vector<194x16xbf16>
    %c112 = arith.constant 112 : index
    %c0_27 = arith.constant 0 : index
    %54 = vector.load %arg8[%c112, %c0_27] : memref<144x32xbf16, #tpu.memory_space<vmem>>, vector<16x32xbf16>
    %cst_28 = arith.constant dense<0.000000e+00> : vector<194x32xf32>
    %55 = tpu.matmul %53, %54, %cst_28 {dimension_numbers = #tpu.dot_dimension_numbers<[1], [0], [0], [1], [0, 0, 1, 1], [], []>} : vector<194x16xbf16>, vector<16x32xbf16>, vector<194x32xf32> -> vector<194x32xf32>
    %56 = arith.addf %51, %55 : vector<194x32xf32>
    %57 = vector.extract_strided_slice %17 {offsets = [48, 0], sizes = [194, 16], strides = [1, 1]} : vector<242x16xf32> to vector<194x16xf32>
    %58 = arith.truncf %57 : vector<194x16xf32> to vector<194x16xbf16>
    %c128 = arith.constant 128 : index
    %c0_29 = arith.constant 0 : index
    %59 = vector.load %arg8[%c128, %c0_29] : memref<144x32xbf16, #tpu.memory_space<vmem>>, vector<16x32xbf16>
    %cst_30 = arith.constant dense<0.000000e+00> : vector<194x32xf32>
    %60 = tpu.matmul %58, %59, %cst_30 {dimension_numbers = #tpu.dot_dimension_numbers<[1], [0], [0], [1], [0, 0, 1, 1], [], []>} : vector<194x16xbf16>, vector<16x32xbf16>, vector<194x32xf32> -> vector<194x32xf32>
    %61 = arith.addf %56, %60 : vector<194x32xf32>
    %c0_31 = arith.constant 0 : index
    %c0_32 = arith.constant 0 : index
    %62 = vector.load %arg9[%c0_31, %c0_32] : memref<1x32xf32, #tpu.memory_space<vmem>>, vector<1x32xf32>
    %63 = vector.broadcast %62 : vector<1x32xf32> to vector<194x32xf32>
    %64 = arith.addf %61, %63 : vector<194x32xf32>
    %cst_33 = arith.constant 0.000000e+00 : f32
    %65 = vector.broadcast %cst_33 : f32 to vector<194x32xf32>
    %66 = arith.maximumf %64, %65 : vector<194x32xf32>
    %c0_34 = arith.constant 0 : index
    %c0_35 = arith.constant 0 : index
    %67 = vector.load %arg10[%c0_34, %c0_35] : memref<1x32xf32, #tpu.memory_space<vmem>>, vector<1x32xf32>
    %68 = vector.broadcast %67 : vector<1x32xf32> to vector<194x32xf32>
    %69 = arith.mulf %66, %68 : vector<194x32xf32>
    %c0_36 = arith.constant 0 : index
    %c0_37 = arith.constant 0 : index
    %70 = vector.load %arg11[%c0_36, %c0_37] : memref<1x32xf32, #tpu.memory_space<vmem>>, vector<1x32xf32>
    %71 = vector.broadcast %70 : vector<1x32xf32> to vector<194x32xf32>
    %72 = arith.addf %69, %71 : vector<194x32xf32>
    %73 = vector.extract_strided_slice %72 {offsets = [0, 0], sizes = [170, 32], strides = [1, 1]} : vector<194x32xf32> to vector<170x32xf32>
    %74 = arith.truncf %73 : vector<170x32xf32> to vector<170x32xbf16>
    %c0_38 = arith.constant 0 : index
    %c0_39 = arith.constant 0 : index
    %75 = vector.load %arg12[%c0_38, %c0_39] : memref<128x32xbf16, #tpu.memory_space<vmem>>, vector<32x32xbf16>
    %cst_40 = arith.constant dense<0.000000e+00> : vector<170x32xf32>
    %76 = tpu.matmul %74, %75, %cst_40 {dimension_numbers = #tpu.dot_dimension_numbers<[1], [0], [0], [1], [0, 0, 1, 1], [], []>} : vector<170x32xbf16>, vector<32x32xbf16>, vector<170x32xf32> -> vector<170x32xf32>
    %77 = vector.extract_strided_slice %72 {offsets = [2, 0], sizes = [170, 32], strides = [1, 1]} : vector<194x32xf32> to vector<170x32xf32>
    %78 = arith.truncf %77 : vector<170x32xf32> to vector<170x32xbf16>
    %c32_41 = arith.constant 32 : index
    %c0_42 = arith.constant 0 : index
    %79 = vector.load %arg12[%c32_41, %c0_42] : memref<128x32xbf16, #tpu.memory_space<vmem>>, vector<32x32xbf16>
    %cst_43 = arith.constant dense<0.000000e+00> : vector<170x32xf32>
    %80 = tpu.matmul %78, %79, %cst_43 {dimension_numbers = #tpu.dot_dimension_numbers<[1], [0], [0], [1], [0, 0, 1, 1], [], []>} : vector<170x32xbf16>, vector<32x32xbf16>, vector<170x32xf32> -> vector<170x32xf32>
    %81 = arith.addf %76, %80 : vector<170x32xf32>
    %82 = vector.extract_strided_slice %72 {offsets = [22, 0], sizes = [170, 32], strides = [1, 1]} : vector<194x32xf32> to vector<170x32xf32>
    %83 = arith.truncf %82 : vector<170x32xf32> to vector<170x32xbf16>
    %c64_44 = arith.constant 64 : index
    %c0_45 = arith.constant 0 : index
    %84 = vector.load %arg12[%c64_44, %c0_45] : memref<128x32xbf16, #tpu.memory_space<vmem>>, vector<32x32xbf16>
    %cst_46 = arith.constant dense<0.000000e+00> : vector<170x32xf32>
    %85 = tpu.matmul %83, %84, %cst_46 {dimension_numbers = #tpu.dot_dimension_numbers<[1], [0], [0], [1], [0, 0, 1, 1], [], []>} : vector<170x32xbf16>, vector<32x32xbf16>, vector<170x32xf32> -> vector<170x32xf32>
    %86 = arith.addf %81, %85 : vector<170x32xf32>
    %87 = vector.extract_strided_slice %72 {offsets = [24, 0], sizes = [170, 32], strides = [1, 1]} : vector<194x32xf32> to vector<170x32xf32>
    %88 = arith.truncf %87 : vector<170x32xf32> to vector<170x32xbf16>
    %c96_47 = arith.constant 96 : index
    %c0_48 = arith.constant 0 : index
    %89 = vector.load %arg12[%c96_47, %c0_48] : memref<128x32xbf16, #tpu.memory_space<vmem>>, vector<32x32xbf16>
    %cst_49 = arith.constant dense<0.000000e+00> : vector<170x32xf32>
    %90 = tpu.matmul %88, %89, %cst_49 {dimension_numbers = #tpu.dot_dimension_numbers<[1], [0], [0], [1], [0, 0, 1, 1], [], []>} : vector<170x32xbf16>, vector<32x32xbf16>, vector<170x32xf32> -> vector<170x32xf32>
    %91 = arith.addf %86, %90 : vector<170x32xf32>
    %c0_50 = arith.constant 0 : index
    %c0_51 = arith.constant 0 : index
    %92 = vector.load %arg13[%c0_50, %c0_51] : memref<1x32xf32, #tpu.memory_space<vmem>>, vector<1x32xf32>
    %93 = vector.broadcast %92 : vector<1x32xf32> to vector<170x32xf32>
    %94 = arith.addf %91, %93 : vector<170x32xf32>
    %cst_52 = arith.constant 0.000000e+00 : f32
    %95 = vector.broadcast %cst_52 : f32 to vector<170x32xf32>
    %96 = arith.maximumf %94, %95 : vector<170x32xf32>
    %c0_53 = arith.constant 0 : index
    %c0_54 = arith.constant 0 : index
    %97 = vector.load %arg14[%c0_53, %c0_54] : memref<1x32xf32, #tpu.memory_space<vmem>>, vector<1x32xf32>
    %98 = vector.broadcast %97 : vector<1x32xf32> to vector<170x32xf32>
    %99 = arith.mulf %96, %98 : vector<170x32xf32>
    %c0_55 = arith.constant 0 : index
    %c0_56 = arith.constant 0 : index
    %100 = vector.load %arg15[%c0_55, %c0_56] : memref<1x32xf32, #tpu.memory_space<vmem>>, vector<1x32xf32>
    %101 = vector.broadcast %100 : vector<1x32xf32> to vector<170x32xf32>
    %102 = arith.addf %99, %101 : vector<170x32xf32>
    %103 = vector.extract_strided_slice %102 {offsets = [0, 0], sizes = [2, 32], strides = [1, 1]} : vector<170x32xf32> to vector<2x32xf32>
    %c0_57 = arith.constant 0 : index
    %c0_58 = arith.constant 0 : index
    %104 = vector.load %arg28[%c0_57, %c0_58] : memref<2x2048xf32, #tpu.memory_space<vmem>>, vector<2x32xf32>
    tpu.vector_store %arg28[%c0_57, %c0_58], %103 {strides = array<i32>} : memref<2x2048xf32, #tpu.memory_space<vmem>>, vector<2x32xf32>,
    %105 = vector.extract_strided_slice %102 {offsets = [2, 0], sizes = [2, 32], strides = [1, 1]} : vector<170x32xf32> to vector<2x32xf32>
    %c0_59 = arith.constant 0 : index
    %c32_60 = arith.constant 32 : index
    %106 = vector.load %arg28[%c0_59, %c32_60] : memref<2x2048xf32, #tpu.memory_space<vmem>>, vector<2x32xf32>
    tpu.vector_store %arg28[%c0_59, %c32_60], %105 {strides = array<i32>} : memref<2x2048xf32, #tpu.memory_space<vmem>>, vector<2x32xf32>,
    %107 = vector.extract_strided_slice %102 {offsets = [4, 0], sizes = [2, 32], strides = [1, 1]} : vector<170x32xf32> to vector<2x32xf32>
    %c0_61 = arith.constant 0 : index
    %c64_62 = arith.constant 64 : index
    %108 = vector.load %arg28[%c0_61, %c64_62] : memref<2x2048xf32, #tpu.memory_space<vmem>>, vector<2x32xf32>
    tpu.vector_store %arg28[%c0_61, %c64_62], %107 {strides = array<i32>} : memref<2x2048xf32, #tpu.memory_space<vmem>>, vector<2x32xf32>,
    %109 = vector.extract_strided_slice %102 {offsets = [6, 0], sizes = [2, 32], strides = [1, 1]} : vector<170x32xf32> to vector<2x32xf32>
    %c0_63 = arith.constant 0 : index
    %c96_64 = arith.constant 96 : index
    %110 = vector.load %arg28[%c0_63, %c96_64] : memref<2x2048xf32, #tpu.memory_space<vmem>>, vector<2x32xf32>
    tpu.vector_store %arg28[%c0_63, %c96_64], %109 {strides = array<i32>} : memref<2x2048xf32, #tpu.memory_space<vmem>>, vector<2x32xf32>,
    %111 = vector.extract_strided_slice %102 {offsets = [8, 0], sizes = [2, 32], strides = [1, 1]} : vector<170x32xf32> to vector<2x32xf32>
    %c0_65 = arith.constant 0 : index
    %c128_66 = arith.constant 128 : index
    %112 = vector.load %arg28[%c0_65, %c128_66] : memref<2x2048xf32, #tpu.memory_space<vmem>>, vector<2x32xf32>
    tpu.vector_store %arg28[%c0_65, %c128_66], %111 {strides = array<i32>} : memref<2x2048xf32, #tpu.memory_space<vmem>>, vector<2x32xf32>,
    %113 = vector.extract_strided_slice %102 {offsets = [10, 0], sizes = [2, 32], strides = [1, 1]} : vector<170x32xf32> to vector<2x32xf32>
    %c0_67 = arith.constant 0 : index
    %c160 = arith.constant 160 : index
    %114 = vector.load %arg28[%c0_67, %c160] : memref<2x2048xf32, #tpu.memory_space<vmem>>, vector<2x32xf32>
    tpu.vector_store %arg28[%c0_67, %c160], %113 {strides = array<i32>} : memref<2x2048xf32, #tpu.memory_space<vmem>>, vector<2x32xf32>,
    %115 = vector.extract_strided_slice %102 {offsets = [12, 0], sizes = [2, 32], strides = [1, 1]} : vector<170x32xf32> to vector<2x32xf32>
    %c0_68 = arith.constant 0 : index
    %c192 = arith.constant 192 : index
    %116 = vector.load %arg28[%c0_68, %c192] : memref<2x2048xf32, #tpu.memory_space<vmem>>, vector<2x32xf32>
    tpu.vector_store %arg28[%c0_68, %c192], %115 {strides = array<i32>} : memref<2x2048xf32, #tpu.memory_space<vmem>>, vector<2x32xf32>,
    %117 = vector.extract_strided_slice %102 {offsets = [14, 0], sizes = [2, 32], strides = [1, 1]} : vector<170x32xf32> to vector<2x32xf32>
    %c0_69 = arith.constant 0 : index
    %c224 = arith.constant 224 : index
    %118 = vector.load %arg28[%c0_69, %c224] : memref<2x2048xf32, #tpu.memory_space<vmem>>, vector<2x32xf32>
    tpu.vector_store %arg28[%c0_69, %c224], %117 {strides = array<i32>} : memref<2x2048xf32, #tpu.memory_space<vmem>>, vector<2x32xf32>,
    %119 = vector.extract_strided_slice %102 {offsets = [22, 0], sizes = [2, 32], strides = [1, 1]} : vector<170x32xf32> to vector<2x32xf32>
    %c0_70 = arith.constant 0 : index
    %c256 = arith.constant 256 : index
    %120 = vector.load %arg28[%c0_70, %c256] : memref<2x2048xf32, #tpu.memory_space<vmem>>, vector<2x32xf32>
    tpu.vector_store %arg28[%c0_70, %c256], %119 {strides = array<i32>} : memref<2x2048xf32, #tpu.memory_space<vmem>>, vector<2x32xf32>,
    %121 = vector.extract_strided_slice %102 {offsets = [24, 0], sizes = [2, 32], strides = [1, 1]} : vector<170x32xf32> to vector<2x32xf32>
    %c0_71 = arith.constant 0 : index
    %c288 = arith.constant 288 : index
    %122 = vector.load %arg28[%c0_71, %c288] : memref<2x2048xf32, #tpu.memory_space<vmem>>, vector<2x32xf32>
    tpu.vector_store %arg28[%c0_71, %c288], %121 {strides = array<i32>} : memref<2x2048xf32, #tpu.memory_space<vmem>>, vector<2x32xf32>,
    %123 = vector.extract_strided_slice %102 {offsets = [26, 0], sizes = [2, 32], strides = [1, 1]} : vector<170x32xf32> to vector<2x32xf32>
    %c0_72 = arith.constant 0 : index
    %c320 = arith.constant 320 : index
    %124 = vector.load %arg28[%c0_72, %c320] : memref<2x2048xf32, #tpu.memory_space<vmem>>, vector<2x32xf32>
    tpu.vector_store %arg28[%c0_72, %c320], %123 {strides = array<i32>} : memref<2x2048xf32, #tpu.memory_space<vmem>>, vector<2x32xf32>,
    %125 = vector.extract_strided_slice %102 {offsets = [28, 0], sizes = [2, 32], strides = [1, 1]} : vector<170x32xf32> to vector<2x32xf32>
    %c0_73 = arith.constant 0 : index
    %c352 = arith.constant 352 : index
    %126 = vector.load %arg28[%c0_73, %c352] : memref<2x2048xf32, #tpu.memory_space<vmem>>, vector<2x32xf32>
    tpu.vector_store %arg28[%c0_73, %c352], %125 {strides = array<i32>} : memref<2x2048xf32, #tpu.memory_space<vmem>>, vector<2x32xf32>,
    %127 = vector.extract_strided_slice %102 {offsets = [30, 0], sizes = [2, 32], strides = [1, 1]} : vector<170x32xf32> to vector<2x32xf32>
    %c0_74 = arith.constant 0 : index
    %c384 = arith.constant 384 : index
    %128 = vector.load %arg28[%c0_74, %c384] : memref<2x2048xf32, #tpu.memory_space<vmem>>, vector<2x32xf32>
    tpu.vector_store %arg28[%c0_74, %c384], %127 {strides = array<i32>} : memref<2x2048xf32, #tpu.memory_space<vmem>>, vector<2x32xf32>,
    %129 = vector.extract_strided_slice %102 {offsets = [32, 0], sizes = [2, 32], strides = [1, 1]} : vector<170x32xf32> to vector<2x32xf32>
    %c0_75 = arith.constant 0 : index
    %c416 = arith.constant 416 : index
    %130 = vector.load %arg28[%c0_75, %c416] : memref<2x2048xf32, #tpu.memory_space<vmem>>, vector<2x32xf32>
    tpu.vector_store %arg28[%c0_75, %c416], %129 {strides = array<i32>} : memref<2x2048xf32, #tpu.memory_space<vmem>>, vector<2x32xf32>,
    %131 = vector.extract_strided_slice %102 {offsets = [34, 0], sizes = [2, 32], strides = [1, 1]} : vector<170x32xf32> to vector<2x32xf32>
    %c0_76 = arith.constant 0 : index
    %c448 = arith.constant 448 : index
    %132 = vector.load %arg28[%c0_76, %c448] : memref<2x2048xf32, #tpu.memory_space<vmem>>, vector<2x32xf32>
    tpu.vector_store %arg28[%c0_76, %c448], %131 {strides = array<i32>} : memref<2x2048xf32, #tpu.memory_space<vmem>>, vector<2x32xf32>,
    %133 = vector.extract_strided_slice %102 {offsets = [36, 0], sizes = [2, 32], strides = [1, 1]} : vector<170x32xf32> to vector<2x32xf32>
    %c0_77 = arith.constant 0 : index
    %c480 = arith.constant 480 : index
    %134 = vector.load %arg28[%c0_77, %c480] : memref<2x2048xf32, #tpu.memory_space<vmem>>, vector<2x32xf32>
    tpu.vector_store %arg28[%c0_77, %c480], %133 {strides = array<i32>} : memref<2x2048xf32, #tpu.memory_space<vmem>>, vector<2x32xf32>,
    %135 = vector.extract_strided_slice %102 {offsets = [44, 0], sizes = [2, 32], strides = [1, 1]} : vector<170x32xf32> to vector<2x32xf32>
    %c0_78 = arith.constant 0 : index
    %c512 = arith.constant 512 : index
    %136 = vector.load %arg28[%c0_78, %c512] : memref<2x2048xf32, #tpu.memory_space<vmem>>, vector<2x32xf32>
    tpu.vector_store %arg28[%c0_78, %c512], %135 {strides = array<i32>} : memref<2x2048xf32, #tpu.memory_space<vmem>>, vector<2x32xf32>,
    %137 = vector.extract_strided_slice %102 {offsets = [46, 0], sizes = [2, 32], strides = [1, 1]} : vector<170x32xf32> to vector<2x32xf32>
    %c0_79 = arith.constant 0 : index
    %c544 = arith.constant 544 : index
    %138 = vector.load %arg28[%c0_79, %c544] : memref<2x2048xf32, #tpu.memory_space<vmem>>, vector<2x32xf32>
    tpu.vector_store %arg28[%c0_79, %c544], %137 {strides = array<i32>} : memref<2x2048xf32, #tpu.memory_space<vmem>>, vector<2x32xf32>,
    %139 = vector.extract_strided_slice %102 {offsets = [48, 0], sizes = [2, 32], strides = [1, 1]} : vector<170x32xf32> to vector<2x32xf32>
    %c0_80 = arith.constant 0 : index
    %c576 = arith.constant 576 : index
    %140 = vector.load %arg28[%c0_80, %c576] : memref<2x2048xf32, #tpu.memory_space<vmem>>, vector<2x32xf32>
    tpu.vector_store %arg28[%c0_80, %c576], %139 {strides = array<i32>} : memref<2x2048xf32, #tpu.memory_space<vmem>>, vector<2x32xf32>,
    %141 = vector.extract_strided_slice %102 {offsets = [50, 0], sizes = [2, 32], strides = [1, 1]} : vector<170x32xf32> to vector<2x32xf32>
    %c0_81 = arith.constant 0 : index
    %c608 = arith.constant 608 : index
    %142 = vector.load %arg28[%c0_81, %c608] : memref<2x2048xf32, #tpu.memory_space<vmem>>, vector<2x32xf32>
    tpu.vector_store %arg28[%c0_81, %c608], %141 {strides = array<i32>} : memref<2x2048xf32, #tpu.memory_space<vmem>>, vector<2x32xf32>,
    %143 = vector.extract_strided_slice %102 {offsets = [52, 0], sizes = [2, 32], strides = [1, 1]} : vector<170x32xf32> to vector<2x32xf32>
    %c0_82 = arith.constant 0 : index
    %c640 = arith.constant 640 : index
    %144 = vector.load %arg28[%c0_82, %c640] : memref<2x2048xf32, #tpu.memory_space<vmem>>, vector<2x32xf32>
    tpu.vector_store %arg28[%c0_82, %c640], %143 {strides = array<i32>} : memref<2x2048xf32, #tpu.memory_space<vmem>>, vector<2x32xf32>,
    %145 = vector.extract_strided_slice %102 {offsets = [54, 0], sizes = [2, 32], strides = [1, 1]} : vector<170x32xf32> to vector<2x32xf32>
    %c0_83 = arith.constant 0 : index
    %c672 = arith.constant 672 : index
    %146 = vector.load %arg28[%c0_83, %c672] : memref<2x2048xf32, #tpu.memory_space<vmem>>, vector<2x32xf32>
    tpu.vector_store %arg28[%c0_83, %c672], %145 {strides = array<i32>} : memref<2x2048xf32, #tpu.memory_space<vmem>>, vector<2x32xf32>,
    %147 = vector.extract_strided_slice %102 {offsets = [56, 0], sizes = [2, 32], strides = [1, 1]} : vector<170x32xf32> to vector<2x32xf32>
    %c0_84 = arith.constant 0 : index
    %c704 = arith.constant 704 : index
    %148 = vector.load %arg28[%c0_84, %c704] : memref<2x2048xf32, #tpu.memory_space<vmem>>, vector<2x32xf32>
    tpu.vector_store %arg28[%c0_84, %c704], %147 {strides = array<i32>} : memref<2x2048xf32, #tpu.memory_space<vmem>>, vector<2x32xf32>,
    %149 = vector.extract_strided_slice %102 {offsets = [58, 0], sizes = [2, 32], strides = [1, 1]} : vector<170x32xf32> to vector<2x32xf32>
    %c0_85 = arith.constant 0 : index
    %c736 = arith.constant 736 : index
    %150 = vector.load %arg28[%c0_85, %c736] : memref<2x2048xf32, #tpu.memory_space<vmem>>, vector<2x32xf32>
    tpu.vector_store %arg28[%c0_85, %c736], %149 {strides = array<i32>} : memref<2x2048xf32, #tpu.memory_space<vmem>>, vector<2x32xf32>,
    %151 = vector.extract_strided_slice %102 {offsets = [66, 0], sizes = [2, 32], strides = [1, 1]} : vector<170x32xf32> to vector<2x32xf32>
    %c0_86 = arith.constant 0 : index
    %c768 = arith.constant 768 : index
    %152 = vector.load %arg28[%c0_86, %c768] : memref<2x2048xf32, #tpu.memory_space<vmem>>, vector<2x32xf32>
    tpu.vector_store %arg28[%c0_86, %c768], %151 {strides = array<i32>} : memref<2x2048xf32, #tpu.memory_space<vmem>>, vector<2x32xf32>,
    %153 = vector.extract_strided_slice %102 {offsets = [68, 0], sizes = [2, 32], strides = [1, 1]} : vector<170x32xf32> to vector<2x32xf32>
    %c0_87 = arith.constant 0 : index
    %c800 = arith.constant 800 : index
    %154 = vector.load %arg28[%c0_87, %c800] : memref<2x2048xf32, #tpu.memory_space<vmem>>, vector<2x32xf32>
    tpu.vector_store %arg28[%c0_87, %c800], %153 {strides = array<i32>} : memref<2x2048xf32, #tpu.memory_space<vmem>>, vector<2x32xf32>,
    %155 = vector.extract_strided_slice %102 {offsets = [70, 0], sizes = [2, 32], strides = [1, 1]} : vector<170x32xf32> to vector<2x32xf32>
    %c0_88 = arith.constant 0 : index
    %c832 = arith.constant 832 : index
    %156 = vector.load %arg28[%c0_88, %c832] : memref<2x2048xf32, #tpu.memory_space<vmem>>, vector<2x32xf32>
    tpu.vector_store %arg28[%c0_88, %c832], %155 {strides = array<i32>} : memref<2x2048xf32, #tpu.memory_space<vmem>>, vector<2x32xf32>,
    %157 = vector.extract_strided_slice %102 {offsets = [72, 0], sizes = [2, 32], strides = [1, 1]} : vector<170x32xf32> to vector<2x32xf32>
    %c0_89 = arith.constant 0 : index
    %c864 = arith.constant 864 : index
    %158 = vector.load %arg28[%c0_89, %c864] : memref<2x2048xf32, #tpu.memory_space<vmem>>, vector<2x32xf32>
    tpu.vector_store %arg28[%c0_89, %c864], %157 {strides = array<i32>} : memref<2x2048xf32, #tpu.memory_space<vmem>>, vector<2x32xf32>,
    %159 = vector.extract_strided_slice %102 {offsets = [74, 0], sizes = [2, 32], strides = [1, 1]} : vector<170x32xf32> to vector<2x32xf32>
    %c0_90 = arith.constant 0 : index
    %c896 = arith.constant 896 : index
    %160 = vector.load %arg28[%c0_90, %c896] : memref<2x2048xf32, #tpu.memory_space<vmem>>, vector<2x32xf32>
    tpu.vector_store %arg28[%c0_90, %c896], %159 {strides = array<i32>} : memref<2x2048xf32, #tpu.memory_space<vmem>>, vector<2x32xf32>,
    %161 = vector.extract_strided_slice %102 {offsets = [76, 0], sizes = [2, 32], strides = [1, 1]} : vector<170x32xf32> to vector<2x32xf32>
    %c0_91 = arith.constant 0 : index
    %c928 = arith.constant 928 : index
    %162 = vector.load %arg28[%c0_91, %c928] : memref<2x2048xf32, #tpu.memory_space<vmem>>, vector<2x32xf32>
    tpu.vector_store %arg28[%c0_91, %c928], %161 {strides = array<i32>} : memref<2x2048xf32, #tpu.memory_space<vmem>>, vector<2x32xf32>,
    %163 = vector.extract_strided_slice %102 {offsets = [78, 0], sizes = [2, 32], strides = [1, 1]} : vector<170x32xf32> to vector<2x32xf32>
    %c0_92 = arith.constant 0 : index
    %c960 = arith.constant 960 : index
    %164 = vector.load %arg28[%c0_92, %c960] : memref<2x2048xf32, #tpu.memory_space<vmem>>, vector<2x32xf32>
    tpu.vector_store %arg28[%c0_92, %c960], %163 {strides = array<i32>} : memref<2x2048xf32, #tpu.memory_space<vmem>>, vector<2x32xf32>,
    %165 = vector.extract_strided_slice %102 {offsets = [80, 0], sizes = [2, 32], strides = [1, 1]} : vector<170x32xf32> to vector<2x32xf32>
    %c0_93 = arith.constant 0 : index
    %c992 = arith.constant 992 : index
    %166 = vector.load %arg28[%c0_93, %c992] : memref<2x2048xf32, #tpu.memory_space<vmem>>, vector<2x32xf32>
    tpu.vector_store %arg28[%c0_93, %c992], %165 {strides = array<i32>} : memref<2x2048xf32, #tpu.memory_space<vmem>>, vector<2x32xf32>,
    %167 = vector.extract_strided_slice %102 {offsets = [88, 0], sizes = [2, 32], strides = [1, 1]} : vector<170x32xf32> to vector<2x32xf32>
    %c0_94 = arith.constant 0 : index
    %c1024 = arith.constant 1024 : index
    %168 = vector.load %arg28[%c0_94, %c1024] : memref<2x2048xf32, #tpu.memory_space<vmem>>, vector<2x32xf32>
    tpu.vector_store %arg28[%c0_94, %c1024], %167 {strides = array<i32>} : memref<2x2048xf32, #tpu.memory_space<vmem>>, vector<2x32xf32>,
    %169 = vector.extract_strided_slice %102 {offsets = [90, 0], sizes = [2, 32], strides = [1, 1]} : vector<170x32xf32> to vector<2x32xf32>
    %c0_95 = arith.constant 0 : index
    %c1056 = arith.constant 1056 : index
    %170 = vector.load %arg28[%c0_95, %c1056] : memref<2x2048xf32, #tpu.memory_space<vmem>>, vector<2x32xf32>
    tpu.vector_store %arg28[%c0_95, %c1056], %169 {strides = array<i32>} : memref<2x2048xf32, #tpu.memory_space<vmem>>, vector<2x32xf32>,
    %171 = vector.extract_strided_slice %102 {offsets = [92, 0], sizes = [2, 32], strides = [1, 1]} : vector<170x32xf32> to vector<2x32xf32>
    %c0_96 = arith.constant 0 : index
    %c1088 = arith.constant 1088 : index
    %172 = vector.load %arg28[%c0_96, %c1088] : memref<2x2048xf32, #tpu.memory_space<vmem>>, vector<2x32xf32>
    tpu.vector_store %arg28[%c0_96, %c1088], %171 {strides = array<i32>} : memref<2x2048xf32, #tpu.memory_space<vmem>>, vector<2x32xf32>,
    %173 = vector.extract_strided_slice %102 {offsets = [94, 0], sizes = [2, 32], strides = [1, 1]} : vector<170x32xf32> to vector<2x32xf32>
    %c0_97 = arith.constant 0 : index
    %c1120 = arith.constant 1120 : index
    %174 = vector.load %arg28[%c0_97, %c1120] : memref<2x2048xf32, #tpu.memory_space<vmem>>, vector<2x32xf32>
    tpu.vector_store %arg28[%c0_97, %c1120], %173 {strides = array<i32>} : memref<2x2048xf32, #tpu.memory_space<vmem>>, vector<2x32xf32>,
    %175 = vector.extract_strided_slice %102 {offsets = [96, 0], sizes = [2, 32], strides = [1, 1]} : vector<170x32xf32> to vector<2x32xf32>
    %c0_98 = arith.constant 0 : index
    %c1152 = arith.constant 1152 : index
    %176 = vector.load %arg28[%c0_98, %c1152] : memref<2x2048xf32, #tpu.memory_space<vmem>>, vector<2x32xf32>
    tpu.vector_store %arg28[%c0_98, %c1152], %175 {strides = array<i32>} : memref<2x2048xf32, #tpu.memory_space<vmem>>, vector<2x32xf32>,
    %177 = vector.extract_strided_slice %102 {offsets = [98, 0], sizes = [2, 32], strides = [1, 1]} : vector<170x32xf32> to vector<2x32xf32>
    %c0_99 = arith.constant 0 : index
    %c1184 = arith.constant 1184 : index
    %178 = vector.load %arg28[%c0_99, %c1184] : memref<2x2048xf32, #tpu.memory_space<vmem>>, vector<2x32xf32>
    tpu.vector_store %arg28[%c0_99, %c1184], %177 {strides = array<i32>} : memref<2x2048xf32, #tpu.memory_space<vmem>>, vector<2x32xf32>,
    %179 = vector.extract_strided_slice %102 {offsets = [100, 0], sizes = [2, 32], strides = [1, 1]} : vector<170x32xf32> to vector<2x32xf32>
    %c0_100 = arith.constant 0 : index
    %c1216 = arith.constant 1216 : index
    %180 = vector.load %arg28[%c0_100, %c1216] : memref<2x2048xf32, #tpu.memory_space<vmem>>, vector<2x32xf32>
    tpu.vector_store %arg28[%c0_100, %c1216], %179 {strides = array<i32>} : memref<2x2048xf32, #tpu.memory_space<vmem>>, vector<2x32xf32>,
    %181 = vector.extract_strided_slice %102 {offsets = [102, 0], sizes = [2, 32], strides = [1, 1]} : vector<170x32xf32> to vector<2x32xf32>
    %c0_101 = arith.constant 0 : index
    %c1248 = arith.constant 1248 : index
    %182 = vector.load %arg28[%c0_101, %c1248] : memref<2x2048xf32, #tpu.memory_space<vmem>>, vector<2x32xf32>
    tpu.vector_store %arg28[%c0_101, %c1248], %181 {strides = array<i32>} : memref<2x2048xf32, #tpu.memory_space<vmem>>, vector<2x32xf32>,
    %183 = vector.extract_strided_slice %102 {offsets = [110, 0], sizes = [2, 32], strides = [1, 1]} : vector<170x32xf32> to vector<2x32xf32>
    %c0_102 = arith.constant 0 : index
    %c1280 = arith.constant 1280 : index
    %184 = vector.load %arg28[%c0_102, %c1280] : memref<2x2048xf32, #tpu.memory_space<vmem>>, vector<2x32xf32>
    tpu.vector_store %arg28[%c0_102, %c1280], %183 {strides = array<i32>} : memref<2x2048xf32, #tpu.memory_space<vmem>>, vector<2x32xf32>,
    %185 = vector.extract_strided_slice %102 {offsets = [112, 0], sizes = [2, 32], strides = [1, 1]} : vector<170x32xf32> to vector<2x32xf32>
    %c0_103 = arith.constant 0 : index
    %c1312 = arith.constant 1312 : index
    %186 = vector.load %arg28[%c0_103, %c1312] : memref<2x2048xf32, #tpu.memory_space<vmem>>, vector<2x32xf32>
    tpu.vector_store %arg28[%c0_103, %c1312], %185 {strides = array<i32>} : memref<2x2048xf32, #tpu.memory_space<vmem>>, vector<2x32xf32>,
    %187 = vector.extract_strided_slice %102 {offsets = [114, 0], sizes = [2, 32], strides = [1, 1]} : vector<170x32xf32> to vector<2x32xf32>
    %c0_104 = arith.constant 0 : index
    %c1344 = arith.constant 1344 : index
    %188 = vector.load %arg28[%c0_104, %c1344] : memref<2x2048xf32, #tpu.memory_space<vmem>>, vector<2x32xf32>
    tpu.vector_store %arg28[%c0_104, %c1344], %187 {strides = array<i32>} : memref<2x2048xf32, #tpu.memory_space<vmem>>, vector<2x32xf32>,
    %189 = vector.extract_strided_slice %102 {offsets = [116, 0], sizes = [2, 32], strides = [1, 1]} : vector<170x32xf32> to vector<2x32xf32>
    %c0_105 = arith.constant 0 : index
    %c1376 = arith.constant 1376 : index
    %190 = vector.load %arg28[%c0_105, %c1376] : memref<2x2048xf32, #tpu.memory_space<vmem>>, vector<2x32xf32>
    tpu.vector_store %arg28[%c0_105, %c1376], %189 {strides = array<i32>} : memref<2x2048xf32, #tpu.memory_space<vmem>>, vector<2x32xf32>,
    %191 = vector.extract_strided_slice %102 {offsets = [118, 0], sizes = [2, 32], strides = [1, 1]} : vector<170x32xf32> to vector<2x32xf32>
    %c0_106 = arith.constant 0 : index
    %c1408 = arith.constant 1408 : index
    %192 = vector.load %arg28[%c0_106, %c1408] : memref<2x2048xf32, #tpu.memory_space<vmem>>, vector<2x32xf32>
    tpu.vector_store %arg28[%c0_106, %c1408], %191 {strides = array<i32>} : memref<2x2048xf32, #tpu.memory_space<vmem>>, vector<2x32xf32>,
    %193 = vector.extract_strided_slice %102 {offsets = [120, 0], sizes = [2, 32], strides = [1, 1]} : vector<170x32xf32> to vector<2x32xf32>
    %c0_107 = arith.constant 0 : index
    %c1440 = arith.constant 1440 : index
    %194 = vector.load %arg28[%c0_107, %c1440] : memref<2x2048xf32, #tpu.memory_space<vmem>>, vector<2x32xf32>
    tpu.vector_store %arg28[%c0_107, %c1440], %193 {strides = array<i32>} : memref<2x2048xf32, #tpu.memory_space<vmem>>, vector<2x32xf32>,
    %195 = vector.extract_strided_slice %102 {offsets = [122, 0], sizes = [2, 32], strides = [1, 1]} : vector<170x32xf32> to vector<2x32xf32>
    %c0_108 = arith.constant 0 : index
    %c1472 = arith.constant 1472 : index
    %196 = vector.load %arg28[%c0_108, %c1472] : memref<2x2048xf32, #tpu.memory_space<vmem>>, vector<2x32xf32>
    tpu.vector_store %arg28[%c0_108, %c1472], %195 {strides = array<i32>} : memref<2x2048xf32, #tpu.memory_space<vmem>>, vector<2x32xf32>,
    %197 = vector.extract_strided_slice %102 {offsets = [124, 0], sizes = [2, 32], strides = [1, 1]} : vector<170x32xf32> to vector<2x32xf32>
    %c0_109 = arith.constant 0 : index
    %c1504 = arith.constant 1504 : index
    %198 = vector.load %arg28[%c0_109, %c1504] : memref<2x2048xf32, #tpu.memory_space<vmem>>, vector<2x32xf32>
    tpu.vector_store %arg28[%c0_109, %c1504], %197 {strides = array<i32>} : memref<2x2048xf32, #tpu.memory_space<vmem>>, vector<2x32xf32>,
    %199 = vector.extract_strided_slice %102 {offsets = [132, 0], sizes = [2, 32], strides = [1, 1]} : vector<170x32xf32> to vector<2x32xf32>
    %c0_110 = arith.constant 0 : index
    %c1536 = arith.constant 1536 : index
    %200 = vector.load %arg28[%c0_110, %c1536] : memref<2x2048xf32, #tpu.memory_space<vmem>>, vector<2x32xf32>
    tpu.vector_store %arg28[%c0_110, %c1536], %199 {strides = array<i32>} : memref<2x2048xf32, #tpu.memory_space<vmem>>, vector<2x32xf32>,
    %201 = vector.extract_strided_slice %102 {offsets = [134, 0], sizes = [2, 32], strides = [1, 1]} : vector<170x32xf32> to vector<2x32xf32>
    %c0_111 = arith.constant 0 : index
    %c1568 = arith.constant 1568 : index
    %202 = vector.load %arg28[%c0_111, %c1568] : memref<2x2048xf32, #tpu.memory_space<vmem>>, vector<2x32xf32>
    tpu.vector_store %arg28[%c0_111, %c1568], %201 {strides = array<i32>} : memref<2x2048xf32, #tpu.memory_space<vmem>>, vector<2x32xf32>,
    %203 = vector.extract_strided_slice %102 {offsets = [136, 0], sizes = [2, 32], strides = [1, 1]} : vector<170x32xf32> to vector<2x32xf32>
    %c0_112 = arith.constant 0 : index
    %c1600 = arith.constant 1600 : index
    %204 = vector.load %arg28[%c0_112, %c1600] : memref<2x2048xf32, #tpu.memory_space<vmem>>, vector<2x32xf32>
    tpu.vector_store %arg28[%c0_112, %c1600], %203 {strides = array<i32>} : memref<2x2048xf32, #tpu.memory_space<vmem>>, vector<2x32xf32>,
    %205 = vector.extract_strided_slice %102 {offsets = [138, 0], sizes = [2, 32], strides = [1, 1]} : vector<170x32xf32> to vector<2x32xf32>
    %c0_113 = arith.constant 0 : index
    %c1632 = arith.constant 1632 : index
    %206 = vector.load %arg28[%c0_113, %c1632] : memref<2x2048xf32, #tpu.memory_space<vmem>>, vector<2x32xf32>
    tpu.vector_store %arg28[%c0_113, %c1632], %205 {strides = array<i32>} : memref<2x2048xf32, #tpu.memory_space<vmem>>, vector<2x32xf32>,
    %207 = vector.extract_strided_slice %102 {offsets = [140, 0], sizes = [2, 32], strides = [1, 1]} : vector<170x32xf32> to vector<2x32xf32>
    %c0_114 = arith.constant 0 : index
    %c1664 = arith.constant 1664 : index
    %208 = vector.load %arg28[%c0_114, %c1664] : memref<2x2048xf32, #tpu.memory_space<vmem>>, vector<2x32xf32>
    tpu.vector_store %arg28[%c0_114, %c1664], %207 {strides = array<i32>} : memref<2x2048xf32, #tpu.memory_space<vmem>>, vector<2x32xf32>,
    %209 = vector.extract_strided_slice %102 {offsets = [142, 0], sizes = [2, 32], strides = [1, 1]} : vector<170x32xf32> to vector<2x32xf32>
    %c0_115 = arith.constant 0 : index
    %c1696 = arith.constant 1696 : index
    %210 = vector.load %arg28[%c0_115, %c1696] : memref<2x2048xf32, #tpu.memory_space<vmem>>, vector<2x32xf32>
    tpu.vector_store %arg28[%c0_115, %c1696], %209 {strides = array<i32>} : memref<2x2048xf32, #tpu.memory_space<vmem>>, vector<2x32xf32>,
    %211 = vector.extract_strided_slice %102 {offsets = [144, 0], sizes = [2, 32], strides = [1, 1]} : vector<170x32xf32> to vector<2x32xf32>
    %c0_116 = arith.constant 0 : index
    %c1728 = arith.constant 1728 : index
    %212 = vector.load %arg28[%c0_116, %c1728] : memref<2x2048xf32, #tpu.memory_space<vmem>>, vector<2x32xf32>
    tpu.vector_store %arg28[%c0_116, %c1728], %211 {strides = array<i32>} : memref<2x2048xf32, #tpu.memory_space<vmem>>, vector<2x32xf32>,
    %213 = vector.extract_strided_slice %102 {offsets = [146, 0], sizes = [2, 32], strides = [1, 1]} : vector<170x32xf32> to vector<2x32xf32>
    %c0_117 = arith.constant 0 : index
    %c1760 = arith.constant 1760 : index
    %214 = vector.load %arg28[%c0_117, %c1760] : memref<2x2048xf32, #tpu.memory_space<vmem>>, vector<2x32xf32>
    tpu.vector_store %arg28[%c0_117, %c1760], %213 {strides = array<i32>} : memref<2x2048xf32, #tpu.memory_space<vmem>>, vector<2x32xf32>,
    %215 = vector.extract_strided_slice %102 {offsets = [154, 0], sizes = [2, 32], strides = [1, 1]} : vector<170x32xf32> to vector<2x32xf32>
    %c0_118 = arith.constant 0 : index
    %c1792 = arith.constant 1792 : index
    %216 = vector.load %arg28[%c0_118, %c1792] : memref<2x2048xf32, #tpu.memory_space<vmem>>, vector<2x32xf32>
    tpu.vector_store %arg28[%c0_118, %c1792], %215 {strides = array<i32>} : memref<2x2048xf32, #tpu.memory_space<vmem>>, vector<2x32xf32>,
    %217 = vector.extract_strided_slice %102 {offsets = [156, 0], sizes = [2, 32], strides = [1, 1]} : vector<170x32xf32> to vector<2x32xf32>
    %c0_119 = arith.constant 0 : index
    %c1824 = arith.constant 1824 : index
    %218 = vector.load %arg28[%c0_119, %c1824] : memref<2x2048xf32, #tpu.memory_space<vmem>>, vector<2x32xf32>
    tpu.vector_store %arg28[%c0_119, %c1824], %217 {strides = array<i32>} : memref<2x2048xf32, #tpu.memory_space<vmem>>, vector<2x32xf32>,
    %219 = vector.extract_strided_slice %102 {offsets = [158, 0], sizes = [2, 32], strides = [1, 1]} : vector<170x32xf32> to vector<2x32xf32>
    %c0_120 = arith.constant 0 : index
    %c1856 = arith.constant 1856 : index
    %220 = vector.load %arg28[%c0_120, %c1856] : memref<2x2048xf32, #tpu.memory_space<vmem>>, vector<2x32xf32>
    tpu.vector_store %arg28[%c0_120, %c1856], %219 {strides = array<i32>} : memref<2x2048xf32, #tpu.memory_space<vmem>>, vector<2x32xf32>,
    %221 = vector.extract_strided_slice %102 {offsets = [160, 0], sizes = [2, 32], strides = [1, 1]} : vector<170x32xf32> to vector<2x32xf32>
    %c0_121 = arith.constant 0 : index
    %c1888 = arith.constant 1888 : index
    %222 = vector.load %arg28[%c0_121, %c1888] : memref<2x2048xf32, #tpu.memory_space<vmem>>, vector<2x32xf32>
    tpu.vector_store %arg28[%c0_121, %c1888], %221 {strides = array<i32>} : memref<2x2048xf32, #tpu.memory_space<vmem>>, vector<2x32xf32>,
    %223 = vector.extract_strided_slice %102 {offsets = [162, 0], sizes = [2, 32], strides = [1, 1]} : vector<170x32xf32> to vector<2x32xf32>
    %c0_122 = arith.constant 0 : index
    %c1920 = arith.constant 1920 : index
    %224 = vector.load %arg28[%c0_122, %c1920] : memref<2x2048xf32, #tpu.memory_space<vmem>>, vector<2x32xf32>
    tpu.vector_store %arg28[%c0_122, %c1920], %223 {strides = array<i32>} : memref<2x2048xf32, #tpu.memory_space<vmem>>, vector<2x32xf32>,
    %225 = vector.extract_strided_slice %102 {offsets = [164, 0], sizes = [2, 32], strides = [1, 1]} : vector<170x32xf32> to vector<2x32xf32>
    %c0_123 = arith.constant 0 : index
    %c1952 = arith.constant 1952 : index
    %226 = vector.load %arg28[%c0_123, %c1952] : memref<2x2048xf32, #tpu.memory_space<vmem>>, vector<2x32xf32>
    tpu.vector_store %arg28[%c0_123, %c1952], %225 {strides = array<i32>} : memref<2x2048xf32, #tpu.memory_space<vmem>>, vector<2x32xf32>,
    %227 = vector.extract_strided_slice %102 {offsets = [166, 0], sizes = [2, 32], strides = [1, 1]} : vector<170x32xf32> to vector<2x32xf32>
    %c0_124 = arith.constant 0 : index
    %c1984 = arith.constant 1984 : index
    %228 = vector.load %arg28[%c0_124, %c1984] : memref<2x2048xf32, #tpu.memory_space<vmem>>, vector<2x32xf32>
    tpu.vector_store %arg28[%c0_124, %c1984], %227 {strides = array<i32>} : memref<2x2048xf32, #tpu.memory_space<vmem>>, vector<2x32xf32>,
    %229 = vector.extract_strided_slice %102 {offsets = [168, 0], sizes = [2, 32], strides = [1, 1]} : vector<170x32xf32> to vector<2x32xf32>
    %c0_125 = arith.constant 0 : index
    %c2016 = arith.constant 2016 : index
    %230 = vector.load %arg28[%c0_125, %c2016] : memref<2x2048xf32, #tpu.memory_space<vmem>>, vector<2x32xf32>
    tpu.vector_store %arg28[%c0_125, %c2016], %229 {strides = array<i32>} : memref<2x2048xf32, #tpu.memory_space<vmem>>, vector<2x32xf32>,
    %c0_126 = arith.constant 0 : index
    %c0_127 = arith.constant 0 : index
    %231 = vector.load %arg28[%c0_126, %c0_127] : memref<2x2048xf32, #tpu.memory_space<vmem>>, vector<2x2048xf32>
    %232 = arith.truncf %231 : vector<2x2048xf32> to vector<2x2048xbf16>
    %c0_128 = arith.constant 0 : index
    %c0_129 = arith.constant 0 : index
    %233 = vector.load %arg20[%c0_128, %c0_129] : memref<2048x64xbf16, #tpu.memory_space<vmem>>, vector<2048x64xbf16>
    %cst_130 = arith.constant dense<0.000000e+00> : vector<2x64xf32>
    %234 = tpu.matmul %232, %233, %cst_130 {dimension_numbers = #tpu.dot_dimension_numbers<[1], [0], [0], [1], [0, 0, 1, 1], [], []>} : vector<2x2048xbf16>, vector<2048x64xbf16>, vector<2x64xf32> -> vector<2x64xf32>
    %c0_131 = arith.constant 0 : index
    %c0_132 = arith.constant 0 : index
    %235 = vector.load %arg21[%c0_131, %c0_132] : memref<1x64xf32, #tpu.memory_space<vmem>>, vector<1x64xf32>
    %236 = vector.broadcast %235 : vector<1x64xf32> to vector<2x64xf32>
    %237 = arith.addf %234, %236 : vector<2x64xf32>
    %cst_133 = arith.constant 0.000000e+00 : f32
    %238 = vector.broadcast %cst_133 : f32 to vector<2x64xf32>
    %239 = arith.maximumf %237, %238 : vector<2x64xf32>
    %c0_134 = arith.constant 0 : index
    %c0_135 = arith.constant 0 : index
    %240 = vector.load %arg2[%c0_134, %c0_135] : memref<2x2xf32, #tpu.memory_space<vmem>>, vector<2x2xf32>
    %241 = arith.truncf %240 : vector<2x2xf32> to vector<2x2xbf16>
    %c0_136 = arith.constant 0 : index
    %c0_137 = arith.constant 0 : index
    %242 = vector.load %arg16[%c0_136, %c0_137] : memref<2x32xbf16, #tpu.memory_space<vmem>>, vector<2x32xbf16>
    %cst_138 = arith.constant dense<0.000000e+00> : vector<2x32xf32>
    %243 = tpu.matmul %241, %242, %cst_138 {dimension_numbers = #tpu.dot_dimension_numbers<[1], [0], [0], [1], [0, 0, 1, 1], [], []>} : vector<2x2xbf16>, vector<2x32xbf16>, vector<2x32xf32> -> vector<2x32xf32>
    %c0_139 = arith.constant 0 : index
    %c0_140 = arith.constant 0 : index
    %244 = vector.load %arg17[%c0_139, %c0_140] : memref<1x32xf32, #tpu.memory_space<vmem>>, vector<1x32xf32>
    %245 = vector.broadcast %244 : vector<1x32xf32> to vector<2x32xf32>
    %246 = arith.addf %243, %245 : vector<2x32xf32>
    %cst_141 = arith.constant 0.000000e+00 : f32
    %247 = vector.broadcast %cst_141 : f32 to vector<2x32xf32>
    %248 = arith.maximumf %246, %247 : vector<2x32xf32>
    %249 = arith.truncf %248 : vector<2x32xf32> to vector<2x32xbf16>
    %c0_142 = arith.constant 0 : index
    %c0_143 = arith.constant 0 : index
    %250 = vector.load %arg18[%c0_142, %c0_143] : memref<32x64xbf16, #tpu.memory_space<vmem>>, vector<32x64xbf16>
    %cst_144 = arith.constant dense<0.000000e+00> : vector<2x64xf32>
    %251 = tpu.matmul %249, %250, %cst_144 {dimension_numbers = #tpu.dot_dimension_numbers<[1], [0], [0], [1], [0, 0, 1, 1], [], []>} : vector<2x32xbf16>, vector<32x64xbf16>, vector<2x64xf32> -> vector<2x64xf32>
    %c0_145 = arith.constant 0 : index
    %c0_146 = arith.constant 0 : index
    %252 = vector.load %arg19[%c0_145, %c0_146] : memref<1x64xf32, #tpu.memory_space<vmem>>, vector<1x64xf32>
    %253 = vector.broadcast %252 : vector<1x64xf32> to vector<2x64xf32>
    %254 = arith.addf %251, %253 : vector<2x64xf32>
    %cst_147 = arith.constant 0.000000e+00 : f32
    %255 = vector.broadcast %cst_147 : f32 to vector<2x64xf32>
    %256 = arith.maximumf %254, %255 : vector<2x64xf32>
    %257 = arith.truncf %239 : vector<2x64xf32> to vector<2x64xbf16>
    %c0_148 = arith.constant 0 : index
    %c0_149 = arith.constant 0 : index
    %258 = vector.load %arg22[%c0_148, %c0_149] : memref<64x64xbf16, #tpu.memory_space<vmem>>, vector<64x64xbf16>
    %cst_150 = arith.constant dense<0.000000e+00> : vector<2x64xf32>
    %259 = tpu.matmul %257, %258, %cst_150 {dimension_numbers = #tpu.dot_dimension_numbers<[1], [0], [0], [1], [0, 0, 1, 1], [], []>} : vector<2x64xbf16>, vector<64x64xbf16>, vector<2x64xf32> -> vector<2x64xf32>
    %260 = arith.truncf %256 : vector<2x64xf32> to vector<2x64xbf16>
    %c0_151 = arith.constant 0 : index
    %c0_152 = arith.constant 0 : index
    %261 = vector.load %arg23[%c0_151, %c0_152] : memref<64x64xbf16, #tpu.memory_space<vmem>>, vector<64x64xbf16>
    %cst_153 = arith.constant dense<0.000000e+00> : vector<2x64xf32>
    %262 = tpu.matmul %260, %261, %cst_153 {dimension_numbers = #tpu.dot_dimension_numbers<[1], [0], [0], [1], [0, 0, 1, 1], [], []>} : vector<2x64xbf16>, vector<64x64xbf16>, vector<2x64xf32> -> vector<2x64xf32>
    %263 = arith.addf %259, %262 : vector<2x64xf32>
    %c0_154 = arith.constant 0 : index
    %c0_155 = arith.constant 0 : index
    %264 = vector.load %arg24[%c0_154, %c0_155] : memref<1x64xf32, #tpu.memory_space<vmem>>, vector<1x64xf32>
    %265 = vector.broadcast %264 : vector<1x64xf32> to vector<2x64xf32>
    %266 = arith.addf %263, %265 : vector<2x64xf32>
    %cst_156 = arith.constant 0.000000e+00 : f32
    %267 = vector.broadcast %cst_156 : f32 to vector<2x64xf32>
    %268 = arith.maximumf %266, %267 : vector<2x64xf32>
    %269 = arith.truncf %268 : vector<2x64xf32> to vector<2x64xbf16>
    %c0_157 = arith.constant 0 : index
    %c0_158 = arith.constant 0 : index
    %270 = vector.load %arg25[%c0_157, %c0_158] : memref<64x128xbf16, #tpu.memory_space<vmem>>, vector<64x128xbf16>
    %cst_159 = arith.constant dense<0.000000e+00> : vector<2x128xf32>
    %271 = tpu.matmul %269, %270, %cst_159 {dimension_numbers = #tpu.dot_dimension_numbers<[1], [0], [0], [1], [0, 0, 1, 1], [], []>} : vector<2x64xbf16>, vector<64x128xbf16>, vector<2x128xf32> -> vector<2x128xf32>
    %c0_160 = arith.constant 0 : index
    %c0_161 = arith.constant 0 : index
    %272 = vector.load %arg26[%c0_160, %c0_161] : memref<1x128xf32, #tpu.memory_space<vmem>>, vector<1x128xf32>
    %273 = vector.broadcast %272 : vector<1x128xf32> to vector<2x128xf32>
    %274 = arith.addf %271, %273 : vector<2x128xf32>
    %c0_162 = arith.constant 0 : index
    %c0_163 = arith.constant 0 : index
    %275 = vector.load %arg27[%c0_162, %c0_163] : memref<2x128xf32, #tpu.memory_space<vmem>>, vector<2x128xf32>
    tpu.vector_store %arg27[%c0_162, %c0_163], %274 {strides = array<i32>} : memref<2x128xf32, #tpu.memory_space<vmem>>, vector<2x128xf32>,
    return
  }
  func.func @transform_0(%arg0: i32) -> (i32, i32) {
    %c0_i32 = arith.constant 0 : i32
    %c0_i32_0 = arith.constant 0 : i32
    return %arg0, %c0_i32 : i32, i32
  }
  func.func @transform_1(%arg0: i32) -> (i32, i32) {
    %c0_i32 = arith.constant 0 : i32
    %c0_i32_0 = arith.constant 0 : i32
    return %arg0, %c0_i32 : i32, i32
  }
  func.func @transform_2(%arg0: i32) -> (i32, i32) {
    %c0_i32 = arith.constant 0 : i32
    %c0_i32_0 = arith.constant 0 : i32
    %c0_i32_1 = arith.constant 0 : i32
    return %c0_i32, %c0_i32_0 : i32, i32
  }
  func.func @transform_3(%arg0: i32) -> (i32, i32) {
    %c0_i32 = arith.constant 0 : i32
    %c0_i32_0 = arith.constant 0 : i32
    %c0_i32_1 = arith.constant 0 : i32
    return %c0_i32, %c0_i32_0 : i32, i32
  }
  func.func @transform_4(%arg0: i32) -> (i32, i32) {
    %c0_i32 = arith.constant 0 : i32
    %c0_i32_0 = arith.constant 0 : i32
    %c0_i32_1 = arith.constant 0 : i32
    return %c0_i32, %c0_i32_0 : i32, i32
  }
  func.func @transform_5(%arg0: i32) -> (i32, i32) {
    %c0_i32 = arith.constant 0 : i32
    %c0_i32_0 = arith.constant 0 : i32
    %c0_i32_1 = arith.constant 0 : i32
    return %c0_i32, %c0_i32_0 : i32, i32
  }
  func.func @transform_6(%arg0: i32) -> (i32, i32) {
    %c0_i32 = arith.constant 0 : i32
    %c0_i32_0 = arith.constant 0 : i32
    %c0_i32_1 = arith.constant 0 : i32
    return %c0_i32, %c0_i32_0 : i32, i32
  }
  func.func @transform_7(%arg0: i32) -> (i32, i32) {
    %c0_i32 = arith.constant 0 : i32
    %c0_i32_0 = arith.constant 0 : i32
    %c0_i32_1 = arith.constant 0 : i32
    return %c0_i32, %c0_i32_0 : i32, i32
  }
  func.func @transform_8(%arg0: i32) -> (i32, i32) {
    %c0_i32 = arith.constant 0 : i32
    %c0_i32_0 = arith.constant 0 : i32
    %c0_i32_1 = arith.constant 0 : i32
    return %c0_i32, %c0_i32_0 : i32, i32
  }
  func.func @transform_9(%arg0: i32) -> (i32, i32) {
    %c0_i32 = arith.constant 0 : i32
    %c0_i32_0 = arith.constant 0 : i32
    %c0_i32_1 = arith.constant 0 : i32
    return %c0_i32, %c0_i32_0 : i32, i32
  }
  func.func @transform_10(%arg0: i32) -> (i32, i32) {
    %c0_i32 = arith.constant 0 : i32
    %c0_i32_0 = arith.constant 0 : i32
    %c0_i32_1 = arith.constant 0 : i32
    return %c0_i32, %c0_i32_0 : i32, i32
  }
  func.func @transform_11(%arg0: i32) -> (i32, i32) {
    %c0_i32 = arith.constant 0 : i32
    %c0_i32_0 = arith.constant 0 : i32
    %c0_i32_1 = arith.constant 0 : i32
    return %c0_i32, %c0_i32_0 : i32, i32
  }
  func.func @transform_12(%arg0: i32) -> (i32, i32) {
    %c0_i32 = arith.constant 0 : i32
    %c0_i32_0 = arith.constant 0 : i32
    %c0_i32_1 = arith.constant 0 : i32
    return %c0_i32, %c0_i32_0 : i32, i32
  }
  func.func @transform_13(%arg0: i32) -> (i32, i32) {
    %c0_i32 = arith.constant 0 : i32
    %c0_i32_0 = arith.constant 0 : i32
    %c0_i32_1 = arith.constant 0 : i32
    return %c0_i32, %c0_i32_0 : i32, i32
  }
  func.func @transform_14(%arg0: i32) -> (i32, i32) {
    %c0_i32 = arith.constant 0 : i32
    %c0_i32_0 = arith.constant 0 : i32
    %c0_i32_1 = arith.constant 0 : i32
    return %c0_i32, %c0_i32_0 : i32, i32
  }
  func.func @transform_15(%arg0: i32) -> (i32, i32) {
    %c0_i32 = arith.constant 0 : i32
    %c0_i32_0 = arith.constant 0 : i32
    %c0_i32_1 = arith.constant 0 : i32
    return %c0_i32, %c0_i32_0 : i32, i32
  }
  func.func @transform_16(%arg0: i32) -> (i32, i32) {
    %c0_i32 = arith.constant 0 : i32
    %c0_i32_0 = arith.constant 0 : i32
    %c0_i32_1 = arith.constant 0 : i32
    return %c0_i32, %c0_i32_0 : i32, i32
  }
  func.func @transform_17(%arg0: i32) -> (i32, i32) {
    %c0_i32 = arith.constant 0 : i32
    %c0_i32_0 = arith.constant 0 : i32
    %c0_i32_1 = arith.constant 0 : i32
    return %c0_i32, %c0_i32_0 : i32, i32
  }
  func.func @transform_18(%arg0: i32) -> (i32, i32) {
    %c0_i32 = arith.constant 0 : i32
    %c0_i32_0 = arith.constant 0 : i32
    %c0_i32_1 = arith.constant 0 : i32
    return %c0_i32, %c0_i32_0 : i32, i32
  }
  func.func @transform_19(%arg0: i32) -> (i32, i32) {
    %c0_i32 = arith.constant 0 : i32
    %c0_i32_0 = arith.constant 0 : i32
    %c0_i32_1 = arith.constant 0 : i32
    return %c0_i32, %c0_i32_0 : i32, i32
  }
  func.func @transform_20(%arg0: i32) -> (i32, i32) {
    %c0_i32 = arith.constant 0 : i32
    %c0_i32_0 = arith.constant 0 : i32
    %c0_i32_1 = arith.constant 0 : i32
    return %c0_i32, %c0_i32_0 : i32, i32
  }
  func.func @transform_21(%arg0: i32) -> (i32, i32) {
    %c0_i32 = arith.constant 0 : i32
    %c0_i32_0 = arith.constant 0 : i32
    %c0_i32_1 = arith.constant 0 : i32
    return %c0_i32, %c0_i32_0 : i32, i32
  }
  func.func @transform_22(%arg0: i32) -> (i32, i32) {
    %c0_i32 = arith.constant 0 : i32
    %c0_i32_0 = arith.constant 0 : i32
    %c0_i32_1 = arith.constant 0 : i32
    return %c0_i32, %c0_i32_0 : i32, i32
  }
  func.func @transform_23(%arg0: i32) -> (i32, i32) {
    %c0_i32 = arith.constant 0 : i32
    %c0_i32_0 = arith.constant 0 : i32
    %c0_i32_1 = arith.constant 0 : i32
    return %c0_i32, %c0_i32_0 : i32, i32
  }
  func.func @transform_24(%arg0: i32) -> (i32, i32) {
    %c0_i32 = arith.constant 0 : i32
    %c0_i32_0 = arith.constant 0 : i32
    %c0_i32_1 = arith.constant 0 : i32
    return %c0_i32, %c0_i32_0 : i32, i32
  }
  func.func @transform_25(%arg0: i32) -> (i32, i32) {
    %c0_i32 = arith.constant 0 : i32
    %c0_i32_0 = arith.constant 0 : i32
    %c0_i32_1 = arith.constant 0 : i32
    return %c0_i32, %c0_i32_0 : i32, i32
  }
  func.func @transform_26(%arg0: i32) -> (i32, i32) {
    %c0_i32 = arith.constant 0 : i32
    %c0_i32_0 = arith.constant 0 : i32
    return %arg0, %c0_i32 : i32, i32
  }
}

</mosaic_0001>

<bundles_post_ra>
// kernel: dqn_forward.1
= control target key start
LH: loop header
LB: loop body
LE: loop exit
PB: predicated region body
PF: predicated region fallthrough
CT: control target
= control target key end

     0   :  { %s11204_s0 = inlined_call_operand.vmem [shape: bf16[242,144], index: 0, kind: input, shape index: {}]   ;;  %s11205_s1 = inlined_call_operand.vmem [shape: f32[2,2], index: 1, kind: input, shape index: {}]   ;;  %s11206_s2 = inlined_call_operand.vmem [shape: bf16[242,1], index: 2, kind: input, shape index: {}]   ;;  %s11207_s3 = inlined_call_operand.vmem [shape: bf16[144,16], index: 3, kind: input, shape index: {}]   ;;  %s11208_s4 = inlined_call_operand.vmem [shape: f32[1,16], index: 4, kind: input, shape index: {}]   ;;  %s11209_s5 = inlined_call_operand.vmem [shape: f32[1,16], index: 5, kind: input, shape index: {}]   ;;  %s11210_s6 = inlined_call_operand.vmem [shape: f32[1,16], index: 6, kind: input, shape index: {}]   ;;  %s11211_s7 = inlined_call_operand.vmem [shape: bf16[144,32], index: 7, kind: input, shape index: {}]   ;;  %s11212_s8 = inlined_call_operand.vmem [shape: f32[1,32], index: 8, kind: input, shape index: {}]   ;;  %s11213_s9 = inlined_call_operand.vmem [shape: f32[1,32], index: 9, kind: input, shape index: {}]   ;;  %s11214_s10 = inlined_call_operand.vmem [shape: f32[1,32], index: 10, kind: input, shape index: {}]   ;;  %s11215_s11 = inlined_call_operand.vmem [shape: bf16[128,32], index: 11, kind: input, shape index: {}]   ;;  %s11216_s12 = inlined_call_operand.vmem [shape: f32[1,32], index: 12, kind: input, shape index: {}]   ;;  %s11217_s13 = inlined_call_operand.vmem [shape: f32[1,32], index: 13, kind: input, shape index: {}]   ;;  %s11218_s14 = inlined_call_operand.vmem [shape: f32[1,32], index: 14, kind: input, shape index: {}]   ;;  %s11219_s15 = inlined_call_operand.vmem [shape: bf16[2,32], index: 15, kind: input, shape index: {}]   ;;  %s11220_s16 = inlined_call_operand.vmem [shape: f32[1,32], index: 16, kind: input, shape index: {}]   ;;  %s11221_s17 = inlined_call_operand.vmem [shape: bf16[32,64], index: 17, kind: input, shape index: {}]   ;;  %s11222_s18 = inlined_call_operand.vmem [shape: f32[1,64], index: 18, kind: input, shape index: {}]   ;;  %s11223_s19 = inlined_call_operand.vmem [shape: bf16[2048,64], index: 19, kind: input, shape index: {}]   ;;  %s11224_s20 = inlined_call_operand.vmem [shape: f32[1,64], index: 20, kind: input, shape index: {}]   ;;  %s11225_s21 = inlined_call_operand.vmem [shape: bf16[64,64], index: 21, kind: input, shape index: {}]   ;;  %s11226_s22 = inlined_call_operand.vmem [shape: bf16[64,64], index: 22, kind: input, shape index: {}]   ;;  %s11227_s23 = inlined_call_operand.vmem [shape: f32[1,64], index: 23, kind: input, shape index: {}]   ;;  %s11228_s24 = inlined_call_operand.vmem [shape: bf16[64,128], index: 24, kind: input, shape index: {}]   ;;  %s11229_s25 = inlined_call_operand.vmem [shape: f32[1,128], index: 25, kind: input, shape index: {}]   ;;  %s11230_s26 = inlined_call_operand.hbm [shape: f32[2,128], index: 26, kind: output, shape index: {}]  }
   0x1   :  { %11259 = sst [smem:[#allocation36_spill]] %s11204_s0 }
   0x2   :  { %11260 = sst [smem:[#allocation37_spill]] %s11205_s1 }
   0x3   :  { %11261 = sst [smem:[#allocation38_spill]] %s11206_s2 }
   0x4   :  { %11262 = sst [smem:[#allocation39_spill]] %s11207_s3 }
   0x5   :  { %11263 = sst [smem:[#allocation40_spill]] %s11208_s4 }
   0x6   :  { %11264 = sst [smem:[#allocation41_spill]] %s11209_s5 }
   0x7   :  { %11265 = sst [smem:[#allocation42_spill]] %s11210_s6 }
   0x8   :  { %11266 = sst [smem:[#allocation43_spill]] %s11211_s7 }
   0x9   :  { %11267 = sst [smem:[#allocation44_spill]] %s11212_s8 }
   0xa   :  { %11268 = sst [smem:[#allocation45_spill]] %s11213_s9 }
   0xb   :  { %11269 = sst [smem:[#allocation46_spill]] %s11214_s10 }
   0xc   :  { %s11270_s7 = sld [smem:[#allocation39_spill]]  ;;  %v8223_v1 = vmov 0   ;;  %vm336_vm0 = vcmask 130048   ;;  %s11271_s5 = sld [smem:[#allocation36_spill]] }
   0xd   :  { %385 = vmatprep.subr.bf16.mxu0 %v8223_v1  ;;  %7918 = vset.pattern.permute.xlu0 %v8223_v1  ;;  %s11272_s8 = sld [smem:[#allocation38_spill]]  ;;  %s11273_s3 = sld [smem:[#allocation43_spill]] }
   0xe   :  { %7929 = vset.pattern.permute.xlu1 %v8223_v1 }
  0x12   :  { %v7980_v0 = vld [vmem:[%s11270_s7] sm:$0xff]   ;;  %v7981_v2 = vld [vmem:[%s11270_s7 + $0x8] sm:$0xff]   ;;  %v7982_v3 = vld [vmem:[%s11270_s7 + $0x10] sm:$0xff]  }
  0x13   :  { %386 = vmatpush1.bf16.msra.mxu0 %v7980_v0  ;;  %v7983_v4 = vld [vmem:[%s11270_s7 + $0x18] sm:$0xff]   ;;  %v7991_v5 = vld [vmem:[%s11271_s5 + $0x4] ss:$8 sps:$4 sm:$0xff]   ;;  %v7986_v13 = vld [vmem:[%s11270_s7 + $0x30] sm:$0xff]  }
  0x14   :  { %387 = vmatprep.subr.bf16.mxu0 %v8223_v1  ;;  %6380 = vmatprep.mubr.msk.bf16.mxu0 %vm336_vm0, %v7991_v5  ;;  %v7984_v6 = vld [vmem:[%s11270_s7 + $0x20] sm:$0xff]   ;;  %v7985_v7 = vld [vmem:[%s11270_s7 + $0x28] sm:$0xff]   ;;  %v6795_v17 = vld [vmem:[%s11272_s8 + $0x10] sm:$0xff]  }
  0x15   :  { %v6735_v8 = vld [vmem:[%s11272_s8] sm:$0xff]   ;;  %v6794_v11 = vld [vmem:[%s11272_s8 + $0x8] sm:$0xff]   ;;  %v6744_v21 = vunpack.c.l.bf16 %v6795_v17  ;;  %v6799_v22 = vld [vmem:[%s11272_s8 + $0x30] sm:$0xff]   ;;  %v6745_v23 = vunpack.c.h.bf16 %v6795_v17 }
  0x16   :  { %v6736_v9 = vunpack.c.l.bf16 %v6735_v8  ;;  %v6737_v10 = vunpack.c.h.bf16 %v6735_v8  ;;  %v6797_v12 = vld [vmem:[%s11272_s8 + $0x20] sm:$0xff]   ;;  %v6740_v15 = vunpack.c.l.bf16 %v6794_v11  ;;  %v6741_v16 = vunpack.c.h.bf16 %v6794_v11  ;;  %v6796_v24 = vld [vmem:[%s11272_s8 + $0x18] sm:$0xff]   ;;  %v6798_v28 = vld [vmem:[%s11272_s8 + $0x28] sm:$0xff]  }
  0x17   :  { %388 = vmatpush1.bf16.msra.mxu0 %v7981_v2  ;;  %v6752_v19 = vunpack.c.l.bf16 %v6797_v12  ;;  %v6753_v20 = vunpack.c.h.bf16 %v6797_v12  ;;  %v7987_v25 = vld [vmem:[%s11270_s7 + $0x38] sm:$0xff]   ;;  %v6748_v26 = vunpack.c.l.bf16 %v6796_v24  ;;  %v6749_v27 = vunpack.c.h.bf16 %v6796_v24  ;;  %v6801_v33 = vld [vmem:[%s11272_s8 + $0x40] sm:$0xff]   ;;  %v6803_v43 = vld [vmem:[%s11272_s8 + $0x50] sm:$0xff]  }
  0x18   :  { %389 = vmatprep.subr.bf16.mxu0 %v8223_v1  ;;  %v7919_v14 = vpack.i.bf16 %v6737_v10, %v6736_v9  ;;  %v7924_v18 = vpack.i.bf16 %v6741_v16, %v6740_v15  ;;  %v7930_v29 = vpack.i.bf16 %v6745_v23, %v6744_v21  ;;  %v6760_v31 = vunpack.c.l.bf16 %v6799_v22  ;;  %v7988_v37 = vld [vmem:[%s11270_s7 + $0x40] sm:$0xff]   ;;  %v6800_v38 = vld [vmem:[%s11272_s8 + $0x38] sm:$0xff]   ;;  %v6802_v48 = vld [vmem:[%s11272_s8 + $0x48] sm:$0xff]  }
  0x19   :  { %v7940_v30 = vpack.i.bf16 %v6753_v20, %v6752_v19  ;;  %v6761_v32 = vunpack.c.h.bf16 %v6799_v22  ;;  %v7935_v34 = vpack.i.bf16 %v6749_v27, %v6748_v26  ;;  %v6756_v35 = vunpack.c.l.bf16 %v6798_v28  ;;  %v7989_v39 = vld [vmem:[%s11271_s5] ss:$8 sps:$4 sm:$0xff]   ;;  %v7992_v47 = vld [vmem:[%s11271_s5 + $0x14] ss:$8 sps:$4 sm:$0xff]   ;;  %v7994_v56 = vld [vmem:[%s11271_s5 + $0x10] ss:$8 sps:$4 sm:$0xff]  }
  0x1a   :  { %7920 = vperm.xlu0 %7918, %v7919_v14   ;;  %7931 = vperm.xlu1 %7929, %v7930_v29   ;;  %v6757_v36 = vunpack.c.h.bf16 %v6798_v28  ;;  %v6768_v41 = vunpack.c.l.bf16 %v6801_v33  ;;  %v6769_v42 = vunpack.c.h.bf16 %v6801_v33  ;;  %v6764_v45 = vunpack.c.l.bf16 %v6800_v38  ;;  %v6804_v52 = vld [vmem:[%s11272_s8 + $0x58] sm:$0xff]   ;;  %v6805_v57 = vld [vmem:[%s11272_s8 + $0x60] sm:$0xff]   ;;  %v6806_v63 = vld [vmem:[%s11272_s8 + $0x68] sm:$0xff]  }
  0x1b   :  { %390 = vmatpush1.bf16.msra.mxu0 %v7982_v3  ;;  %v7950_v40 = vpack.i.bf16 %v6761_v32, %v6760_v31  ;;  %v6765_v46 = vunpack.c.h.bf16 %v6800_v38  ;;  %v6776_v50 = vunpack.c.l.bf16 %v6803_v43  ;;  %v6777_v51 = vunpack.c.h.bf16 %v6803_v43  ;;  %v7995_v58 = vld [vmem:[%s11271_s5 + $0x24] ss:$8 sps:$4 sm:$0xff]   ;;  %v7997_v2 = vld [vmem:[%s11271_s5 + $0x20] ss:$8 sps:$4 sm:$0xff]   ;;  %v6807_v3 = vld [vmem:[%s11272_s8 + $0x70] sm:$0xff]  }
  0x1c   :  { %391 = vmatprep.subr.bf16.mxu0 %v8223_v1  ;;  %v7945_v44 = vpack.i.bf16 %v6757_v36, %v6756_v35  ;;  %v7960_v49 = vpack.i.bf16 %v6769_v42, %v6768_v41  ;;  %v6772_v54 = vunpack.c.l.bf16 %v6802_v48  ;;  %v6773_v55 = vunpack.c.h.bf16 %v6802_v48  ;;  %v8000_v10 = vld [vmem:[%s11271_s5 + $0x30] ss:$8 sps:$4 sm:$0xff]   ;;  %v8001_v11 = vld [vmem:[%s11271_s5 + $0x44] ss:$8 sps:$4 sm:$0xff]   ;;  %v8003_v14 = vld [vmem:[%s11271_s5 + $0x40] ss:$8 sps:$4 sm:$0xff]  }
  0x1d   :  { %v7955_v53 = vpack.i.bf16 %v6765_v46, %v6764_v45  ;;  %v7970_v59 = vpack.i.bf16 %v6777_v51, %v6776_v50  ;;  %v6780_v61 = vunpack.c.l.bf16 %v6804_v52  ;;  %v6781_v62 = vunpack.c.h.bf16 %v6804_v52  ;;  %v8004_v15 = vld [vmem:[%s11271_s5 + $0x54] ss:$8 sps:$4 sm:$0xff]   ;;  %v8006_v16 = vld [vmem:[%s11271_s5 + $0x50] ss:$8 sps:$4 sm:$0xff]   ;;  %v8007_v17 = vld [vmem:[%s11271_s5 + $0x64] ss:$8 sps:$4 sm:$0xff]  }
  0x1e   :  { %7925 = vperm.xlu0 %7918, %v7924_v18   ;;  %7936 = vperm.xlu1 %7929, %v7935_v34   ;;  %v7965_v60 = vpack.i.bf16 %v6773_v55, %v6772_v54  ;;  %v6784_v0 = vunpack.c.l.bf16 %v6805_v57  ;;  %v6788_v5 = vunpack.c.l.bf16 %v6806_v63  ;;  %v6792_v8 = vunpack.c.l.bf16 %v6807_v3  ;;  %v8009_v18 = vld [vmem:[%s11271_s5 + $0x60] ss:$8 sps:$4 sm:$0xff]   ;;  %v8010_v19 = vld [vmem:[%s11271_s5 + $0x74] ss:$8 sps:$4 sm:$0xff]   ;;  %v8012_v20 = vld [vmem:[%s11271_s5 + $0x70] ss:$8 sps:$4 sm:$0xff]  }
  0x1f   :  { %392 = vmatpush1.bf16.msra.mxu0 %v7983_v4  ;;  %v7998_v4 = vld [vmem:[%s11271_s5 + $0x34] ss:$8 sps:$4 sm:$0xff]   ;;  %v6789_v9 = vunpack.c.h.bf16 %v6806_v63  ;;  %v8013_v21 = vld [vmem:[%s11271_s5 + $0x84] ss:$8 sps:$4 sm:$0xff]   ;;  %v8015_v22 = vld [vmem:[%s11271_s5 + $0x80] ss:$8 sps:$4 sm:$0xff]  }
  0x20   :  { %393 = vmatprep.subr.bf16.mxu0 %v8223_v1  ;;  %v8016_v23 = vld [vmem:[%s11271_s5 + $0x94] ss:$8 sps:$4 sm:$0xff]   ;;  %v8018_v24 = vld [vmem:[%s11271_s5 + $0x90] ss:$8 sps:$4 sm:$0xff]   ;;  %v8021_v26 = vld [vmem:[%s11271_s5 + $0xa0] ss:$8 sps:$4 sm:$0xff]  }
  0x21   :  { %v8022_v27 = vld [vmem:[%s11271_s5 + $0xb4] ss:$8 sps:$4 sm:$0xff]   ;;  %v8024_v28 = vld [vmem:[%s11271_s5 + $0xb0] ss:$8 sps:$4 sm:$0xff]   ;;  %v8025_v29 = vld [vmem:[%s11271_s5 + $0xc4] ss:$8 sps:$4 sm:$0xff]  }
  0x22   :  { %7941 = vperm.xlu0 %7918, %v7940_v30   ;;  %7946 = vperm.xlu1 %7929, %v7945_v44   ;;  %v8027_v30 = vld [vmem:[%s11271_s5 + $0xc0] ss:$8 sps:$4 sm:$0xff]   ;;  %v8028_v31 = vld [vmem:[%s11271_s5 + $0xd4] ss:$8 sps:$4 sm:$0xff]   ;;  %v11243_v33 = vmov 0.0  }
  0x23   :  { %394 = vmatpush1.bf16.msra.mxu0 %v7984_v6  ;;  %v6785_v6 = vunpack.c.h.bf16 %v6805_v57  ;;  %v8036_v32 = vld [vmem:[%s11273_s3 + $0x10] sm:$0xff]   ;;  %7182 = vmatprep.subr.bf16.mxu1 %v11243_v33  ;;  %v8031_v35 = vld [vmem:[%s11271_s5 + $0xe4] ss:$8 sps:$4 sm:$0xff]  }
  0x24   :  { %395 = vmatprep.subr.bf16.mxu0 %v8223_v1  ;;  %v8030_v34 = vld [vmem:[%s11271_s5 + $0xd0] ss:$8 sps:$4 sm:$0xff]   ;;  %v8037_v36 = vld [vmem:[%s11273_s3 + $0x8] sm:$0xff]  }
  0x26   :  { %7951 = vperm.xlu0 %7918, %v7950_v40   ;;  %7956 = vperm.xlu1 %7929, %v7955_v53  }
  0x27   :  { %396 = vmatpush1.bf16.msra.mxu0 %v7985_v7  ;;  %v682_v7 = vld [vmem:[%s11272_s8 + $0x78] sm:$0x1] }
  0x28   :  { %397 = vmatprep.subr.bf16.mxu0 %v8223_v1  ;;  %v713_v12 = vunpack.c.l.bf16 %v682_v7 }
  0x2a   :  { %7961 = vperm.xlu0 %7918, %v7960_v49   ;;  %7966 = vperm.xlu1 %7929, %v7965_v60  }
  0x2b   :  { %398 = vmatpush1.bf16.msra.mxu0 %v7986_v13  ;;  %v6793_v13 = vunpack.c.h.bf16 %v6807_v3 }
  0x2c   :  { %399 = vmatprep.subr.bf16.mxu0 %v8223_v1 }
  0x2e   :  { %7971 = vperm.xlu0 %7918, %v7970_v59  }
  0x2f   :  { %400 = vmatpush1.bf16.msra.mxu0 %v7987_v25  ;;  %v8019_v25 = vld [vmem:[%s11271_s5 + $0xa4] ss:$8 sps:$4 sm:$0xff]  }
  0x30   :  { %401 = vmatprep.subr.bf16.mxu0 %v8223_v1  ;;  %v7975_v1 = vpack.i.bf16 %v6781_v62, %v6780_v61 }
  0x32   :  { %836 = vperm.xlu0 %7918, %v6784_v0   ;;  %7976 = vperm.xlu1 %7929, %v7975_v1  }
  0x33   :  { %402 = vmatpush1.bf16.msra.mxu0 %v7988_v37 }
  0x34   :  { %7290 = vmatprep.subr.bf16.mxu0 %v11243_v33 }
  0x36   :  { %418 = vmatmul.mubr.bf16.vlgmr.msra.gmra.mrb[0].mxu0 %v7989_v39  ;;  %846 = vperm.xlu0 %7918, %v6788_v5  }
  0x37   :  { %6381 = vmatprep.mubr.msk.bf16.mxu0 %vm336_vm0, %v7992_v47  ;;  %841 = vperm.xlu1 %7929, %v6785_v6  }
  0x38   :  { %7291 = vmatpush3.bf16.msra.mxu0 %v8036_v32 }
  0x39   :  { %7398 = vmatprep.subr.bf16.mxu0 %v11243_v33 }
  0x3a   :  { %856 = vperm.xlu0 %7918, %v6792_v8  }
  0x3b   :  { %851 = vperm.xlu1 %7929, %v6789_v9  }
  0x3e   :  { %426 = vmatmul.mubr.bf16.gmra.mrb[4].mxu0 %v7994_v56  ;;  %866 = vperm.xlu0 %7918, %v713_v12  }
  0x3f   :  { %6382 = vmatprep.mubr.msk.bf16.mxu0 %vm336_vm0, %v7995_v58  ;;  %861 = vperm.xlu1 %7929, %v6793_v13  }
  0x46   :  { %434 = vmatmul.mubr.bf16.gmra.mrb[8].mxu0 %v7997_v2 }
  0x47   :  { %6383 = vmatprep.mubr.msk.bf16.mxu0 %vm336_vm0, %v7998_v4 }
  0x4e   :  { %442 = vmatmul.mubr.bf16.gmra.mrb[12].mxu0 %v8000_v10 }
  0x4f   :  { %6384 = vmatprep.mubr.msk.bf16.mxu0 %vm336_vm0, %v8001_v11 }
  0x56   :  { %450 = vmatmul.mubr.bf16.gmra.mrb[16].mxu0 %v8003_v14 }
  0x57   :  { %6385 = vmatprep.mubr.msk.bf16.mxu0 %vm336_vm0, %v8004_v15 }
  0x5e   :  { %458 = vmatmul.mubr.bf16.gmra.mrb[20].mxu0 %v8006_v16 }
  0x5f   :  { %6386 = vmatprep.mubr.msk.bf16.mxu0 %vm336_vm0, %v8007_v17 }
  0x66   :  { %466 = vmatmul.mubr.bf16.gmra.mrb[24].mxu0 %v8009_v18 }
  0x67   :  { %6387 = vmatprep.mubr.msk.bf16.mxu0 %vm336_vm0, %v8010_v19 }
  0x6e   :  { %474 = vmatmul.mubr.bf16.gmra.mrb[28].mxu0 %v8012_v20 }
  0x6f   :  { %6388 = vmatprep.mubr.msk.bf16.mxu0 %vm336_vm0, %v8013_v21 }
  0x76   :  { %482 = vmatmul.mubr.bf16.gmra.mrb[32].mxu0 %v8015_v22 }
  0x77   :  { %6389 = vmatprep.mubr.msk.bf16.mxu0 %vm336_vm0, %v8016_v23 }
  0x7e   :  { %490 = vmatmul.mubr.bf16.gmra.mrb[36].mxu0 %v8018_v24 }
  0x7f   :  { %6390 = vmatprep.mubr.msk.bf16.mxu0 %vm336_vm0, %v8019_v25 }
  0x86   :  { %498 = vmatmul.mubr.bf16.gmra.mrb[40].mxu0 %v8021_v26 }
  0x87   :  { %6391 = vmatprep.mubr.msk.bf16.mxu0 %vm336_vm0, %v8022_v27 }
  0x8e   :  { %506 = vmatmul.mubr.bf16.gmra.mrb[44].mxu0 %v8024_v28 }
  0x8f   :  { %6392 = vmatprep.mubr.msk.bf16.mxu0 %vm336_vm0, %v8025_v29 }
  0x96   :  { %514 = vmatmul.mubr.bf16.gmra.mrb[48].mxu0 %v8027_v30 }
  0x97   :  { %6393 = vmatprep.mubr.msk.bf16.mxu0 %vm336_vm0, %v8028_v31 }
  0x9e   :  { %522 = vmatmul.mubr.bf16.gmra.mrb[52].mxu0 %v8030_v34 }
  0x9f   :  { %6394 = vmatprep.mubr.msk.bf16.mxu0 %vm336_vm0, %v8031_v35 }
  0xa0   :  { %31 = vsyncpa [#allocation4], 0  ;;  %v115_v37 = vld [vmem:[%s11271_s5 + $0xf0] sm:$0x11]  ;;  %7183 = vmatpush3.bf16.msra.mxu1 %v8037_v36  ;;  %v8033_v38 = vld [vmem:[%s11271_s5 + $0xe0] ss:$8 sps:$4 sm:$0xff]   ;;  %v7921_v53 = vpop.permute.xlu0 %7920  ;;  %v7932_v22 = vpop.permute.xlu1 %7931 }
  0xa1   :  { %7236 = vmatprep.subr.bf16.mxu1 %v11243_v33  ;;  %vm8225_vm1 = vmmov 0   ;;  %v6370_v39 = vcombine.high %v115_v37, %v115_v37  ;;  %v6369_v40 = vcombine.low %v115_v37, %v115_v37  ;;  %s11274_s27 = sld [smem:[#allocation40_spill]]  ;;  %s11275_s4 = sld [smem:[#allocation41_spill]]  ;;  %v7923_v54 = vunpack.i.h.bf16 %v7921_v53  ;;  %v8038_v34 = vld [vmem:[%s11273_s3] sm:$0xff]  }
  0xa2   :  { %7184 = vmatprep.mubr.msk.bf16.mxu1 %vm8225_vm1, %v11243_v33  ;;  %s11276_s7 = sld [smem:[#allocation42_spill]]  ;;  %v7922_v55 = vunpack.i.l.bf16 %v7921_v53  ;;  %v7933_v23 = vunpack.i.l.bf16 %v7932_v22  ;;  %v7934_v27 = vunpack.i.h.bf16 %v7932_v22  ;;  %vm930_vm2 = vcmask 1046528   ;;  %s11371_s2 = sld [smem:[#allocation44_spill]] }
  0xa3   :  { %vm1320_vm3 = vcmask 1045504   ;;  %vm1558_vm4 = vcmask 1044480   ;;  %s11373_s1 = sld [smem:[#allocation46_spill]]  ;;  %vm3095_vm5 = vcmask 261120   ;;  %vm3943_vm6 = vcmask 254976   ;;  %s8227_s8 = smov 32  }
  0xa4   :  { %v7926_v9 = vpop.permute.xlu0 %7925  ;;  %v7937_v53 = vpop.permute.xlu1 %7936  ;;  %vm3957_vm7 = vcmask 517376   ;;  %vm3970_vm8 = vcmask 779776   ;;  %vm3976_vm9 = vcmask 1042176   ;;  %vm5965_vm10 = vcmask 1040384   ;;  %s8230_s5 = smov [#allocation3]  }
  0xa5   :  { %v7928_v11 = vunpack.i.h.bf16 %v7926_v9  ;;  %v7927_v12 = vunpack.i.l.bf16 %v7926_v9  ;;  %vm5961_vm11 = vcmask 15360   ;;  %vm6120_vm12 = vcmask 523264  }
  0xa6   :  { %530 = vmatmul.mubr.bf16.gmra.mrb[56].mxu0 %v8033_v38 }
  0xa7   :  { %6395 = vmatprep.mubr.msk.bf16.mxu0 %vm336_vm0, %v6370_v39  ;;  %v8567_v41 = vld [vmem:[%s11274_s27] ss:$0 sm:$0xff] }
  0xa8   :  { %v8573_v45 = vld [vmem:[%s11275_s4] ss:$0 sm:$0xff] }
  0xa9   :  { %v8579_v50 = vld [vmem:[%s11276_s7] ss:$0 sm:$0xff] }
  0xae   :  { %538 = vmatmul.mubr.bf16.gmra.mrb[60].mxu0 %v6369_v40 }
  0xaf   :  { %7292 = vmatprep.mubr.msk.bf16.mxu0 %vm8225_vm1, %v11243_v33 }
 0x109   :  { %v419_v42 = vpop.f32.mrb[0].mxu0 }
 0x10a   :  { %v420_v43 = vadd.f32 %v8567_v41, %v419_v42  ;;  %v421_v44 = vpop.f32.mrb[1].mxu0 }
 0x10b   :  { %v422_v46 = vpop.f32.mrb[2].mxu0 }
 0x10c   :  { %v545_v47 = vmax.f32 %v420_v43, 0.0  ;;  %v423_v48 = vadd.f32 %v8567_v41, %v422_v46  ;;  %v424_v49 = vpop.f32.mrb[3].mxu0  ;;  %v8039_v43 = vld [vmem:[%s11273_s3 + $0x20] sm:$0xff]  }
 0x10e   :  { %v583_v51 = vmul.f32 %v8573_v45, %v545_v47  ;;  %v546_v52 = vmax.f32 %v423_v48, 0.0 }
 0x110   :  { %v621_v56 = vadd.f32 %v8579_v50, %v583_v51  ;;  %v584_v57 = vmul.f32 %v8573_v45, %v546_v52 }
 0x111   :  { %v427_v58 = vpop.f32.mrb[4].mxu0 }
 0x112   :  { %v622_v59 = vadd.f32 %v8579_v50, %v584_v57  ;;  %v428_v60 = vadd.f32 %v8567_v41, %v427_v58  ;;  %v429_v61 = vpop.f32.mrb[5].mxu0  ;;  %v869_v63 = vmul.f32 %v7922_v55, %v621_v56  ;;  %v7938_v57 = vunpack.i.l.bf16 %v7937_v53 }
 0x113   :  { %v430_v62 = vpop.f32.mrb[6].mxu0 }
 0x114   :  { %v870_v0 = vmul.f32 %v7923_v54, %v622_v59  ;;  %v547_v1 = vmax.f32 %v428_v60, 0.0  ;;  %v431_v2 = vadd.f32 %v8567_v41, %v430_v62  ;;  %v432_v3 = vpop.f32.mrb[7].mxu0  ;;  %v7939_v62 = vunpack.i.h.bf16 %v7937_v53 }
 0x116   :  { %v8587_v4 = vpack.c.bf16 %v870_v0, %v869_v63  ;;  %v585_v5 = vmul.f32 %v8573_v45, %v547_v1  ;;  %v548_v6 = vmax.f32 %v431_v2, 0.0 }
 0x118   :  { %v623_v7 = vadd.f32 %v8579_v50, %v585_v5  ;;  %v586_v8 = vmul.f32 %v8573_v45, %v548_v6  ;;  %v931_v28 = vrot.slane %v8587_v4, 1  ;;  %v1321_v36 = vrot.slane %v8587_v4, 2 }
 0x119   :  { %v435_v10 = vpop.f32.mrb[8].mxu0 }
 0x11a   :  { %v624_v13 = vadd.f32 %v8579_v50, %v586_v8  ;;  %v436_v14 = vadd.f32 %v8567_v41, %v435_v10  ;;  %v437_v15 = vpop.f32.mrb[9].mxu0  ;;  %v871_v17 = vmul.f32 %v7927_v12, %v623_v7 }
 0x11b   :  { %v438_v16 = vpop.f32.mrb[10].mxu0 }
 0x11c   :  { %v872_v18 = vmul.f32 %v7928_v11, %v624_v13  ;;  %v549_v19 = vmax.f32 %v436_v14, 0.0  ;;  %v439_v20 = vadd.f32 %v8567_v41, %v438_v16  ;;  %v440_v21 = vpop.f32.mrb[11].mxu0  ;;  %v7942_v13 = vpop.permute.xlu0 %7941 }
 0x11d   :  { %v7944_v22 = vunpack.i.h.bf16 %v7942_v13 }
 0x11e   :  { %v8595_v24 = vpack.c.bf16 %v872_v18, %v871_v17  ;;  %v587_v25 = vmul.f32 %v8573_v45, %v549_v19  ;;  %v550_v26 = vmax.f32 %v439_v20, 0.0  ;;  %v7943_v17 = vunpack.i.l.bf16 %v7942_v13 }
 0x120   :  { %v625_v29 = vadd.f32 %v8579_v50, %v587_v25  ;;  %v588_v30 = vmul.f32 %v8573_v45, %v550_v26  ;;  %v932_v31 = vrot.slane %v8595_v24, 1  ;;  %v1322_v32 = vrot.slane %v8595_v24, 2 }
 0x121   :  { %v443_v35 = vpop.f32.mrb[12].mxu0 }
 0x122   :  { %v873_v37 = vmul.f32 %v7933_v23, %v625_v29  ;;  %v626_v38 = vadd.f32 %v8579_v50, %v588_v30  ;;  %v444_v39 = vadd.f32 %v8567_v41, %v443_v35  ;;  %v445_v40 = vpop.f32.mrb[13].mxu0  ;;  %v933_v42 = vsel %vm930_vm2, %v931_v28, %v932_v31 }
 0x123   :  { %v446_v44 = vpop.f32.mrb[14].mxu0  ;;  %7185 = vmatmul.mubr.msk.bf16.vlgmr.msra.gmra.mrb[0].mxu1 %vm336_vm0, %v933_v42  ;;  %v1323_v46 = vsel %vm1320_vm3, %v1321_v36, %v1322_v32 }
 0x124   :  { %v8615_v47 = vpack.c.bf16 %v873_v37, %v872_v18  ;;  %v874_v48 = vmul.f32 %v7934_v27, %v626_v38  ;;  %v551_v49 = vmax.f32 %v444_v39, 0.0  ;;  %v447_v51 = vadd.f32 %v8567_v41, %v446_v44  ;;  %7293 = vmatmul.mubr.msk.bf16.vlgmr.msra.gmra.mrb[64].mxu0 %vm336_vm0, %v1323_v46  ;;  %v448_v52 = vpop.f32.mrb[15].mxu0  ;;  %7237 = vmatpush3.bf16.msra.mxu1 %v8038_v34  ;;  %v7947_v38 = vpop.permute.xlu1 %7946 }
 0x125   :  { %7188 = vmatprep.mubr.msk.bf16.mxu1 %vm8225_vm1, %v11243_v33  ;;  %7296 = vmatprep.mubr.msk.bf16.mxu0 %vm8225_vm1, %v11243_v33 }
 0x126   :  { %v8623_v54 = vpack.c.bf16 %v874_v48, %v873_v37  ;;  %v589_v55 = vmul.f32 %v8573_v45, %v551_v49  ;;  %v552_v56 = vmax.f32 %v447_v51, 0.0  ;;  %7399 = vmatpush3.bf16.msra.mxu0 %v8039_v43  ;;  %7344 = vmatprep.subr.bf16.mxu1 %v11243_v33  ;;  %v7948_v43 = vunpack.i.l.bf16 %v7947_v38 }
 0x127   :  { %7506 = vmatprep.subr.bf16.mxu0 %v11243_v33  ;;  %v7949_v51 = vunpack.i.h.bf16 %v7947_v38 }
 0x128   :  { %v627_v58 = vadd.f32 %v8579_v50, %v589_v55  ;;  %v590_v59 = vmul.f32 %v8573_v45, %v552_v56  ;;  %v934_v60 = vrot.slane %v8623_v54, 1  ;;  %v1324_v61 = vrot.slane %v8623_v54, 2 }
 0x129   :  { %v451_v63 = vpop.f32.mrb[16].mxu0 }
 0x12a   :  { %v875_v0 = vmul.f32 %v7938_v57, %v627_v58  ;;  %v628_v1 = vadd.f32 %v8579_v50, %v590_v59  ;;  %v452_v2 = vadd.f32 %v8567_v41, %v451_v63  ;;  %v453_v3 = vpop.f32.mrb[17].mxu0  ;;  %v935_v5 = vsel %vm930_vm2, %v932_v31, %v934_v60 }
 0x12b   :  { %v454_v6 = vpop.f32.mrb[18].mxu0  ;;  %7189 = vmatmul.mubr.msk.bf16.gmra.mrb[4].mxu1 %vm336_vm0, %v935_v5  ;;  %v1325_v7 = vsel %vm1320_vm3, %v1322_v32, %v1324_v61 }
 0x12c   :  { %v876_v8 = vmul.f32 %v7939_v62, %v628_v1  ;;  %v553_v9 = vmax.f32 %v452_v2, 0.0  ;;  %v455_v10 = vadd.f32 %v8567_v41, %v454_v6  ;;  %7297 = vmatmul.mubr.msk.bf16.gmra.mrb[68].mxu0 %vm336_vm0, %v1325_v7  ;;  %v456_v11 = vpop.f32.mrb[19].mxu0  ;;  %7192 = vmatprep.mubr.msk.bf16.mxu1 %vm8225_vm1, %v11243_v33  ;;  %v8641_v12 = vpack.c.bf16 %v875_v0, %v874_v48  ;;  %v7952_v2 = vpop.permute.xlu0 %7951 }
 0x12d   :  { %7300 = vmatprep.mubr.msk.bf16.mxu0 %vm8225_vm1, %v11243_v33  ;;  %v7953_v7 = vunpack.i.l.bf16 %v7952_v2  ;;  %v7954_v13 = vunpack.i.h.bf16 %v7952_v2 }
 0x12e   :  { %11277 = vst [vmem:[#allocation6_spill] sm:$0xff] %v8641_v12  ;;  %v8645_v14 = vpack.c.bf16 %v876_v8, %v875_v0  ;;  %v591_v15 = vmul.f32 %v8573_v45, %v553_v9  ;;  %v554_v16 = vmax.f32 %v455_v10, 0.0 }
 0x130   :  { %v629_v18 = vadd.f32 %v8579_v50, %v591_v15  ;;  %v592_v19 = vmul.f32 %v8573_v45, %v554_v16  ;;  %v936_v20 = vrot.slane %v8645_v14, 1  ;;  %v1326_v21 = vrot.slane %v8645_v14, 2 }
 0x131   :  { %v459_v23 = vpop.f32.mrb[20].mxu0 }
 0x132   :  { %v877_v25 = vmul.f32 %v7943_v17, %v629_v18  ;;  %v630_v26 = vadd.f32 %v8579_v50, %v592_v19  ;;  %v460_v27 = vadd.f32 %v8567_v41, %v459_v23  ;;  %v461_v28 = vpop.f32.mrb[21].mxu0  ;;  %v937_v29 = vsel %vm930_vm2, %v934_v60, %v936_v20 }
 0x133   :  { %v462_v30 = vpop.f32.mrb[22].mxu0  ;;  %7193 = vmatmul.mubr.msk.bf16.gmra.mrb[8].mxu1 %vm336_vm0, %v937_v29  ;;  %v1327_v31 = vsel %vm1320_vm3, %v1324_v61, %v1326_v21  ;;  %v7957_v29 = vpop.permute.xlu1 %7956 }
 0x134   :  { %v878_v32 = vmul.f32 %v7944_v22, %v630_v26  ;;  %v555_v34 = vmax.f32 %v460_v27, 0.0  ;;  %v463_v35 = vadd.f32 %v8567_v41, %v462_v30  ;;  %7301 = vmatmul.mubr.msk.bf16.gmra.mrb[72].mxu0 %vm336_vm0, %v1327_v31  ;;  %v464_v36 = vpop.f32.mrb[23].mxu0  ;;  %7196 = vmatprep.mubr.msk.bf16.mxu1 %vm8225_vm1, %v11243_v33  ;;  %v8661_v37 = vpack.c.bf16 %v877_v25, %v876_v8 }
 0x135   :  { %7304 = vmatprep.mubr.msk.bf16.mxu0 %vm8225_vm1, %v11243_v33 }
 0x136   :  { %v8665_v39 = vpack.c.bf16 %v878_v32, %v877_v25  ;;  %v593_v40 = vmul.f32 %v8573_v45, %v555_v34  ;;  %v556_v42 = vmax.f32 %v463_v35, 0.0  ;;  %v7958_v34 = vunpack.i.l.bf16 %v7957_v29 }
 0x138   :  { %v631_v44 = vadd.f32 %v8579_v50, %v593_v40  ;;  %v594_v46 = vmul.f32 %v8573_v45, %v556_v42  ;;  %v938_v48 = vrot.slane %v8665_v39, 1  ;;  %v1328_v49 = vrot.slane %v8665_v39, 2 }
 0x139   :  { %v467_v52 = vpop.f32.mrb[24].mxu0  ;;  %v7959_v42 = vunpack.i.h.bf16 %v7957_v29 }
 0x13a   :  { %v879_v53 = vmul.f32 %v7948_v43, %v631_v44  ;;  %v632_v55 = vadd.f32 %v8579_v50, %v594_v46  ;;  %v468_v56 = vadd.f32 %v8567_v41, %v467_v52  ;;  %v469_v57 = vpop.f32.mrb[25].mxu0  ;;  %v939_v58 = vsel %vm930_vm2, %v936_v20, %v938_v48 }
 0x13b   :  { %v470_v59 = vpop.f32.mrb[26].mxu0  ;;  %7197 = vmatmul.mubr.msk.bf16.gmra.mrb[12].mxu1 %vm336_vm0, %v939_v58  ;;  %v1329_v60 = vsel %vm1320_vm3, %v1326_v21, %v1328_v49 }
 0x13c   :  { %v880_v61 = vmul.f32 %v7949_v51, %v632_v55  ;;  %v557_v62 = vmax.f32 %v468_v56, 0.0  ;;  %v471_v63 = vadd.f32 %v8567_v41, %v470_v59  ;;  %7305 = vmatmul.mubr.msk.bf16.gmra.mrb[76].mxu0 %vm336_vm0, %v1329_v60  ;;  %v472_v0 = vpop.f32.mrb[27].mxu0  ;;  %7200 = vmatprep.mubr.msk.bf16.mxu1 %vm8225_vm1, %v11243_v33  ;;  %v8681_v1 = vpack.c.bf16 %v879_v53, %v878_v32  ;;  %v7962_v60 = vpop.permute.xlu0 %7961 }
 0x13d   :  { %7308 = vmatprep.mubr.msk.bf16.mxu0 %vm8225_vm1, %v11243_v33  ;;  %v7963_v0 = vunpack.i.l.bf16 %v7962_v60 }
 0x13e   :  { %v8685_v3 = vpack.c.bf16 %v880_v61, %v879_v53  ;;  %v595_v5 = vmul.f32 %v8573_v45, %v557_v62  ;;  %v558_v6 = vmax.f32 %v471_v63, 0.0 }
 0x140   :  { %v633_v8 = vadd.f32 %v8579_v50, %v595_v5  ;;  %v596_v9 = vmul.f32 %v8573_v45, %v558_v6  ;;  %v940_v10 = vrot.slane %v8685_v3, 1  ;;  %v1330_v11 = vrot.slane %v8685_v3, 2 }
 0x141   :  { %v475_v15 = vpop.f32.mrb[28].mxu0 }
 0x142   :  { %v881_v16 = vmul.f32 %v7953_v7, %v633_v8  ;;  %v634_v17 = vadd.f32 %v8579_v50, %v596_v9  ;;  %v476_v18 = vadd.f32 %v8567_v41, %v475_v15  ;;  %v477_v19 = vpop.f32.mrb[29].mxu0  ;;  %v941_v20 = vsel %vm930_vm2, %v938_v48, %v940_v10 }
 0x143   :  { %v478_v21 = vpop.f32.mrb[30].mxu0  ;;  %7201 = vmatmul.mubr.msk.bf16.gmra.mrb[16].mxu1 %vm336_vm0, %v941_v20  ;;  %v1331_v22 = vsel %vm1320_vm3, %v1328_v49, %v1330_v11  ;;  %v7964_v8 = vunpack.i.h.bf16 %v7962_v60 }
 0x144   :  { %v882_v23 = vmul.f32 %v7954_v13, %v634_v17  ;;  %v559_v25 = vmax.f32 %v476_v18, 0.0  ;;  %v479_v26 = vadd.f32 %v8567_v41, %v478_v21  ;;  %7309 = vmatmul.mubr.msk.bf16.gmra.mrb[80].mxu0 %vm336_vm0, %v1331_v22  ;;  %v480_v27 = vpop.f32.mrb[31].mxu0  ;;  %7204 = vmatprep.mubr.msk.bf16.mxu1 %vm8225_vm1, %v11243_v33  ;;  %v8701_v28 = vpack.c.bf16 %v881_v16, %v880_v61 }
 0x145   :  { %7312 = vmatprep.mubr.msk.bf16.mxu0 %vm8225_vm1, %v11243_v33 }
 0x146   :  { %v8705_v30 = vpack.c.bf16 %v882_v23, %v881_v16  ;;  %v597_v31 = vmul.f32 %v8573_v45, %v559_v25  ;;  %v560_v32 = vmax.f32 %v479_v26, 0.0  ;;  %v7967_v25 = vpop.permute.xlu1 %7966 }
 0x148   :  { %v635_v35 = vadd.f32 %v8579_v50, %v597_v31  ;;  %v598_v36 = vmul.f32 %v8573_v45, %v560_v32  ;;  %v942_v38 = vrot.slane %v8705_v30, 1  ;;  %v1332_v40 = vrot.slane %v8705_v30, 2 }
 0x149   :  { %v483_v43 = vpop.f32.mrb[32].mxu0  ;;  %v7968_v31 = vunpack.i.l.bf16 %v7967_v25 }
 0x14a   :  { %v883_v44 = vmul.f32 %v7958_v34, %v635_v35  ;;  %v636_v46 = vadd.f32 %v8579_v50, %v598_v36  ;;  %v484_v48 = vadd.f32 %v8567_v41, %v483_v43  ;;  %v485_v49 = vpop.f32.mrb[33].mxu0  ;;  %v943_v51 = vsel %vm930_vm2, %v940_v10, %v942_v38 }
 0x14b   :  { %v486_v52 = vpop.f32.mrb[34].mxu0  ;;  %7205 = vmatmul.mubr.msk.bf16.gmra.mrb[20].mxu1 %vm336_vm0, %v943_v51  ;;  %v1333_v53 = vsel %vm1320_vm3, %v1330_v11, %v1332_v40 }
 0x14c   :  { %v884_v55 = vmul.f32 %v7959_v42, %v636_v46  ;;  %v561_v56 = vmax.f32 %v484_v48, 0.0  ;;  %v487_v57 = vadd.f32 %v8567_v41, %v486_v52  ;;  %7313 = vmatmul.mubr.msk.bf16.gmra.mrb[84].mxu0 %vm336_vm0, %v1333_v53  ;;  %v488_v58 = vpop.f32.mrb[35].mxu0  ;;  %7208 = vmatprep.mubr.msk.bf16.mxu1 %vm8225_vm1, %v11243_v33  ;;  %v8721_v59 = vpack.c.bf16 %v883_v44, %v882_v23 }
 0x14d   :  { %7316 = vmatprep.mubr.msk.bf16.mxu0 %vm8225_vm1, %v11243_v33  ;;  %v7972_v58 = vpop.permute.xlu0 %7971 }
 0x14e   :  { %v8725_v61 = vpack.c.bf16 %v884_v55, %v883_v44  ;;  %v599_v62 = vmul.f32 %v8573_v45, %v561_v56  ;;  %v562_v63 = vmax.f32 %v487_v57, 0.0 }
 0x150   :  { %v637_v2 = vadd.f32 %v8579_v50, %v599_v62  ;;  %v600_v5 = vmul.f32 %v8573_v45, %v562_v63  ;;  %v944_v6 = vrot.slane %v8725_v61, 1  ;;  %v1334_v7 = vrot.slane %v8725_v61, 2 }
 0x151   :  { %v491_v9 = vpop.f32.mrb[36].mxu0 }
 0x152   :  { %v885_v10 = vmul.f32 %v7963_v0, %v637_v2  ;;  %v638_v11 = vadd.f32 %v8579_v50, %v600_v5  ;;  %v492_v13 = vadd.f32 %v8567_v41, %v491_v9  ;;  %v493_v15 = vpop.f32.mrb[37].mxu0  ;;  %v945_v16 = vsel %vm930_vm2, %v942_v38, %v944_v6 }
 0x153   :  { %v494_v17 = vpop.f32.mrb[38].mxu0  ;;  %7209 = vmatmul.mubr.msk.bf16.gmra.mrb[24].mxu1 %vm336_vm0, %v945_v16  ;;  %v1335_v18 = vsel %vm1320_vm3, %v1332_v40, %v1334_v7  ;;  %v7969_v38 = vunpack.i.h.bf16 %v7967_v25  ;;  %v7973_v0 = vunpack.i.l.bf16 %v7972_v58 }
 0x154   :  { %v886_v19 = vmul.f32 %v7964_v8, %v638_v11  ;;  %v563_v20 = vmax.f32 %v492_v13, 0.0  ;;  %v495_v21 = vadd.f32 %v8567_v41, %v494_v17  ;;  %7317 = vmatmul.mubr.msk.bf16.gmra.mrb[88].mxu0 %vm336_vm0, %v1335_v18  ;;  %v496_v22 = vpop.f32.mrb[39].mxu0  ;;  %7212 = vmatprep.mubr.msk.bf16.mxu1 %vm8225_vm1, %v11243_v33  ;;  %v8741_v23 = vpack.c.bf16 %v885_v10, %v884_v55 }
 0x155   :  { %7320 = vmatprep.mubr.msk.bf16.mxu0 %vm8225_vm1, %v11243_v33  ;;  %v7974_v8 = vunpack.i.h.bf16 %v7972_v58 }
 0x156   :  { %v8745_v26 = vpack.c.bf16 %v886_v19, %v885_v10  ;;  %v601_v27 = vmul.f32 %v8573_v45, %v563_v20  ;;  %v564_v29 = vmax.f32 %v495_v21, 0.0 }
 0x158   :  { %v639_v32 = vadd.f32 %v8579_v50, %v601_v27  ;;  %v602_v34 = vmul.f32 %v8573_v45, %v564_v29  ;;  %v946_v35 = vrot.slane %v8745_v26, 1  ;;  %v1336_v36 = vrot.slane %v8745_v26, 2  ;;  %v7977_v27 = vpop.permute.xlu1 %7976 }
 0x159   :  { %v499_v40 = vpop.f32.mrb[40].mxu0 }
 0x15a   :  { %v887_v42 = vmul.f32 %v7968_v31, %v639_v32  ;;  %v640_v43 = vadd.f32 %v8579_v50, %v602_v34  ;;  %v500_v44 = vadd.f32 %v8567_v41, %v499_v40  ;;  %v501_v46 = vpop.f32.mrb[41].mxu0  ;;  %v947_v48 = vsel %vm930_vm2, %v944_v6, %v946_v35 }
 0x15b   :  { %v502_v49 = vpop.f32.mrb[42].mxu0  ;;  %7213 = vmatmul.mubr.msk.bf16.gmra.mrb[28].mxu1 %vm336_vm0, %v947_v48  ;;  %v1337_v51 = vsel %vm1320_vm3, %v1334_v7, %v1336_v36  ;;  %v7978_v34 = vunpack.i.l.bf16 %v7977_v27 }
 0x15c   :  { %v888_v52 = vmul.f32 %v7969_v38, %v640_v43  ;;  %v565_v53 = vmax.f32 %v500_v44, 0.0  ;;  %v503_v55 = vadd.f32 %v8567_v41, %v502_v49  ;;  %7321 = vmatmul.mubr.msk.bf16.gmra.mrb[92].mxu0 %vm336_vm0, %v1337_v51  ;;  %v504_v56 = vpop.f32.mrb[43].mxu0  ;;  %7216 = vmatprep.mubr.msk.bf16.mxu1 %vm8225_vm1, %v11243_v33  ;;  %v8761_v57 = vpack.c.bf16 %v887_v42, %v886_v19 }
 0x15d   :  { %7324 = vmatprep.mubr.msk.bf16.mxu0 %vm8225_vm1, %v11243_v33 }
 0x15e   :  { %v8765_v60 = vpack.c.bf16 %v888_v52, %v887_v42  ;;  %v603_v62 = vmul.f32 %v8573_v45, %v565_v53  ;;  %v566_v63 = vmax.f32 %v503_v55, 0.0  ;;  %v7979_v42 = vunpack.i.h.bf16 %v7977_v27 }
 0x160   :  { %v641_v2 = vadd.f32 %v8579_v50, %v603_v62  ;;  %v604_v5 = vmul.f32 %v8573_v45, %v566_v63  ;;  %v948_v6 = vrot.slane %v8765_v60, 1  ;;  %v1338_v7 = vrot.slane %v8765_v60, 2 }
 0x161   :  { %v507_v9 = vpop.f32.mrb[44].mxu0 }
 0x162   :  { %v889_v10 = vmul.f32 %v7973_v0, %v641_v2  ;;  %v642_v11 = vadd.f32 %v8579_v50, %v604_v5  ;;  %v508_v13 = vadd.f32 %v8567_v41, %v507_v9  ;;  %v509_v15 = vpop.f32.mrb[45].mxu0  ;;  %v949_v16 = vsel %vm930_vm2, %v946_v35, %v948_v6 }
 0x163   :  { %v510_v17 = vpop.f32.mrb[46].mxu0  ;;  %7217 = vmatmul.mubr.msk.bf16.gmra.mrb[32].mxu1 %vm336_vm0, %v949_v16  ;;  %v1339_v18 = vsel %vm1320_vm3, %v1336_v36, %v1338_v7 }
 0x164   :  { %v890_v19 = vmul.f32 %v7974_v8, %v642_v11  ;;  %v567_v20 = vmax.f32 %v508_v13, 0.0  ;;  %v511_v21 = vadd.f32 %v8567_v41, %v510_v17  ;;  %7325 = vmatmul.mubr.msk.bf16.gmra.mrb[96].mxu0 %vm336_vm0, %v1339_v18  ;;  %v512_v22 = vpop.f32.mrb[47].mxu0  ;;  %7220 = vmatprep.mubr.msk.bf16.mxu1 %vm8225_vm1, %v11243_v33  ;;  %v8781_v25 = vpack.c.bf16 %v889_v10, %v888_v52 }
 0x165   :  { %7328 = vmatprep.mubr.msk.bf16.mxu0 %vm8225_vm1, %v11243_v33 }
 0x166   :  { %v8785_v29 = vpack.c.bf16 %v890_v19, %v889_v10  ;;  %v605_v31 = vmul.f32 %v8573_v45, %v567_v20  ;;  %v568_v32 = vmax.f32 %v511_v21, 0.0  ;;  %v837_v10 = vpop.permute.xlu0 %836  ;;  %v842_v21 = vpop.permute.xlu1 %841 }
 0x168   :  { %v643_v35 = vadd.f32 %v8579_v50, %v605_v31  ;;  %v606_v36 = vmul.f32 %v8573_v45, %v568_v32  ;;  %v950_v38 = vrot.slane %v8785_v29, 1  ;;  %v1340_v40 = vrot.slane %v8785_v29, 2 }
 0x169   :  { %v515_v43 = vpop.f32.mrb[48].mxu0 }
 0x16a   :  { %v891_v44 = vmul.f32 %v7978_v34, %v643_v35  ;;  %v644_v46 = vadd.f32 %v8579_v50, %v606_v36  ;;  %v516_v48 = vadd.f32 %v8567_v41, %v515_v43  ;;  %v517_v49 = vpop.f32.mrb[49].mxu0  ;;  %v951_v51 = vsel %vm930_vm2, %v948_v6, %v950_v38 }
 0x16b   :  { %v518_v52 = vpop.f32.mrb[50].mxu0  ;;  %7221 = vmatmul.mubr.msk.bf16.gmra.mrb[36].mxu1 %vm336_vm0, %v951_v51  ;;  %v1341_v53 = vsel %vm1320_vm3, %v1338_v7, %v1340_v40 }
 0x16c   :  { %v892_v55 = vmul.f32 %v7979_v42, %v644_v46  ;;  %v569_v56 = vmax.f32 %v516_v48, 0.0  ;;  %v519_v58 = vadd.f32 %v8567_v41, %v518_v52  ;;  %7329 = vmatmul.mubr.msk.bf16.gmra.mrb[100].mxu0 %vm336_vm0, %v1341_v53  ;;  %v520_v62 = vpop.f32.mrb[51].mxu0  ;;  %7224 = vmatprep.mubr.msk.bf16.mxu1 %vm8225_vm1, %v11243_v33  ;;  %v8801_v63 = vpack.c.bf16 %v891_v44, %v890_v19  ;;  %v847_v48 = vpop.permute.xlu0 %846 }
 0x16d   :  { %7332 = vmatprep.mubr.msk.bf16.mxu0 %vm8225_vm1, %v11243_v33 }
 0x16e   :  { %11278 = vst [vmem:[#allocation7_spill] sm:$0xff] %v8801_v63  ;;  %v8805_v0 = vpack.c.bf16 %v892_v55, %v891_v44  ;;  %v607_v2 = vmul.f32 %v8573_v45, %v569_v56  ;;  %v570_v5 = vmax.f32 %v519_v58, 0.0  ;;  %v852_v58 = vpop.permute.xlu1 %851 }
 0x170   :  { %v645_v6 = vadd.f32 %v8579_v50, %v607_v2  ;;  %v608_v7 = vmul.f32 %v8573_v45, %v570_v5  ;;  %v952_v8 = vrot.slane %v8805_v0, 1  ;;  %v1342_v9 = vrot.slane %v8805_v0, 2 }
 0x171   :  { %v523_v11 = vpop.f32.mrb[52].mxu0 }
 0x172   :  { %v893_v13 = vmul.f32 %v837_v10, %v645_v6  ;;  %v646_v15 = vadd.f32 %v8579_v50, %v608_v7  ;;  %v524_v16 = vadd.f32 %v8567_v41, %v523_v11  ;;  %v525_v17 = vpop.f32.mrb[53].mxu0  ;;  %v953_v18 = vsel %vm930_vm2, %v950_v38, %v952_v8 }
 0x173   :  { %v526_v19 = vpop.f32.mrb[54].mxu0  ;;  %7225 = vmatmul.mubr.msk.bf16.gmra.mrb[40].mxu1 %vm336_vm0, %v953_v18  ;;  %v1343_v20 = vsel %vm1320_vm3, %v1340_v40, %v1342_v9 }
 0x174   :  { %v571_v22 = vmax.f32 %v524_v16, 0.0  ;;  %v527_v27 = vadd.f32 %v8567_v41, %v526_v19  ;;  %7333 = vmatmul.mubr.msk.bf16.gmra.mrb[104].mxu0 %vm336_vm0, %v1343_v20  ;;  %v528_v31 = vpop.f32.mrb[55].mxu0  ;;  %7228 = vmatprep.mubr.msk.bf16.mxu1 %vm8225_vm1, %v11243_v33  ;;  %v8821_v32 = vpack.c.bf16 %v893_v13, %v893_v13  ;;  %v8823_v34 = vpack.c.bf16 %v893_v13, %v892_v55  ;;  %v857_v16 = vpop.permute.xlu0 %856 }
 0x175   :  { %7336 = vmatprep.mubr.msk.bf16.mxu0 %vm8225_vm1, %v11243_v33  ;;  %v894_v35 = vmul.f32 %v842_v21, %v646_v15  ;;  %v862_v21 = vpop.permute.xlu1 %861 }
 0x176   :  { %11279 = vst [vmem:[#allocation8_spill] sm:$0xff] %v8823_v34  ;;  %v609_v36 = vmul.f32 %v8573_v45, %v571_v22  ;;  %v572_v38 = vmax.f32 %v527_v27, 0.0  ;;  %v954_v40 = vrot.slane %v8821_v32, 1  ;;  %v1344_v42 = vrot.slane %v8821_v32, 2 }
 0x177   :  { %v8830_v43 = vpack.c.bf16 %v894_v35, %v893_v13 }
 0x178   :  { %v647_v44 = vadd.f32 %v8579_v50, %v609_v36  ;;  %v610_v46 = vmul.f32 %v8573_v45, %v572_v38  ;;  %v955_v56 = vsel %vm930_vm2, %v952_v8, %v954_v40  ;;  %v1345_v2 = vsel %vm1320_vm3, %v1342_v9, %v1344_v42  ;;  %v8040_v36 = vld [vmem:[%s11273_s3 + $0x18] sm:$0xff]  }
 0x179   :  { %11280 = vst [vmem:[#allocation9_spill] sm:$0xff] %v8830_v43  ;;  %v531_v49 = vpop.f32.mrb[56].mxu0 }
 0x17a   :  { %v8834_v51 = vmul.f32 %v847_v48, %v647_v44  ;;  %v648_v52 = vadd.f32 %v8579_v50, %v610_v46  ;;  %v532_v53 = vadd.f32 %v8567_v41, %v531_v49  ;;  %v533_v55 = vpop.f32.mrb[57].mxu0  ;;  %v8041_v46 = vld [vmem:[%s11273_s3 + $0x30] sm:$0xff]  }
 0x17b   :  { %v534_v62 = vpop.f32.mrb[58].mxu0  ;;  %7229 = vmatmul.mubr.msk.bf16.gmra.mrb[44].mxu1 %vm336_vm0, %v955_v56  ;;  %v1559_v55 = vrot.slane %v8595_v24, 3  ;;  %v8042_v56 = vld [vmem:[%s11273_s3 + $0x28] sm:$0xff]  }
 0x17c   :  { %v8841_v5 = vmul.f32 %v852_v58, %v648_v52  ;;  %v573_v6 = vmax.f32 %v532_v53, 0.0  ;;  %v535_v7 = vadd.f32 %v8567_v41, %v534_v62  ;;  %7337 = vmatmul.mubr.msk.bf16.gmra.mrb[108].mxu0 %vm336_vm0, %v1345_v2  ;;  %v536_v10 = vpop.f32.mrb[59].mxu0  ;;  %7232 = vmatprep.mubr.msk.bf16.mxu1 %vm8225_vm1, %v11243_v33  ;;  %v8848_v11 = vpack.c.bf16 %v8834_v51, %v894_v35  ;;  %v8043_v62 = vld [vmem:[%s11273_s3 + $0x40] sm:$0xff]  }
 0x17d   :  { %7340 = vmatprep.mubr.msk.bf16.mxu0 %vm8225_vm1, %v11243_v33  ;;  %v1560_v52 = vrot.slane %v8623_v54, 3  ;;  %v2264_v53 = vrot.slane %v8661_v37, 2  ;;  %v1562_v2 = vrot.slane %v8645_v14, 3  ;;  %v2266_v10 = vrot.slane %v8681_v1, 2 }
 0x17e   :  { %11281 = vst [vmem:[#allocation10_spill] sm:$0xff] %v8841_v5  ;;  %11282 = vst [vmem:[#allocation11_spill] sm:$0xff] %v8848_v11  ;;  %v611_v9 = vmul.f32 %v8573_v45, %v573_v6  ;;  %v574_v13 = vmax.f32 %v535_v7, 0.0 }
 0x17f   :  { %v1561_v58 = vsel %vm1558_vm4, %v1559_v55, %v1560_v52 }
 0x180   :  { %v649_v41 = vadd.f32 %v8579_v50, %v611_v9  ;;  %v612_v15 = vmul.f32 %v8573_v45, %v574_v13 }
 0x181   :  { %v8857_v17 = vpop.f32.mrb[60].mxu0 }
 0x182   :  { %11283 = vst [vmem:[#allocation12_spill] sm:$0xff] %v8857_v17  ;;  %v8859_v18 = vmul.f32 %v857_v16, %v649_v41  ;;  %v650_v19 = vadd.f32 %v8579_v50, %v612_v15  ;;  %v541_v20 = vpop.f32.mrb[61].mxu0 }
 0x183   :  { %7233 = vmatmul.mubr.msk.bf16.gmra.mrb[48].mxu1 %vm336_vm0, %v954_v40  ;;  %v542_v22 = vpop.f32.mrb[62].mxu0  ;;  %v2267_v20 = vsel %vm1320_vm3, %v2264_v53, %v2266_v10 }
 0x184   :  { %11284 = vst [vmem:[#allocation13_spill] sm:$0xff] %v8859_v18  ;;  %v8863_v27 = vmul.f32 %v862_v21, %v650_v19  ;;  %7341 = vmatmul.mubr.msk.bf16.gmra.mrb[112].mxu0 %vm336_vm0, %v1344_v42  ;;  %7238 = vmatprep.mubr.msk.bf16.mxu1 %vm8225_vm1, %v11243_v33  ;;  %v543_v45 = vpop.f32.mrb[63].mxu0  ;;  %v8870_v31 = vpack.c.bf16 %v8859_v18, %v8841_v5  ;;  %v1564_v22 = vrot.slane %v8665_v39, 3 }
 0x185   :  { %7400 = vmatprep.mubr.msk.bf16.mxu0 %vm8225_vm1, %v11243_v33  ;;  %v1563_v19 = vsel %vm1558_vm4, %v1560_v52, %v1562_v2 }
 0x186   :  { %11285 = vst [vmem:[#allocation14_spill] sm:$0xff] %v8863_v27  ;;  %11286 = vst [vmem:[#allocation15_spill] sm:$0xff] %v8870_v31  ;;  %v8878_v35 = vpack.c.bf16 %v8863_v27, %v8863_v27  ;;  %v11241_v38 = vrot.slane %v8870_v31, 2  ;;  %v11239_v42 = vrot.slane %v8870_v31, 3  ;;  %v11290_v27 = vmov 0.0  }
 0x188   :  { %11287 = vst [vmem:[#allocation16_spill] sm:$0xff] %v8878_v35  ;;  %v11240_v40 = vrot.slane %v8878_v35, 2  ;;  %v11238_v44 = vrot.slane %v8878_v35, 3 }
 0x18a   :  { %v8895_v48 = vsel %vm1320_vm3, %v11241_v38, %v11240_v40  ;;  %v8902_v49 = vsel %vm1558_vm4, %v11239_v42, %v11238_v44 }
 0x18b   :  { %11288 = vst [vmem:[#allocation17_spill] sm:$0xff] %v8902_v49  ;;  %7239 = vmatmul.mubr.msk.bf16.vlgmr.msra.gmra.mrb[52].mxu1 %vm336_vm0, %v8587_v4  ;;  %v9004_v4 = vpack.c.bf16 %v8841_v5, %v8841_v5 }
 0x18c   :  { %7401 = vmatmul.mubr.msk.bf16.vlgmr.msra.gmra.mrb[116].mxu0 %vm336_vm0, %v8615_v47  ;;  %7345 = vmatpush3.bf16.msra.mxu1 %v8040_v36 }
 0x18d   :  { %7242 = vmatprep.mubr.msk.bf16.mxu1 %vm8225_vm1, %v11243_v33  ;;  %7404 = vmatprep.mubr.msk.bf16.mxu0 %vm8225_vm1, %v11243_v33  ;;  %11289 = vst [vmem:[#allocation18_spill] sm:$0xff] %v9004_v4 }
 0x18e   :  { %7507 = vmatpush3.bf16.msra.mxu0 %v8041_v46  ;;  %7452 = vmatprep.subr.bf16.mxu1 %v11243_v33  ;;  %v2268_v46 = vrot.slane %v8701_v28, 2 }
 0x18f   :  { %7614 = vmatprep.subr.bf16.mxu0 %v11243_v33 }
 0x193   :  { %7243 = vmatmul.mubr.msk.bf16.gmra.mrb[56].mxu1 %vm336_vm0, %v8595_v24 }
 0x194   :  { %7405 = vmatmul.mubr.msk.bf16.gmra.mrb[120].mxu0 %vm336_vm0, %v8641_v12  ;;  %7246 = vmatprep.mubr.msk.bf16.mxu1 %vm8225_vm1, %v11243_v33 }
 0x195   :  { %7408 = vmatprep.mubr.msk.bf16.mxu0 %vm8225_vm1, %v11243_v33 }
 0x19b   :  { %7247 = vmatmul.mubr.msk.bf16.gmra.mrb[60].mxu1 %vm336_vm0, %v8623_v54 }
 0x19c   :  { %7409 = vmatmul.mubr.msk.bf16.gmra.mrb[124].mxu0 %vm336_vm0, %v8661_v37  ;;  %7250 = vmatprep.mubr.msk.bf16.mxu1 %vm8225_vm1, %v11243_v33 }
 0x19d   :  { %7412 = vmatprep.mubr.msk.bf16.mxu0 %vm8225_vm1, %v11243_v33 }
 0x1a3   :  { %7251 = vmatmul.mubr.msk.bf16.gmra.mrb[64].mxu1 %vm336_vm0, %v8645_v14 }
 0x1a4   :  { %7413 = vmatmul.mubr.msk.bf16.gmra.mrb[128].mxu0 %vm336_vm0, %v8681_v1  ;;  %7254 = vmatprep.mubr.msk.bf16.mxu1 %vm8225_vm1, %v11243_v33 }
 0x1a5   :  { %7416 = vmatprep.mubr.msk.bf16.mxu0 %vm8225_vm1, %v11243_v33 }
 0x1ab   :  { %7255 = vmatmul.mubr.msk.bf16.gmra.mrb[68].mxu1 %vm336_vm0, %v8665_v39 }
 0x1ac   :  { %7417 = vmatmul.mubr.msk.bf16.gmra.mrb[132].mxu0 %vm336_vm0, %v8701_v28  ;;  %7258 = vmatprep.mubr.msk.bf16.mxu1 %vm8225_vm1, %v11243_v33 }
 0x1ad   :  { %7420 = vmatprep.mubr.msk.bf16.mxu0 %vm8225_vm1, %v11243_v33 }
 0x1b3   :  { %7259 = vmatmul.mubr.msk.bf16.gmra.mrb[72].mxu1 %vm336_vm0, %v8685_v3 }
 0x1b4   :  { %7421 = vmatmul.mubr.msk.bf16.gmra.mrb[136].mxu0 %vm336_vm0, %v8721_v59  ;;  %7262 = vmatprep.mubr.msk.bf16.mxu1 %vm8225_vm1, %v11243_v33 }
 0x1b5   :  { %7424 = vmatprep.mubr.msk.bf16.mxu0 %vm8225_vm1, %v11243_v33 }
 0x1bb   :  { %7263 = vmatmul.mubr.msk.bf16.gmra.mrb[76].mxu1 %vm336_vm0, %v8705_v30 }
 0x1bc   :  { %7425 = vmatmul.mubr.msk.bf16.gmra.mrb[140].mxu0 %vm336_vm0, %v8741_v23  ;;  %7266 = vmatprep.mubr.msk.bf16.mxu1 %vm8225_vm1, %v11243_v33 }
 0x1bd   :  { %7428 = vmatprep.mubr.msk.bf16.mxu0 %vm8225_vm1, %v11243_v33 }
 0x1c3   :  { %7267 = vmatmul.mubr.msk.bf16.gmra.mrb[80].mxu1 %vm336_vm0, %v8725_v61 }
 0x1c4   :  { %7429 = vmatmul.mubr.msk.bf16.gmra.mrb[144].mxu0 %vm336_vm0, %v8761_v57  ;;  %7270 = vmatprep.mubr.msk.bf16.mxu1 %vm8225_vm1, %v11243_v33 }
 0x1c5   :  { %7432 = vmatprep.mubr.msk.bf16.mxu0 %vm8225_vm1, %v11243_v33 }
 0x1cb   :  { %7271 = vmatmul.mubr.msk.bf16.gmra.mrb[84].mxu1 %vm336_vm0, %v8745_v26 }
 0x1cc   :  { %7433 = vmatmul.mubr.msk.bf16.gmra.mrb[148].mxu0 %vm336_vm0, %v8781_v25  ;;  %7274 = vmatprep.mubr.msk.bf16.mxu1 %vm8225_vm1, %v11243_v33 }
 0x1cd   :  { %7436 = vmatprep.mubr.msk.bf16.mxu0 %vm8225_vm1, %v11243_v33 }
 0x1d3   :  { %7275 = vmatmul.mubr.msk.bf16.gmra.mrb[88].mxu1 %vm336_vm0, %v8765_v60 }
 0x1d4   :  { %7437 = vmatmul.mubr.msk.bf16.gmra.mrb[152].mxu0 %vm336_vm0, %v8801_v63  ;;  %7278 = vmatprep.mubr.msk.bf16.mxu1 %vm8225_vm1, %v11243_v33 }
 0x1d5   :  { %7440 = vmatprep.mubr.msk.bf16.mxu0 %vm8225_vm1, %v11243_v33 }
 0x1db   :  { %7279 = vmatmul.mubr.msk.bf16.gmra.mrb[92].mxu1 %vm336_vm0, %v8785_v29 }
 0x1dc   :  { %7441 = vmatmul.mubr.msk.bf16.gmra.mrb[156].mxu0 %vm336_vm0, %v8823_v34  ;;  %7282 = vmatprep.mubr.msk.bf16.mxu1 %vm8225_vm1, %v11243_v33 }
 0x1dd   :  { %7444 = vmatprep.mubr.msk.bf16.mxu0 %vm8225_vm1, %v11243_v33 }
 0x1e3   :  { %7283 = vmatmul.mubr.msk.bf16.gmra.mrb[96].mxu1 %vm336_vm0, %v8805_v0 }
 0x1e4   :  { %7445 = vmatmul.mubr.msk.bf16.gmra.mrb[160].mxu0 %vm336_vm0, %v8848_v11  ;;  %7286 = vmatprep.mubr.msk.bf16.mxu1 %vm8225_vm1, %v11243_v33 }
 0x1e5   :  { %7448 = vmatprep.mubr.msk.bf16.mxu0 %vm8225_vm1, %v11243_v33 }
 0x1eb   :  { %7287 = vmatmul.mubr.msk.bf16.gmra.mrb[100].mxu1 %vm336_vm0, %v8821_v32  ;;  %v2263_v32 = vrot.slane %v8641_v12, 2 }
 0x1ec   :  { %7449 = vmatmul.mubr.msk.bf16.gmra.mrb[164].mxu0 %vm336_vm0, %v9004_v4  ;;  %7346 = vmatprep.mubr.msk.bf16.mxu1 %vm8225_vm1, %v11243_v33 }
 0x1ed   :  { %7508 = vmatprep.mubr.msk.bf16.mxu0 %vm8225_vm1, %v11243_v33  ;;  %v2265_v54 = vsel %vm1320_vm3, %v2263_v32, %v2264_v53 }
 0x1f3   :  { %7347 = vmatmul.mubr.msk.bf16.vlgmr.msra.gmra.mrb[104].mxu1 %vm336_vm0, %v1561_v58  ;;  %v1565_v58 = vsel %vm1558_vm4, %v1562_v2, %v1564_v22  ;;  %v2270_v2 = vrot.slane %v8721_v59, 2 }
 0x1f4   :  { %7509 = vmatmul.mubr.msk.bf16.vlgmr.msra.gmra.mrb[168].mxu0 %vm336_vm0, %v2265_v54  ;;  %7453 = vmatpush3.bf16.msra.mxu1 %v8042_v56 }
 0x1f5   :  { %7350 = vmatprep.mubr.msk.bf16.mxu1 %vm8225_vm1, %v11243_v33  ;;  %7512 = vmatprep.mubr.msk.bf16.mxu0 %vm8225_vm1, %v11243_v33 }
 0x1f6   :  { %v9032_v24 = vpop.f32.mrb[0].mxu1  ;;  %7615 = vmatpush3.bf16.msra.mxu0 %v8043_v62  ;;  %7560 = vmatprep.subr.bf16.mxu1 %v11243_v33  ;;  %v2269_v62 = vsel %vm1320_vm3, %v2266_v10, %v2268_v46 }
 0x1f7   :  { %v9036_v6 = vpop.f32.mrb[64].mxu0  ;;  %v7186_v7 = vpop.f32.mrb[1].mxu1  ;;  %7716 = vmatprep.subr.bf16.mxu0 %v11243_v33 }
 0x1f8   :  { %v7294_v9 = vpop.f32.mrb[65].mxu0  ;;  %v9040_v13 = vpop.f32.mrb[2].mxu1  ;;  %v1566_v7 = vrot.slane %v8685_v3, 3 }
 0x1f9   :  { %v9042_v41 = vpop.f32.mrb[66].mxu0  ;;  %v7187_v15 = vpop.f32.mrb[3].mxu1 }
 0x1fa   :  { %v7295_v16 = vpop.f32.mrb[67].mxu0 }
 0x1fb   :  { %7351 = vmatmul.mubr.msk.bf16.gmra.mrb[108].mxu1 %vm336_vm0, %v1563_v19 }
 0x1fc   :  { %7513 = vmatmul.mubr.msk.bf16.gmra.mrb[172].mxu0 %vm336_vm0, %v2267_v20  ;;  %7354 = vmatprep.mubr.msk.bf16.mxu1 %vm8225_vm1, %v11243_v33 }
 0x1fd   :  { %7516 = vmatprep.mubr.msk.bf16.mxu0 %vm8225_vm1, %v11243_v33 }
 0x1fe   :  { %v9052_v21 = vpop.f32.mrb[4].mxu1 }
 0x1ff   :  { %v9055_v45 = vpop.f32.mrb[68].mxu0  ;;  %v7190_v36 = vpop.f32.mrb[5].mxu1 }
 0x200   :  { %v7298_v52 = vpop.f32.mrb[69].mxu0  ;;  %v9058_v55 = vpop.f32.mrb[6].mxu1 }
 0x201   :  { %v9060_v53 = vpop.f32.mrb[70].mxu0  ;;  %v7191_v56 = vpop.f32.mrb[7].mxu1  ;;  %v1567_v52 = vsel %vm1558_vm4, %v1564_v22, %v1566_v7  ;;  %v2272_v22 = vrot.slane %v8741_v23, 2 }
 0x202   :  { %v7299_v32 = vpop.f32.mrb[71].mxu0  ;;  %v2271_v56 = vsel %vm1320_vm3, %v2268_v46, %v2270_v2 }
 0x203   :  { %7355 = vmatmul.mubr.msk.bf16.gmra.mrb[112].mxu1 %vm336_vm0, %v1565_v58  ;;  %v1568_v58 = vrot.slane %v8705_v30, 3  ;;  %v2273_v44 = vsel %vm1320_vm3, %v2270_v2, %v2272_v22 }
 0x204   :  { %7517 = vmatmul.mubr.msk.bf16.gmra.mrb[176].mxu0 %vm336_vm0, %v2269_v62  ;;  %7358 = vmatprep.mubr.msk.bf16.mxu1 %vm8225_vm1, %v11243_v33 }
 0x205   :  { %7520 = vmatprep.mubr.msk.bf16.mxu0 %vm8225_vm1, %v11243_v33 }
 0x206   :  { %v9070_v54 = vpop.f32.mrb[8].mxu1 }
 0x207   :  { %v9073_v9 = vpop.f32.mrb[72].mxu0  ;;  %v7194_v15 = vpop.f32.mrb[9].mxu1 }
 0x208   :  { %v7302_v16 = vpop.f32.mrb[73].mxu0  ;;  %v9076_v19 = vpop.f32.mrb[10].mxu1 }
 0x209   :  { %v9078_v10 = vpop.f32.mrb[74].mxu0  ;;  %v7195_v20 = vpop.f32.mrb[11].mxu1 }
 0x20a   :  { %v7303_v36 = vpop.f32.mrb[75].mxu0 }
 0x20b   :  { %7359 = vmatmul.mubr.msk.bf16.gmra.mrb[116].mxu1 %vm336_vm0, %v1567_v52 }
 0x20c   :  { %7521 = vmatmul.mubr.msk.bf16.gmra.mrb[180].mxu0 %vm336_vm0, %v2271_v56  ;;  %7362 = vmatprep.mubr.msk.bf16.mxu1 %vm8225_vm1, %v11243_v33  ;;  %v1569_v56 = vsel %vm1558_vm4, %v1566_v7, %v1568_v58  ;;  %v2274_v7 = vrot.slane %v8761_v57, 2 }
 0x20d   :  { %7524 = vmatprep.mubr.msk.bf16.mxu0 %vm8225_vm1, %v11243_v33 }
 0x20e   :  { %v9088_v32 = vpop.f32.mrb[12].mxu1  ;;  %v2275_v40 = vsel %vm1320_vm3, %v2272_v22, %v2274_v7 }
 0x20f   :  { %v9091_v62 = vpop.f32.mrb[76].mxu0  ;;  %v7198_v15 = vpop.f32.mrb[13].mxu1 }
 0x210   :  { %v7306_v16 = vpop.f32.mrb[77].mxu0  ;;  %v9094_v20 = vpop.f32.mrb[14].mxu1 }
 0x211   :  { %v9096_v46 = vpop.f32.mrb[78].mxu0  ;;  %v7199_v36 = vpop.f32.mrb[15].mxu1  ;;  %v1570_v16 = vrot.slane %v8725_v61, 3 }
 0x212   :  { %v7307_v52 = vpop.f32.mrb[79].mxu0 }
 0x213   :  { %7363 = vmatmul.mubr.msk.bf16.gmra.mrb[120].mxu1 %vm336_vm0, %v1569_v56  ;;  %v1571_v8 = vsel %vm1558_vm4, %v1568_v58, %v1570_v16  ;;  %v2276_v58 = vrot.slane %v8781_v25, 2 }
 0x214   :  { %7525 = vmatmul.mubr.msk.bf16.gmra.mrb[184].mxu0 %vm336_vm0, %v2273_v44  ;;  %7366 = vmatprep.mubr.msk.bf16.mxu1 %vm8225_vm1, %v11243_v33 }
 0x215   :  { %7528 = vmatprep.mubr.msk.bf16.mxu0 %vm8225_vm1, %v11243_v33 }
 0x216   :  { %v9106_v15 = vpop.f32.mrb[16].mxu1 }
 0x217   :  { %v9109_v36 = vpop.f32.mrb[80].mxu0  ;;  %v7202_v52 = vpop.f32.mrb[17].mxu1 }
 0x218   :  { %v7310_v56 = vpop.f32.mrb[81].mxu0  ;;  %v9112_v42 = vpop.f32.mrb[18].mxu1 }
 0x219   :  { %v9114_v2 = vpop.f32.mrb[82].mxu0  ;;  %v7203_v44 = vpop.f32.mrb[19].mxu1  ;;  %v1572_v56 = vrot.slane %v8745_v26, 3 }
 0x21a   :  { %v7311_v50 = vpop.f32.mrb[83].mxu0 }
 0x21b   :  { %7367 = vmatmul.mubr.msk.bf16.gmra.mrb[124].mxu1 %vm336_vm0, %v1571_v8  ;;  %v1573_v18 = vsel %vm1558_vm4, %v1570_v16, %v1572_v56  ;;  %v2278_v16 = vrot.slane %v8801_v63, 2 }
 0x21c   :  { %7529 = vmatmul.mubr.msk.bf16.gmra.mrb[188].mxu0 %vm336_vm0, %v2275_v40  ;;  %7370 = vmatprep.mubr.msk.bf16.mxu1 %vm8225_vm1, %v11243_v33 }
 0x21d   :  { %7532 = vmatprep.mubr.msk.bf16.mxu0 %vm8225_vm1, %v11243_v33  ;;  %v2277_v33 = vsel %vm1320_vm3, %v2274_v7, %v2276_v58 }
 0x21e   :  { %v9124_v52 = vpop.f32.mrb[20].mxu1 }
 0x21f   :  { %v9127_v44 = vpop.f32.mrb[84].mxu0  ;;  %v7206_v50 = vpop.f32.mrb[21].mxu1 }
 0x220   :  { %v7314_v8 = vpop.f32.mrb[85].mxu0  ;;  %v9130_v38 = vpop.f32.mrb[22].mxu1 }
 0x221   :  { %v9132_v22 = vpop.f32.mrb[86].mxu0  ;;  %v7207_v40 = vpop.f32.mrb[23].mxu1  ;;  %v1574_v8 = vrot.slane %v8765_v60, 3 }
 0x222   :  { %v7315_v49 = vpop.f32.mrb[87].mxu0 }
 0x223   :  { %7371 = vmatmul.mubr.msk.bf16.gmra.mrb[128].mxu1 %vm336_vm0, %v1573_v18  ;;  %v1575_v17 = vsel %vm1558_vm4, %v1572_v56, %v1574_v8  ;;  %v2280_v56 = vrot.slane %v8823_v34, 2 }
 0x224   :  { %7533 = vmatmul.mubr.msk.bf16.gmra.mrb[192].mxu0 %vm336_vm0, %v2277_v33  ;;  %7374 = vmatprep.mubr.msk.bf16.mxu1 %vm8225_vm1, %v11290_v27 }
 0x225   :  { %7536 = vmatprep.mubr.msk.bf16.mxu0 %vm8225_vm1, %v11290_v27 }
 0x226   :  { %v9142_v50 = vpop.f32.mrb[24].mxu1 }
 0x227   :  { %11291 = vst [vmem:[#allocation19_spill] sm:$0xff] %v9142_v50  ;;  %v9145_v40 = vpop.f32.mrb[88].mxu0  ;;  %v7210_v49 = vpop.f32.mrb[25].mxu1  ;;  %v2279_v50 = vsel %vm1320_vm3, %v2276_v58, %v2278_v16 }
 0x228   :  { %11292 = vst [vmem:[#allocation20_spill] sm:$0xff] %v9145_v40  ;;  %v7318_v18 = vpop.f32.mrb[89].mxu0  ;;  %v9148_v4 = vpop.f32.mrb[26].mxu1 }
 0x229   :  { %v9150_v7 = vpop.f32.mrb[90].mxu0  ;;  %v7211_v33 = vpop.f32.mrb[27].mxu1  ;;  %v1576_v18 = vrot.slane %v8785_v29, 3 }
 0x22a   :  { %11293 = vst [vmem:[#allocation21_spill] sm:$0xff] %v9150_v7  ;;  %v7319_v5 = vpop.f32.mrb[91].mxu0 }
 0x22b   :  { %7375 = vmatmul.mubr.msk.bf16.gmra.mrb[132].mxu1 %vm336_vm0, %v1575_v17  ;;  %v1577_v40 = vsel %vm1558_vm4, %v1574_v8, %v1576_v18  ;;  %v2282_v8 = vrot.slane %v8848_v11, 2 }
 0x22c   :  { %7537 = vmatmul.mubr.msk.bf16.gmra.mrb[196].mxu0 %vm336_vm0, %v2279_v50  ;;  %7378 = vmatprep.mubr.msk.bf16.mxu1 %vm8225_vm1, %v11290_v27 }
 0x22d   :  { %7540 = vmatprep.mubr.msk.bf16.mxu0 %vm8225_vm1, %v11290_v27 }
 0x22e   :  { %v9160_v49 = vpop.f32.mrb[28].mxu1 }
 0x22f   :  { %11294 = vst [vmem:[#allocation22_spill] sm:$0xff] %v9160_v49  ;;  %v9163_v33 = vpop.f32.mrb[92].mxu0  ;;  %v7214_v5 = vpop.f32.mrb[29].mxu1  ;;  %v2281_v49 = vsel %vm1320_vm3, %v2278_v16, %v2280_v56 }
 0x230   :  { %11295 = vst [vmem:[#allocation23_spill] sm:$0xff] %v9163_v33  ;;  %v7322_v17 = vpop.f32.mrb[93].mxu0  ;;  %v9166_v63 = vpop.f32.mrb[30].mxu1 }
 0x231   :  { %v9168_v58 = vpop.f32.mrb[94].mxu0  ;;  %v7215_v50 = vpop.f32.mrb[31].mxu1  ;;  %v1578_v17 = vrot.slane %v8805_v0, 3 }
 0x232   :  { %11296 = vst [vmem:[#allocation24_spill] sm:$0xff] %v9168_v58  ;;  %v7323_v7 = vpop.f32.mrb[95].mxu0 }
 0x233   :  { %7379 = vmatmul.mubr.msk.bf16.gmra.mrb[136].mxu1 %vm336_vm0, %v1577_v40  ;;  %v1579_v33 = vsel %vm1558_vm4, %v1576_v18, %v1578_v17 }
 0x234   :  { %7541 = vmatmul.mubr.msk.bf16.gmra.mrb[200].mxu0 %vm336_vm0, %v2281_v49  ;;  %7382 = vmatprep.mubr.msk.bf16.mxu1 %vm8225_vm1, %v11290_v27 }
 0x235   :  { %7544 = vmatprep.mubr.msk.bf16.mxu0 %vm8225_vm1, %v11290_v27 }
 0x236   :  { %v9178_v5 = vpop.f32.mrb[32].mxu1 }
 0x237   :  { %11297 = vst [vmem:[#allocation25_spill] sm:$0xff] %v9178_v5  ;;  %v9181_v50 = vpop.f32.mrb[96].mxu0  ;;  %v7218_v7 = vpop.f32.mrb[33].mxu1  ;;  %v2283_v5 = vsel %vm1320_vm3, %v2280_v56, %v2282_v8 }
 0x238   :  { %11298 = vst [vmem:[#allocation26_spill] sm:$0xff] %v9181_v50  ;;  %v7326_v40 = vpop.f32.mrb[97].mxu0  ;;  %v9184_v34 = vpop.f32.mrb[34].mxu1  ;;  %v1553_v50 = vpack.c.bf16 %v8834_v51, %v8834_v51 }
 0x239   :  { %v9186_v16 = vpop.f32.mrb[98].mxu0  ;;  %v7219_v49 = vpop.f32.mrb[35].mxu1  ;;  %v1580_v40 = vrot.slane %v8830_v43, 3 }
 0x23a   :  { %11299 = vst [vmem:[#allocation27_spill] sm:$0xff] %v9186_v16  ;;  %v7327_v58 = vpop.f32.mrb[99].mxu0 }
 0x23b   :  { %7383 = vmatmul.mubr.msk.bf16.gmra.mrb[140].mxu1 %vm336_vm0, %v1579_v33  ;;  %v1581_v16 = vsel %vm1558_vm4, %v1578_v17, %v1580_v40  ;;  %v1582_v17 = vrot.slane %v1553_v50, 3 }
 0x23c   :  { %7545 = vmatmul.mubr.msk.bf16.gmra.mrb[204].mxu0 %vm336_vm0, %v2283_v5  ;;  %7386 = vmatprep.mubr.msk.bf16.mxu1 %vm8225_vm1, %v11290_v27 }
 0x23d   :  { %7548 = vmatprep.mubr.msk.bf16.mxu0 %vm8225_vm1, %v11290_v27 }
 0x23e   :  { %v9196_v7 = vpop.f32.mrb[36].mxu1 }
 0x23f   :  { %11300 = vst [vmem:[#allocation28_spill] sm:$0xff] %v9196_v7  ;;  %v9199_v49 = vpop.f32.mrb[100].mxu0  ;;  %v7222_v58 = vpop.f32.mrb[37].mxu1  ;;  %v11301_v7 = vrot.slane %v8870_v31, 2 }
 0x240   :  { %v7330_v18 = vpop.f32.mrb[101].mxu0  ;;  %v9201_v11 = vpop.f32.mrb[38].mxu1 }
 0x241   :  { %v9203_v33 = vpop.f32.mrb[102].mxu0  ;;  %v7223_v56 = vpop.f32.mrb[39].mxu1  ;;  %v2285_v43 = vsel %vm1320_vm3, %v2282_v8, %v11301_v7 }
 0x242   :  { %v7331_v5 = vpop.f32.mrb[103].mxu0 }
 0x243   :  { %7387 = vmatmul.mubr.msk.bf16.gmra.mrb[144].mxu1 %vm336_vm0, %v1581_v16 }
 0x244   :  { %7549 = vmatmul.mubr.msk.bf16.gmra.mrb[208].mxu0 %vm336_vm0, %v2285_v43  ;;  %7390 = vmatprep.mubr.msk.bf16.mxu1 %vm8225_vm1, %v11290_v27  ;;  %v1583_v43 = vsel %vm1558_vm4, %v1580_v40, %v1582_v17 }
 0x245   :  { %7552 = vmatprep.mubr.msk.bf16.mxu0 %vm8225_vm1, %v11290_v27 }
 0x246   :  { %v9217_v58 = vpop.f32.mrb[40].mxu1 }
 0x247   :  { %v9219_v18 = vpop.f32.mrb[104].mxu0  ;;  %v7226_v56 = vpop.f32.mrb[41].mxu1 }
 0x248   :  { %11302 = vst [vmem:[#allocation29_spill] sm:$0xff] %v9219_v18  ;;  %v7334_v5 = vpop.f32.mrb[105].mxu0  ;;  %v9221_v16 = vpop.f32.mrb[42].mxu1 }
 0x249   :  { %v9223_v31 = vpop.f32.mrb[106].mxu0  ;;  %v7227_v8 = vpop.f32.mrb[43].mxu1 }
 0x24a   :  { %11303 = vst [vmem:[#allocation30_spill] sm:$0xff] %v9223_v31  ;;  %v7335_v7 = vpop.f32.mrb[107].mxu0 }
 0x24b   :  { %7391 = vmatmul.mubr.msk.bf16.gmra.mrb[148].mxu1 %vm336_vm0, %v1583_v43 }
 0x24c   :  { %7553 = vmatmul.mubr.msk.bf16.gmra.mrb[212].mxu0 %vm336_vm0, %v8895_v48  ;;  %7394 = vmatprep.mubr.msk.bf16.mxu1 %vm8225_vm1, %v11290_v27  ;;  %v11308_v48 = vrot.slane %v8878_v35, 2 }
 0x24d   :  { %7556 = vmatprep.mubr.msk.bf16.mxu0 %vm8225_vm1, %v11290_v27 }
 0x24e   :  { %v9233_v50 = vpop.f32.mrb[44].mxu1 }
 0x24f   :  { %11304 = vst [vmem:[#allocation31_spill] sm:$0xff] %v9233_v50  ;;  %v9235_v56 = vpop.f32.mrb[108].mxu0  ;;  %v7230_v5 = vpop.f32.mrb[45].mxu1 }
 0x250   :  { %11305 = vst [vmem:[#allocation32_spill] sm:$0xff] %v9235_v56  ;;  %v7338_v8 = vpop.f32.mrb[109].mxu0  ;;  %v9237_v7 = vpop.f32.mrb[46].mxu1 }
 0x251   :  { %11306 = vst [vmem:[#allocation33_spill] sm:$0xff] %v9237_v7  ;;  %v9239_v40 = vpop.f32.mrb[110].mxu0  ;;  %v7231_v43 = vpop.f32.mrb[47].mxu1  ;;  %v2027_v8 = vrot.slane %v8641_v12, 1 }
 0x252   :  { %11307 = vst [vmem:[#allocation34_spill] sm:$0xff] %v9239_v40  ;;  %v7339_v31 = vpop.f32.mrb[111].mxu0 }
 0x253   :  { %7395 = vmatmul.mubr.msk.bf16.gmra.mrb[152].mxu1 %vm336_vm0, %v1582_v17  ;;  %v2026_v17 = vrot.slane %v8615_v47, 1 }
 0x254   :  { %7557 = vmatmul.mubr.msk.bf16.gmra.mrb[216].mxu0 %vm336_vm0, %v11308_v48  ;;  %7454 = vmatprep.mubr.msk.bf16.mxu1 %vm8225_vm1, %v11290_v27  ;;  %v8044_v48 = vld [vmem:[%s11273_s3 + $0x38] sm:$0xff]  }
 0x255   :  { %7616 = vmatprep.mubr.msk.bf16.mxu0 %vm8225_vm1, %v11290_v27  ;;  %v2028_v18 = vsel %vm930_vm2, %v2026_v17, %v2027_v8 }
 0x256   :  { %v9249_v5 = vpop.f32.mrb[48].mxu1 }
 0x257   :  { %v9252_v56 = vpop.f32.mrb[112].mxu0  ;;  %v7234_v43 = vpop.f32.mrb[49].mxu1 }
 0x258   :  { %11309 = vst [vmem:[#allocation35_spill] sm:$0xff] %v9252_v56  ;;  %v7342_v31 = vpop.f32.mrb[113].mxu0  ;;  %v1134_v40 = vpop.f32.mrb[50].mxu1 }
 0x259   :  { %v1524_v35 = vpop.f32.mrb[114].mxu0  ;;  %v7235_v7 = vpop.f32.mrb[51].mxu1  ;;  %v2029_v40 = vrot.slane %v8661_v37, 1 }
 0x25a   :  { %v7343_v50 = vpop.f32.mrb[115].mxu0 }
 0x25b   :  { %7455 = vmatmul.mubr.msk.bf16.vlgmr.msra.gmra.mrb[156].mxu1 %vm336_vm0, %v2028_v18  ;;  %v2030_v12 = vsel %vm930_vm2, %v2027_v8, %v2029_v40 }
 0x25c   :  { %7617 = vmatmul.mubr.msk.bf16.vlgmr.msra.gmra.mrb[220].mxu0 %vm336_vm0, %v8645_v14  ;;  %7561 = vmatpush3.bf16.msra.mxu1 %v8044_v48 }
 0x25d   :  { %7458 = vmatprep.mubr.msk.bf16.mxu1 %vm8225_vm1, %v11290_v27  ;;  %7620 = vmatprep.mubr.msk.bf16.mxu0 %vm8225_vm1, %v11290_v27 }
 0x25e   :  { %v1216_v47 = vpop.f32.mrb[52].mxu1  ;;  %7668 = vmatprep.subr.bf16.mxu1 %v11290_v27 }
 0x25f   :  { %v1217_v35 = vadd.f32 %v1216_v47, %v9032_v24  ;;  %v9269_v50 = vpop.f32.mrb[116].mxu0  ;;  %v7240_v18 = vpop.f32.mrb[53].mxu1 }
 0x260   :  { %v7402_v7 = vpop.f32.mrb[117].mxu0  ;;  %v1219_v43 = vpop.f32.mrb[54].mxu1 }
 0x261   :  { %v1220_v14 = vadd.f32 %v1219_v43, %v9040_v13  ;;  %v9272_v31 = vpop.f32.mrb[118].mxu0  ;;  %v7241_v17 = vpop.f32.mrb[55].mxu1  ;;  %v9275_v48 = vadd.f32 %v9036_v6, %v1217_v35  ;;  %v2031_v6 = vrot.slane %v8681_v1, 1 }
 0x262   :  { %v7403_v56 = vpop.f32.mrb[119].mxu0 }
 0x263   :  { %7459 = vmatmul.mubr.msk.bf16.gmra.mrb[160].mxu1 %vm336_vm0, %v2030_v12  ;;  %v9280_v24 = vadd.f32 %v9042_v41, %v1220_v14  ;;  %v2032_v14 = vsel %vm930_vm2, %v2029_v40, %v2031_v6 }
 0x264   :  { %7621 = vmatmul.mubr.msk.bf16.gmra.mrb[224].mxu0 %vm336_vm0, %v8665_v39  ;;  %7462 = vmatprep.mubr.msk.bf16.mxu1 %vm8225_vm1, %v11290_v27 }
 0x265   :  { %7624 = vmatprep.mubr.msk.bf16.mxu0 %vm8225_vm1, %v11290_v27 }
 0x266   :  { %v1224_v13 = vpop.f32.mrb[56].mxu1 }
 0x267   :  { %v1225_v56 = vadd.f32 %v1224_v13, %v9052_v21  ;;  %v9290_v8 = vpop.f32.mrb[120].mxu0  ;;  %v7244_v12 = vpop.f32.mrb[57].mxu1 }
 0x268   :  { %v7406_v47 = vpop.f32.mrb[121].mxu0  ;;  %v1227_v41 = vpop.f32.mrb[58].mxu1 }
 0x269   :  { %v1228_v35 = vadd.f32 %v1227_v41, %v9058_v55  ;;  %v9293_v18 = vpop.f32.mrb[122].mxu0  ;;  %v7245_v39 = vpop.f32.mrb[59].mxu1  ;;  %v9296_v7 = vadd.f32 %v9055_v45, %v1225_v56  ;;  %v2033_v45 = vrot.slane %v8701_v28, 1 }
 0x26a   :  { %v7407_v43 = vpop.f32.mrb[123].mxu0 }
 0x26b   :  { %7463 = vmatmul.mubr.msk.bf16.gmra.mrb[164].mxu1 %vm336_vm0, %v2032_v14  ;;  %v9301_v21 = vadd.f32 %v9060_v53, %v1228_v35  ;;  %v2034_v39 = vsel %vm930_vm2, %v2031_v6, %v2033_v45 }
 0x26c   :  { %7625 = vmatmul.mubr.msk.bf16.gmra.mrb[228].mxu0 %vm336_vm0, %v8685_v3  ;;  %7466 = vmatprep.mubr.msk.bf16.mxu1 %vm8225_vm1, %v11290_v27 }
 0x26d   :  { %7628 = vmatprep.mubr.msk.bf16.mxu0 %vm8225_vm1, %v11290_v27 }
 0x26e   :  { %v1232_v55 = vpop.f32.mrb[60].mxu1 }
 0x26f   :  { %v1233_v17 = vadd.f32 %v1232_v55, %v9070_v54  ;;  %v9311_v40 = vpop.f32.mrb[124].mxu0  ;;  %v7248_v13 = vpop.f32.mrb[61].mxu1 }
 0x270   :  { %v7410_v56 = vpop.f32.mrb[125].mxu0  ;;  %v1235_v53 = vpop.f32.mrb[62].mxu1 }
 0x271   :  { %v1236_v12 = vadd.f32 %v1235_v53, %v9076_v19  ;;  %v9314_v47 = vpop.f32.mrb[126].mxu0  ;;  %v7249_v3 = vpop.f32.mrb[63].mxu1  ;;  %v9317_v41 = vadd.f32 %v9073_v9, %v1233_v17  ;;  %v2035_v9 = vrot.slane %v8721_v59, 1 }
 0x272   :  { %v7411_v35 = vpop.f32.mrb[127].mxu0 }
 0x273   :  { %7467 = vmatmul.mubr.msk.bf16.gmra.mrb[168].mxu1 %vm336_vm0, %v2034_v39  ;;  %v9322_v54 = vadd.f32 %v9078_v10, %v1236_v12  ;;  %v2036_v12 = vsel %vm930_vm2, %v2033_v45, %v2035_v9 }
 0x274   :  { %7629 = vmatmul.mubr.msk.bf16.gmra.mrb[232].mxu0 %vm336_vm0, %v8705_v30  ;;  %7470 = vmatprep.mubr.msk.bf16.mxu1 %vm8225_vm1, %v11290_v27 }
 0x275   :  { %7632 = vmatprep.mubr.msk.bf16.mxu0 %vm8225_vm1, %v11290_v27 }
 0x276   :  { %v1240_v19 = vpop.f32.mrb[64].mxu1 }
 0x277   :  { %v1241_v43 = vadd.f32 %v1240_v19, %v9088_v32  ;;  %v9332_v6 = vpop.f32.mrb[128].mxu0  ;;  %v7252_v14 = vpop.f32.mrb[65].mxu1 }
 0x278   :  { %v7414_v55 = vpop.f32.mrb[129].mxu0  ;;  %v1243_v10 = vpop.f32.mrb[66].mxu1 }
 0x279   :  { %v1244_v17 = vadd.f32 %v1243_v10, %v9094_v20  ;;  %v9335_v13 = vpop.f32.mrb[130].mxu0  ;;  %v7253_v30 = vpop.f32.mrb[67].mxu1  ;;  %v9338_v56 = vadd.f32 %v9091_v62, %v1241_v43  ;;  %v2037_v62 = vrot.slane %v8741_v23, 1 }
 0x27a   :  { %v7415_v53 = vpop.f32.mrb[131].mxu0 }
 0x27b   :  { %7471 = vmatmul.mubr.msk.bf16.gmra.mrb[172].mxu1 %vm336_vm0, %v2036_v12  ;;  %v9343_v32 = vadd.f32 %v9096_v46, %v1244_v17  ;;  %v2038_v10 = vsel %vm930_vm2, %v2035_v9, %v2037_v62 }
 0x27c   :  { %7633 = vmatmul.mubr.msk.bf16.gmra.mrb[236].mxu0 %vm336_vm0, %v8725_v61  ;;  %7474 = vmatprep.mubr.msk.bf16.mxu1 %vm8225_vm1, %v11290_v27 }
 0x27d   :  { %7636 = vmatprep.mubr.msk.bf16.mxu0 %vm8225_vm1, %v11290_v27 }
 0x27e   :  { %v1248_v20 = vpop.f32.mrb[68].mxu1 }
 0x27f   :  { %v1249_v3 = vadd.f32 %v1248_v20, %v9106_v15  ;;  %v9353_v45 = vpop.f32.mrb[132].mxu0  ;;  %v7256_v35 = vpop.f32.mrb[69].mxu1 }
 0x280   :  { %v7418_v39 = vpop.f32.mrb[133].mxu0  ;;  %v1251_v46 = vpop.f32.mrb[70].mxu1 }
 0x281   :  { %v1252_v19 = vadd.f32 %v1251_v46, %v9112_v42  ;;  %v9356_v43 = vpop.f32.mrb[134].mxu0  ;;  %v7257_v61 = vpop.f32.mrb[71].mxu1  ;;  %v9359_v14 = vadd.f32 %v9109_v36, %v1249_v3  ;;  %v2039_v36 = vrot.slane %v8761_v57, 1  ;;  %v11310_v46 = vld [vmem:[#allocation19_spill] sm:$0xff] }
 0x282   :  { %v7419_v55 = vpop.f32.mrb[135].mxu0 }
 0x283   :  { %7475 = vmatmul.mubr.msk.bf16.gmra.mrb[176].mxu1 %vm336_vm0, %v2038_v10  ;;  %v9364_v15 = vadd.f32 %v9114_v2, %v1252_v19  ;;  %v2040_v39 = vsel %vm930_vm2, %v2037_v62, %v2039_v36 }
 0x284   :  { %7637 = vmatmul.mubr.msk.bf16.gmra.mrb[240].mxu0 %vm336_vm0, %v8745_v26  ;;  %7478 = vmatprep.mubr.msk.bf16.mxu1 %vm8225_vm1, %v11290_v27 }
 0x285   :  { %7640 = vmatprep.mubr.msk.bf16.mxu0 %vm8225_vm1, %v11290_v27 }
 0x286   :  { %v1256_v42 = vpop.f32.mrb[72].mxu1 }
 0x287   :  { %v1257_v17 = vadd.f32 %v1256_v42, %v9124_v52  ;;  %v9374_v9 = vpop.f32.mrb[136].mxu0  ;;  %v7260_v30 = vpop.f32.mrb[73].mxu1 }
 0x288   :  { %v7422_v53 = vpop.f32.mrb[137].mxu0  ;;  %v1259_v2 = vpop.f32.mrb[74].mxu1 }
 0x289   :  { %v1260_v12 = vadd.f32 %v1259_v2, %v9130_v38  ;;  %v9377_v20 = vpop.f32.mrb[138].mxu0  ;;  %v7261_v26 = vpop.f32.mrb[75].mxu1  ;;  %v9380_v3 = vadd.f32 %v9127_v44, %v1257_v17  ;;  %v2041_v44 = vrot.slane %v8781_v25, 1  ;;  %v11311_v17 = vld [vmem:[#allocation20_spill] sm:$0xff] }
 0x28a   :  { %v7423_v35 = vpop.f32.mrb[139].mxu0 }
 0x28b   :  { %7479 = vmatmul.mubr.msk.bf16.gmra.mrb[180].mxu1 %vm336_vm0, %v2040_v39  ;;  %v9385_v52 = vadd.f32 %v9132_v22, %v1260_v12  ;;  %v2042_v2 = vsel %vm930_vm2, %v2039_v36, %v2041_v44  ;;  %v11312_v12 = vld [vmem:[#allocation21_spill] sm:$0xff]  ;;  %v11313_v35 = vld [vmem:[#allocation7_spill] sm:$0xff] }
 0x28c   :  { %7641 = vmatmul.mubr.msk.bf16.gmra.mrb[244].mxu0 %vm336_vm0, %v8765_v60  ;;  %7482 = vmatprep.mubr.msk.bf16.mxu1 %vm8225_vm1, %v11290_v27  ;;  %v2043_v39 = vrot.slane %v11313_v35, 1 }
 0x28d   :  { %7644 = vmatprep.mubr.msk.bf16.mxu0 %vm8225_vm1, %v11290_v27 }
 0x28e   :  { %v1264_v38 = vpop.f32.mrb[76].mxu1 }
 0x28f   :  { %v1265_v19 = vadd.f32 %v1264_v38, %v11310_v46  ;;  %v9395_v62 = vpop.f32.mrb[140].mxu0  ;;  %v7264_v61 = vpop.f32.mrb[77].mxu1  ;;  %v11314_v38 = vld [vmem:[#allocation22_spill] sm:$0xff] }
 0x290   :  { %v7426_v55 = vpop.f32.mrb[141].mxu0  ;;  %v1267_v22 = vpop.f32.mrb[78].mxu1 }
 0x291   :  { %v1268_v10 = vadd.f32 %v1267_v22, %v9148_v4  ;;  %v9398_v42 = vpop.f32.mrb[142].mxu0  ;;  %v7265_v60 = vpop.f32.mrb[79].mxu1  ;;  %v9401_v30 = vadd.f32 %v11311_v17, %v1265_v19 }
 0x292   :  { %v7427_v53 = vpop.f32.mrb[143].mxu0  ;;  %v11317_v60 = vld [vmem:[#allocation23_spill] sm:$0xff] }
 0x293   :  { %7483 = vmatmul.mubr.msk.bf16.gmra.mrb[184].mxu1 %vm336_vm0, %v2042_v2  ;;  %v9406_v26 = vadd.f32 %v11312_v12, %v1268_v10  ;;  %v2044_v2 = vsel %vm930_vm2, %v2041_v44, %v2043_v39  ;;  %v11318_v12 = vld [vmem:[#allocation24_spill] sm:$0xff] }
 0x294   :  { %7645 = vmatmul.mubr.msk.bf16.gmra.mrb[248].mxu0 %vm336_vm0, %v8785_v29  ;;  %7486 = vmatprep.mubr.msk.bf16.mxu1 %vm8225_vm1, %v11290_v27 }
 0x295   :  { %7648 = vmatprep.mubr.msk.bf16.mxu0 %vm8225_vm1, %v11290_v27 }
 0x296   :  { %v1272_v4 = vpop.f32.mrb[80].mxu1 }
 0x297   :  { %v1273_v46 = vadd.f32 %v1272_v4, %v11314_v38  ;;  %v9416_v36 = vpop.f32.mrb[144].mxu0  ;;  %v7268_v19 = vpop.f32.mrb[81].mxu1  ;;  %v11320_v38 = vld [vmem:[#allocation8_spill] sm:$0xff] }
 0x298   :  { %11315 = vst [vmem:[#allocation19_spill] sm:$0xff] %v9416_v36  ;;  %v7430_v61 = vpop.f32.mrb[145].mxu0  ;;  %v1275_v55 = vpop.f32.mrb[82].mxu1  ;;  %v11321_v19 = vld [vmem:[#allocation25_spill] sm:$0xff] }
 0x299   :  { %v1276_v22 = vadd.f32 %v1275_v55, %v9166_v63  ;;  %v9419_v10 = vpop.f32.mrb[146].mxu0  ;;  %v7269_v29 = vpop.f32.mrb[83].mxu1  ;;  %v9422_v17 = vadd.f32 %v11317_v60, %v1273_v46  ;;  %v2045_v46 = vrot.slane %v11320_v38, 1 }
 0x29a   :  { %11316 = vst [vmem:[#allocation20_spill] sm:$0xff] %v9419_v10  ;;  %v7431_v53 = vpop.f32.mrb[147].mxu0 }
 0x29b   :  { %7487 = vmatmul.mubr.msk.bf16.gmra.mrb[188].mxu1 %vm336_vm0, %v2044_v2  ;;  %v9427_v4 = vadd.f32 %v11318_v12, %v1276_v22  ;;  %v11324_v2 = vld [vmem:[#allocation26_spill] sm:$0xff]  ;;  %v2046_v36 = vsel %vm930_vm2, %v2043_v39, %v2045_v46 }
 0x29c   :  { %7649 = vmatmul.mubr.msk.bf16.gmra.mrb[252].mxu0 %vm336_vm0, %v8805_v0  ;;  %7490 = vmatprep.mubr.msk.bf16.mxu1 %vm8225_vm1, %v11290_v27 }
 0x29d   :  { %11319 = vst [vmem:[#allocation21_spill] sm:$0xff] %v9427_v4  ;;  %7652 = vmatprep.mubr.msk.bf16.mxu0 %vm8225_vm1, %v11290_v27  ;;  %v11326_v4 = vld [vmem:[#allocation27_spill] sm:$0xff] }
 0x29e   :  { %v1280_v63 = vpop.f32.mrb[84].mxu1 }
 0x29f   :  { %v1281_v61 = vadd.f32 %v1280_v63, %v11321_v19  ;;  %v9437_v44 = vpop.f32.mrb[148].mxu0  ;;  %v7272_v55 = vpop.f32.mrb[85].mxu1  ;;  %v11328_v19 = vld [vmem:[#allocation9_spill] sm:$0xff] }
 0x2a0   :  { %11322 = vst [vmem:[#allocation7_spill] sm:$0xff] %v9437_v44  ;;  %v7434_v29 = vpop.f32.mrb[149].mxu0  ;;  %v1283_v22 = vpop.f32.mrb[86].mxu1 }
 0x2a1   :  { %v1284_v60 = vadd.f32 %v1283_v22, %v9184_v34  ;;  %v9440_v53 = vpop.f32.mrb[150].mxu0  ;;  %v7273_v0 = vpop.f32.mrb[87].mxu1  ;;  %v9443_v12 = vadd.f32 %v11324_v2, %v1281_v61  ;;  %v8196_v34 = vld [vmem:[%s11274_s27] ss:$0 sm:$0xff] }
 0x2a2   :  { %11323 = vst [vmem:[#allocation22_spill] sm:$0xff] %v9440_v53  ;;  %v7435_v10 = vpop.f32.mrb[151].mxu0 }
 0x2a3   :  { %11325 = vst [vmem:[#allocation23_spill] sm:$0xff] %v9443_v12  ;;  %7491 = vmatmul.mubr.msk.bf16.gmra.mrb[192].mxu1 %vm336_vm0, %v2046_v36  ;;  %v9448_v63 = vadd.f32 %v11326_v4, %v1284_v60  ;;  %v11329_v10 = vld [vmem:[#allocation12_spill] sm:$0xff]  ;;  %v11330_v36 = vld [vmem:[#allocation11_spill] sm:$0xff] }
 0x2a4   :  { %7653 = vmatmul.mubr.msk.bf16.gmra.mrb[0].mxu0 %vm336_vm0, %v11328_v19  ;;  %7494 = vmatprep.mubr.msk.bf16.mxu1 %vm8225_vm1, %v11290_v27  ;;  %v540_v39 = vadd.f32 %v8196_v34, %v11329_v10  ;;  %v2047_v55 = vrot.slane %v11330_v36, 1  ;;  %v11331_v4 = vld [vmem:[#allocation28_spill] sm:$0xff] }
 0x2a5   :  { %11327 = vst [vmem:[#allocation24_spill] sm:$0xff] %v9448_v63  ;;  %7656 = vmatprep.mubr.msk.bf16.mxu0 %vm8225_vm1, %v11290_v27 }
 0x2a6   :  { %v1288_v61 = vpop.f32.mrb[88].mxu1  ;;  %v575_v12 = vmax.f32 %v540_v39, 0.0  ;;  %v2048_v10 = vsel %vm930_vm2, %v2045_v46, %v2047_v55 }
 0x2a7   :  { %v1289_v29 = vadd.f32 %v1288_v61, %v11331_v4  ;;  %v9462_v22 = vpop.f32.mrb[152].mxu0  ;;  %v7276_v60 = vpop.f32.mrb[89].mxu1  ;;  %v11332_v4 = vld [vmem:[#allocation10_spill] sm:$0xff] }
 0x2a8   :  { %v7438_v0 = vpop.f32.mrb[153].mxu0  ;;  %v1291_v2 = vpop.f32.mrb[90].mxu1  ;;  %v11333_v60 = vpack.c.bf16 %v11332_v4, %v8834_v51  ;;  %v11337_v4 = vld [vmem:[#allocation29_spill] sm:$0xff] }
 0x2a9   :  { %v1292_v19 = vadd.f32 %v1291_v2, %v9201_v11  ;;  %v9465_v53 = vpop.f32.mrb[154].mxu0  ;;  %v7277_v44 = vpop.f32.mrb[91].mxu1  ;;  %v9468_v63 = vadd.f32 %v9199_v49, %v1289_v29  ;;  %v8197_v11 = vld [vmem:[%s11275_s4] ss:$0 sm:$0xff]  ;;  %s11372_s4 = sld [smem:[#allocation45_spill]] }
 0x2aa   :  { %v7439_v34 = vpop.f32.mrb[155].mxu0  ;;  %v613_v49 = vmul.f32 %v8197_v11, %v575_v12  ;;  %v11334_v44 = vld [vmem:[#allocation18_spill] sm:$0xff]  ;;  %v8198_v12 = vld [vmem:[%s11276_s7] ss:$0 sm:$0xff] }
 0x2ab   :  { %7495 = vmatmul.mubr.msk.bf16.gmra.mrb[196].mxu1 %vm336_vm0, %v2048_v10  ;;  %v9473_v61 = vadd.f32 %v9203_v33, %v1292_v19  ;;  %v2049_v33 = vrot.slane %v11334_v44, 1 }
 0x2ac   :  { %7657 = vmatmul.mubr.msk.bf16.gmra.mrb[4].mxu0 %vm336_vm0, %v11333_v60  ;;  %7498 = vmatprep.mubr.msk.bf16.mxu1 %vm8225_vm1, %v11290_v27  ;;  %v651_v11 = vadd.f32 %v8198_v12, %v613_v49 }
 0x2ad   :  { %7660 = vmatprep.mubr.msk.bf16.mxu0 %vm8225_vm1, %v11290_v27 }
 0x2ae   :  { %v1296_v46 = vpop.f32.mrb[92].mxu1 }
 0x2af   :  { %v1297_v39 = vadd.f32 %v1296_v46, %v9217_v58  ;;  %v9488_v29 = vpop.f32.mrb[156].mxu0  ;;  %v7280_v51 = vpop.f32.mrb[93].mxu1  ;;  %v2050_v58 = vsel %vm930_vm2, %v2047_v55, %v2049_v33  ;;  %v11339_v46 = vld [vmem:[#allocation30_spill] sm:$0xff]  ;;  %v11344_v55 = vld [vmem:[#allocation31_spill] sm:$0xff] }
 0x2b0   :  { %11335 = vst [vmem:[#allocation8_spill] sm:$0xff] %v9488_v29  ;;  %v7442_v0 = vpop.f32.mrb[157].mxu0  ;;  %v1299_v2 = vpop.f32.mrb[94].mxu1 }
 0x2b1   :  { %v1300_v19 = vadd.f32 %v1299_v2, %v9221_v16  ;;  %v9491_v34 = vpop.f32.mrb[158].mxu0  ;;  %v7281_v10 = vpop.f32.mrb[95].mxu1  ;;  %v9494_v60 = vadd.f32 %v11337_v4, %v1297_v39  ;;  %v11341_v16 = vld [vmem:[#allocation14_spill] sm:$0xff]  ;;  %v11342_v0 = vld [vmem:[#allocation13_spill] sm:$0xff] }
 0x2b2   :  { %11336 = vst [vmem:[#allocation25_spill] sm:$0xff] %v9491_v34  ;;  %v7443_v44 = vpop.f32.mrb[159].mxu0  ;;  %v11343_v2 = vpack.c.bf16 %v11341_v16, %v11342_v0  ;;  %v867_v39 = vpop.permute.xlu0 %866  ;;  %v11346_v34 = vld [vmem:[#allocation32_spill] sm:$0xff] }
 0x2b3   :  { %11338 = vst [vmem:[#allocation26_spill] sm:$0xff] %v9494_v60  ;;  %7499 = vmatmul.mubr.msk.bf16.gmra.mrb[200].mxu1 %vm336_vm0, %v2050_v58  ;;  %v9502_v51 = vadd.f32 %v11339_v46, %v1300_v19  ;;  %v899_v49 = vmul.f32 %v867_v39, %v651_v11  ;;  %v11345_v46 = vld [vmem:[#allocation33_spill] sm:$0xff]  ;;  %v11347_v11 = vld [vmem:[#allocation34_spill] sm:$0xff] }
 0x2b4   :  { %7661 = vmatmul.mubr.msk.bf16.gmra.mrb[8].mxu0 %vm336_vm0, %v11343_v2  ;;  %7502 = vmatprep.mubr.msk.bf16.mxu1 %vm8225_vm1, %v11290_v27 }
 0x2b5   :  { %11340 = vst [vmem:[#allocation27_spill] sm:$0xff] %v9502_v51  ;;  %7664 = vmatprep.mubr.msk.bf16.mxu0 %vm8225_vm1, %v11290_v27  ;;  %v2729_v51 = vpack.c.bf16 %v899_v49, %v899_v49 }
 0x2b6   :  { %v1304_v10 = vpop.f32.mrb[96].mxu1 }
 0x2b7   :  { %v1305_v4 = vadd.f32 %v1304_v10, %v11344_v55  ;;  %v9513_v12 = vpop.f32.mrb[160].mxu0  ;;  %v7284_v19 = vpop.f32.mrb[97].mxu1  ;;  %v2497_v55 = vrot.slane %v8661_v37, 3 }
 0x2b8   :  { %v7446_v44 = vpop.f32.mrb[161].mxu0  ;;  %v1307_v58 = vpop.f32.mrb[98].mxu1  ;;  %v11348_v19 = vld [vmem:[#allocation6_spill] sm:$0xff] }
 0x2b9   :  { %v1308_v16 = vadd.f32 %v1307_v58, %v11345_v46  ;;  %v9516_v0 = vpop.f32.mrb[162].mxu0  ;;  %v7285_v2 = vpop.f32.mrb[99].mxu1  ;;  %v9519_v29 = vadd.f32 %v11346_v34, %v1305_v4  ;;  %v2496_v44 = vrot.slane %v11348_v19, 3  ;;  %v11349_v46 = vld [vmem:[#allocation35_spill] sm:$0xff] }
 0x2ba   :  { %v7447_v60 = vpop.f32.mrb[163].mxu0 }
 0x2bb   :  { %7503 = vmatmul.mubr.msk.bf16.gmra.mrb[204].mxu1 %vm336_vm0, %v2049_v33  ;;  %v9523_v39 = vadd.f32 %v11347_v11, %v1308_v16  ;;  %v2498_v11 = vsel %vm1558_vm4, %v2496_v44, %v2497_v55 }
 0x2bc   :  { %7665 = vmatmul.mubr.msk.bf16.gmra.mrb[12].mxu0 %vm336_vm0, %v2729_v51  ;;  %7562 = vmatprep.mubr.msk.bf16.mxu1 %vm8225_vm1, %v11290_v27 }
 0x2bd   :  { %7720 = vmatprep.mubr.msk.bf16.mxu0 %vm8225_vm1, %v11290_v27 }
 0x2be   :  { %v1312_v10 = vpop.f32.mrb[100].mxu1 }
 0x2bf   :  { %v1313_v34 = vadd.f32 %v1312_v10, %v9249_v5  ;;  %v9532_v49 = vpop.f32.mrb[164].mxu0  ;;  %v7288_v60 = vpop.f32.mrb[101].mxu1  ;;  %v2499_v5 = vrot.slane %v8681_v1, 3  ;;  %v8045_v1 = vld [vmem:[%s11215_s11 + $0x10] sm:$0xff]  }
 0x2c0   :  { %v7450_v33 = vpop.f32.mrb[165].mxu0  ;;  %v1315_v4 = vpop.f32.mrb[102].mxu1 }
 0x2c1   :  { %v1983_v58 = vpop.f32.mrb[166].mxu0  ;;  %v7289_v51 = vpop.f32.mrb[103].mxu1  ;;  %v9536_v16 = vadd.f32 %v11349_v46, %v1313_v34 }
 0x2c2   :  { %v7451_v2 = vpop.f32.mrb[167].mxu0 }
 0x2c3   :  { %7563 = vmatmul.mubr.msk.bf16.vlgmr.msra.gmra.mrb[208].mxu1 %vm336_vm0, %v2498_v11  ;;  %v2500_v2 = vsel %vm1558_vm4, %v2497_v55, %v2499_v5  ;;  %v2501_v55 = vrot.slane %v8701_v28, 3 }
 0x2c4   :  { %7566 = vmatprep.mubr.msk.bf16.mxu1 %vm8225_vm1, %v11290_v27  ;;  %7669 = vmatpush3.bf16.msra.mxu1 %v8045_v1 }
 0x2c5   :  { %7670 = vmatprep.subr.bf16.mxu1 %v11290_v27  ;;  %v2502_v28 = vsel %vm1558_vm4, %v2499_v5, %v2501_v55 }
 0x2c6   :  { %v1663_v37 = vpop.f32.mrb[104].mxu1 }
 0x2c7   :  { %v1765_v10 = vadd.f32 %v1663_v37, %v9275_v48  ;;  %v9544_v60 = vpop.f32.mrb[168].mxu0  ;;  %v7348_v33 = vpop.f32.mrb[105].mxu1  ;;  %v8046_v48 = vld [vmem:[%s11215_s11] sm:$0xff]  }
 0x2c8   :  { %v7510_v4 = vpop.f32.mrb[169].mxu0  ;;  %v1666_v19 = vpop.f32.mrb[106].mxu1  ;;  %7717 = vmatpush3.bf16.msra.mxu0 %v8046_v48 }
 0x2c9   :  { %v1766_v34 = vadd.f32 %v1666_v19, %v9280_v24  ;;  %v9547_v58 = vpop.f32.mrb[170].mxu0  ;;  %v7349_v44 = vpop.f32.mrb[107].mxu1  ;;  %v9550_v51 = vadd.f32 %v9269_v50, %v1765_v10  ;;  %7718 = vmatprep.subr.bf16.mxu0 %v11290_v27 }
 0x2ca   :  { %v7511_v46 = vpop.f32.mrb[171].mxu0 }
 0x2cb   :  { %7567 = vmatmul.mubr.msk.bf16.gmra.mrb[212].mxu1 %vm336_vm0, %v2500_v2  ;;  %v9561_v24 = vadd.f32 %v9272_v31, %v1766_v34 }
 0x2cc   :  { %7570 = vmatprep.mubr.msk.bf16.mxu1 %vm8225_vm1, %v11290_v27 }
 0x2ce   :  { %v1671_v50 = vpop.f32.mrb[108].mxu1 }
 0x2cf   :  { %v1767_v11 = vadd.f32 %v1671_v50, %v9296_v7  ;;  %v9569_v37 = vpop.f32.mrb[172].mxu0  ;;  %v7352_v10 = vpop.f32.mrb[109].mxu1 }
 0x2d0   :  { %v7514_v33 = vpop.f32.mrb[173].mxu0  ;;  %v1674_v31 = vpop.f32.mrb[110].mxu1 }
 0x2d1   :  { %v1768_v4 = vadd.f32 %v1674_v31, %v9301_v21  ;;  %v9572_v19 = vpop.f32.mrb[174].mxu0  ;;  %v7353_v34 = vpop.f32.mrb[111].mxu1  ;;  %v9575_v44 = vadd.f32 %v9290_v8, %v1767_v11  ;;  %v2503_v21 = vrot.slane %v8721_v59, 3 }
 0x2d2   :  { %v7515_v46 = vpop.f32.mrb[175].mxu0 }
 0x2d3   :  { %7571 = vmatmul.mubr.msk.bf16.gmra.mrb[216].mxu1 %vm336_vm0, %v2502_v28  ;;  %v9580_v7 = vadd.f32 %v9293_v18, %v1768_v4  ;;  %v2504_v4 = vsel %vm1558_vm4, %v2501_v55, %v2503_v21 }
 0x2d4   :  { %7574 = vmatprep.mubr.msk.bf16.mxu1 %vm8225_vm1, %v11290_v27 }
 0x2d6   :  { %v1679_v2 = vpop.f32.mrb[112].mxu1 }
 0x2d7   :  { %v1769_v1 = vadd.f32 %v1679_v2, %v9317_v41  ;;  %v9586_v48 = vpop.f32.mrb[176].mxu0  ;;  %v7356_v8 = vpop.f32.mrb[113].mxu1 }
 0x2d8   :  { %v7518_v50 = vpop.f32.mrb[177].mxu0  ;;  %v1682_v11 = vpop.f32.mrb[114].mxu1 }
 0x2d9   :  { %v1770_v5 = vadd.f32 %v1682_v11, %v9322_v54  ;;  %v9589_v10 = vpop.f32.mrb[178].mxu0  ;;  %v7357_v33 = vpop.f32.mrb[115].mxu1  ;;  %v9592_v18 = vadd.f32 %v9311_v40, %v1769_v1  ;;  %v2505_v54 = vrot.slane %v8741_v23, 3 }
 0x2da   :  { %v7519_v31 = vpop.f32.mrb[179].mxu0 }
 0x2db   :  { %7575 = vmatmul.mubr.msk.bf16.gmra.mrb[220].mxu1 %vm336_vm0, %v2504_v4  ;;  %v9597_v59 = vadd.f32 %v9314_v47, %v1770_v5  ;;  %v2506_v11 = vsel %vm1558_vm4, %v2503_v21, %v2505_v54 }
 0x2dc   :  { %7578 = vmatprep.mubr.msk.bf16.mxu1 %vm8225_vm1, %v11290_v27 }
 0x2de   :  { %v1687_v41 = vpop.f32.mrb[116].mxu1 }
 0x2df   :  { %v1771_v34 = vadd.f32 %v1687_v41, %v9338_v56  ;;  %v9603_v46 = vpop.f32.mrb[180].mxu0  ;;  %v7360_v40 = vpop.f32.mrb[117].mxu1 }
 0x2e0   :  { %v7522_v28 = vpop.f32.mrb[181].mxu0  ;;  %v1690_v2 = vpop.f32.mrb[118].mxu1 }
 0x2e1   :  { %v1772_v55 = vadd.f32 %v1690_v2, %v9343_v32  ;;  %v9606_v1 = vpop.f32.mrb[182].mxu0  ;;  %v7361_v8 = vpop.f32.mrb[119].mxu1  ;;  %v9609_v47 = vadd.f32 %v9332_v6, %v1771_v34  ;;  %v2507_v32 = vrot.slane %v8761_v57, 3 }
 0x2e2   :  { %v7523_v50 = vpop.f32.mrb[183].mxu0 }
 0x2e3   :  { %7579 = vmatmul.mubr.msk.bf16.gmra.mrb[224].mxu1 %vm336_vm0, %v2506_v11  ;;  %v9614_v23 = vadd.f32 %v9335_v13, %v1772_v55  ;;  %v2508_v28 = vsel %vm1558_vm4, %v2505_v54, %v2507_v32 }
 0x2e4   :  { %7582 = vmatprep.mubr.msk.bf16.mxu1 %vm8225_vm1, %v11290_v27 }
 0x2e6   :  { %v1695_v56 = vpop.f32.mrb[120].mxu1 }
 0x2e7   :  { %v1773_v5 = vadd.f32 %v1695_v56, %v9359_v14  ;;  %v9620_v33 = vpop.f32.mrb[184].mxu0  ;;  %v7364_v6 = vpop.f32.mrb[121].mxu1 }
 0x2e8   :  { %v7526_v31 = vpop.f32.mrb[185].mxu0  ;;  %v1698_v4 = vpop.f32.mrb[122].mxu1 }
 0x2e9   :  { %v1774_v21 = vadd.f32 %v1698_v4, %v9364_v15  ;;  %v9623_v41 = vpop.f32.mrb[186].mxu0  ;;  %v7365_v34 = vpop.f32.mrb[123].mxu1  ;;  %v9626_v13 = vadd.f32 %v9353_v45, %v1773_v5  ;;  %v2509_v15 = vrot.slane %v8781_v25, 3 }
 0x2ea   :  { %v7527_v40 = vpop.f32.mrb[187].mxu0 }
 0x2eb   :  { %7583 = vmatmul.mubr.msk.bf16.gmra.mrb[228].mxu1 %vm336_vm0, %v2508_v28  ;;  %v9631_v57 = vadd.f32 %v9356_v43, %v1774_v21  ;;  %v2510_v6 = vsel %vm1558_vm4, %v2507_v32, %v2509_v15 }
 0x2ec   :  { %7586 = vmatprep.mubr.msk.bf16.mxu1 %vm8225_vm1, %v11290_v27 }
 0x2ee   :  { %v1703_v14 = vpop.f32.mrb[124].mxu1 }
 0x2ef   :  { %v1775_v2 = vadd.f32 %v1703_v14, %v9380_v3  ;;  %v9637_v55 = vpop.f32.mrb[188].mxu0  ;;  %v7368_v45 = vpop.f32.mrb[125].mxu1 }
 0x2f0   :  { %v7530_v8 = vpop.f32.mrb[189].mxu0  ;;  %v1706_v50 = vpop.f32.mrb[126].mxu1 }
 0x2f1   :  { %v1776_v54 = vadd.f32 %v1706_v50, %v9385_v52  ;;  %v9640_v11 = vpop.f32.mrb[190].mxu0  ;;  %v7369_v56 = vpop.f32.mrb[127].mxu1  ;;  %v9643_v43 = vadd.f32 %v9374_v9, %v1775_v2  ;;  %v2511_v52 = vrot.slane %v11313_v35, 3 }
 0x2f2   :  { %v7531_v5 = vpop.f32.mrb[191].mxu0  ;;  %v11350_v56 = vld [vmem:[#allocation21_spill] sm:$0xff] }
 0x2f3   :  { %7587 = vmatmul.mubr.msk.bf16.gmra.mrb[232].mxu1 %vm336_vm0, %v2510_v6  ;;  %v9648_v25 = vadd.f32 %v9377_v20, %v1776_v54  ;;  %v2512_v2 = vsel %vm1558_vm4, %v2509_v15, %v2511_v52  ;;  %v8047_v15 = vld [vmem:[%s11215_s11 + $0x18] sm:$0xff]  }
 0x2f4   :  { %7590 = vmatprep.mubr.msk.bf16.mxu1 %vm8225_vm1, %v11290_v27  ;;  %7671 = vmatpush3.bf16.msra.mxu1 %v8047_v15 }
 0x2f5   :  { %7764 = vmatprep.subr.bf16.mxu1 %v11290_v27 }
 0x2f6   :  { %v1711_v3 = vpop.f32.mrb[128].mxu1 }
 0x2f7   :  { %v1777_v31 = vadd.f32 %v1711_v3, %v9401_v30  ;;  %v9654_v4 = vpop.f32.mrb[192].mxu0  ;;  %v7372_v9 = vpop.f32.mrb[129].mxu1  ;;  %v11351_v3 = vld [vmem:[#allocation19_spill] sm:$0xff] }
 0x2f8   :  { %v7534_v21 = vpop.f32.mrb[193].mxu0  ;;  %v1714_v34 = vpop.f32.mrb[130].mxu1  ;;  %v8048_v9 = vld [vmem:[%s11215_s11 + $0x8] sm:$0xff]  }
 0x2f9   :  { %v1778_v32 = vadd.f32 %v1714_v34, %v9406_v26  ;;  %v9657_v40 = vpop.f32.mrb[194].mxu0  ;;  %v7373_v28 = vpop.f32.mrb[131].mxu1  ;;  %v9660_v20 = vadd.f32 %v9395_v62, %v1777_v31  ;;  %v2513_v26 = vrot.slane %v11320_v38, 3  ;;  %v11352_v21 = vld [vmem:[#allocation20_spill] sm:$0xff]  ;;  %7719 = vmatpush3.bf16.msra.mxu0 %v8048_v9 }
 0x2fa   :  { %v7535_v14 = vpop.f32.mrb[195].mxu0  ;;  %7812 = vmatprep.subr.bf16.mxu0 %v11290_v27  ;;  %v11353_v28 = vld [vmem:[#allocation23_spill] sm:$0xff] }
 0x2fb   :  { %7591 = vmatmul.mubr.msk.bf16.gmra.mrb[236].mxu1 %vm336_vm0, %v2512_v2  ;;  %v9665_v30 = vadd.f32 %v9398_v42, %v1778_v32 }
 0x2fc   :  { %7594 = vmatprep.mubr.msk.bf16.mxu1 %vm8225_vm1, %v11290_v27 }
 0x2fe   :  { %v1719_v35 = vpop.f32.mrb[132].mxu1 }
 0x2ff   :  { %v1779_v45 = vadd.f32 %v1719_v35, %v9422_v17  ;;  %v9671_v8 = vpop.f32.mrb[196].mxu0  ;;  %v7376_v62 = vpop.f32.mrb[133].mxu1  ;;  %v2514_v17 = vsel %vm1558_vm4, %v2511_v52, %v2513_v26  ;;  %v2515_v52 = vrot.slane %v11330_v36, 3  ;;  %v11356_v36 = vld [vmem:[#allocation22_spill] sm:$0xff] }
 0x300   :  { %v7538_v50 = vpop.f32.mrb[197].mxu0  ;;  %v1722_v54 = vpop.f32.mrb[134].mxu1 }
 0x301   :  { %v1780_v42 = vadd.f32 %v1722_v54, %v11350_v56  ;;  %v9677_v5 = vpop.f32.mrb[198].mxu0  ;;  %v7377_v6 = vpop.f32.mrb[135].mxu1  ;;  %v9680_v31 = vadd.f32 %v11351_v3, %v1779_v45  ;;  %v11354_v50 = vld [vmem:[#allocation24_spill] sm:$0xff] }
 0x302   :  { %v7539_v38 = vpop.f32.mrb[199].mxu0 }
 0x303   :  { %7595 = vmatmul.mubr.msk.bf16.gmra.mrb[240].mxu1 %vm336_vm0, %v2514_v17  ;;  %v9688_v34 = vadd.f32 %v11352_v21, %v1780_v42  ;;  %v11355_v42 = vld [vmem:[#allocation7_spill] sm:$0xff]  ;;  %v2516_v38 = vsel %vm1558_vm4, %v2513_v26, %v2515_v52 }
 0x304   :  { %7598 = vmatprep.mubr.msk.bf16.mxu1 %vm8225_vm1, %v11290_v27 }
 0x306   :  { %v1727_v32 = vpop.f32.mrb[136].mxu1 }
 0x307   :  { %v1781_v14 = vadd.f32 %v1727_v32, %v11353_v28  ;;  %v9696_v2 = vpop.f32.mrb[200].mxu0  ;;  %v7380_v35 = vpop.f32.mrb[137].mxu1 }
 0x308   :  { %v7542_v45 = vpop.f32.mrb[201].mxu0  ;;  %v1730_v62 = vpop.f32.mrb[138].mxu1 }
 0x309   :  { %v1782_v54 = vadd.f32 %v1730_v62, %v11354_v50  ;;  %v9699_v15 = vpop.f32.mrb[202].mxu0  ;;  %v7381_v56 = vpop.f32.mrb[139].mxu1  ;;  %v9702_v6 = vadd.f32 %v11355_v42, %v1781_v14 }
 0x30a   :  { %v7543_v3 = vpop.f32.mrb[203].mxu0  ;;  %v11357_v56 = vld [vmem:[#allocation15_spill] sm:$0xff] }
 0x30b   :  { %7599 = vmatmul.mubr.msk.bf16.gmra.mrb[244].mxu1 %vm336_vm0, %v2516_v38  ;;  %v9707_v17 = vadd.f32 %v11356_v36, %v1782_v54  ;;  %v11358_v42 = vrot.slane %v11357_v56, 3  ;;  %v11359_v38 = vld [vmem:[#allocation26_spill] sm:$0xff] }
 0x30c   :  { %7602 = vmatprep.mubr.msk.bf16.mxu1 %vm8225_vm1, %v11290_v27 }
 0x30d   :  { %v2518_v3 = vsel %vm1558_vm4, %v2515_v52, %v11358_v42  ;;  %v11363_v42 = vld [vmem:[#allocation25_spill] sm:$0xff] }
 0x30e   :  { %v1735_v9 = vpop.f32.mrb[140].mxu1 }
 0x30f   :  { %v1783_v21 = vadd.f32 %v1735_v9, %v9468_v63  ;;  %v9712_v32 = vpop.f32.mrb[204].mxu0  ;;  %v7384_v28 = vpop.f32.mrb[141].mxu1 }
 0x310   :  { %v7546_v35 = vpop.f32.mrb[205].mxu0  ;;  %v1738_v14 = vpop.f32.mrb[142].mxu1 }
 0x311   :  { %v1784_v45 = vadd.f32 %v1738_v14, %v9473_v61  ;;  %v9715_v62 = vpop.f32.mrb[206].mxu0  ;;  %v7385_v26 = vpop.f32.mrb[143].mxu1  ;;  %v9718_v50 = vadd.f32 %v9462_v22, %v1783_v21  ;;  %v11360_v35 = vld [vmem:[#allocation27_spill] sm:$0xff] }
 0x312   :  { %v7547_v54 = vpop.f32.mrb[207].mxu0 }
 0x313   :  { %7603 = vmatmul.mubr.msk.bf16.gmra.mrb[248].mxu1 %vm336_vm0, %v2518_v3  ;;  %v9725_v63 = vadd.f32 %v9465_v53, %v1784_v45  ;;  %v11361_v54 = vld [vmem:[#allocation8_spill] sm:$0xff]  ;;  %v11362_v45 = vld [vmem:[#allocation17_spill] sm:$0xff] }
 0x314   :  { %7606 = vmatprep.mubr.msk.bf16.mxu1 %vm8225_vm1, %v11290_v27 }
 0x316   :  { %v1743_v61 = vpop.f32.mrb[144].mxu1 }
 0x317   :  { %v1785_v36 = vadd.f32 %v1743_v61, %v11359_v38  ;;  %v9730_v9 = vpop.f32.mrb[208].mxu0  ;;  %v7388_v22 = vpop.f32.mrb[145].mxu1 }
 0x318   :  { %v7550_v21 = vpop.f32.mrb[209].mxu0  ;;  %v1746_v28 = vpop.f32.mrb[146].mxu1 }
 0x319   :  { %v1786_v14 = vadd.f32 %v1746_v28, %v11360_v35  ;;  %v9733_v26 = vpop.f32.mrb[210].mxu0  ;;  %v7389_v52 = vpop.f32.mrb[147].mxu1  ;;  %v9736_v56 = vadd.f32 %v11361_v54, %v1785_v36 }
 0x31a   :  { %v7551_v53 = vpop.f32.mrb[211].mxu0 }
 0x31b   :  { %7607 = vmatmul.mubr.msk.bf16.gmra.mrb[252].mxu1 %vm336_vm0, %v11362_v45  ;;  %v9741_v3 = vadd.f32 %v11363_v42, %v1786_v14  ;;  %v11366_v45 = vld [vmem:[#allocation16_spill] sm:$0xff] }
 0x31c   :  { %7610 = vmatprep.mubr.msk.bf16.mxu1 %vm8225_vm1, %v11290_v27  ;;  %v11367_v42 = vrot.slane %v11366_v45, 3 }
 0x31e   :  { %v1751_v61 = vpop.f32.mrb[148].mxu1 }
 0x31f   :  { %v1787_v38 = vadd.f32 %v1751_v61, %v9519_v29  ;;  %v9746_v22 = vpop.f32.mrb[212].mxu0  ;;  %v7392_v21 = vpop.f32.mrb[149].mxu1 }
 0x320   :  { %11364 = vst [vmem:[#allocation9_spill] sm:$0xff] %v9746_v22  ;;  %v7554_v28 = vpop.f32.mrb[213].mxu0  ;;  %v1754_v35 = vpop.f32.mrb[150].mxu1 }
 0x321   :  { %v1788_v36 = vadd.f32 %v1754_v35, %v9523_v39  ;;  %v9749_v52 = vpop.f32.mrb[214].mxu0  ;;  %v7393_v54 = vpop.f32.mrb[151].mxu1  ;;  %v9752_v53 = vadd.f32 %v9513_v12, %v1787_v38 }
 0x322   :  { %11365 = vst [vmem:[#allocation12_spill] sm:$0xff] %v9749_v52  ;;  %v7555_v14 = vpop.f32.mrb[215].mxu0 }
 0x323   :  { %7611 = vmatmul.mubr.msk.bf16.gmra.mrb[0].mxu1 %vm336_vm0, %v11367_v42  ;;  %v9758_v29 = vadd.f32 %v9516_v0, %v1788_v36 }
 0x324   :  { %7672 = vmatprep.mubr.msk.bf16.mxu1 %vm8225_vm1, %v11290_v27 }
 0x326   :  { %v1759_v61 = vpop.f32.mrb[152].mxu1 }
 0x327   :  { %v1789_v39 = vadd.f32 %v1759_v61, %v9536_v16  ;;  %v9763_v21 = vpop.f32.mrb[216].mxu0  ;;  %v7396_v28 = vpop.f32.mrb[153].mxu1 }
 0x328   :  { %v7558_v35 = vpop.f32.mrb[217].mxu0  ;;  %v1762_v12 = vpop.f32.mrb[154].mxu1 }
 0x329   :  { %v2466_v38 = vpop.f32.mrb[218].mxu0  ;;  %v7397_v54 = vpop.f32.mrb[155].mxu1  ;;  %v9766_v14 = vadd.f32 %v9532_v49, %v1789_v39 }
 0x32a   :  { %v7559_v45 = vpop.f32.mrb[219].mxu0 }
 0x32e   :  { %v2130_v42 = vpop.f32.mrb[156].mxu1 }
 0x32f   :  { %v2232_v0 = vadd.f32 %v2130_v42, %v9550_v51  ;;  %v9769_v36 = vpop.f32.mrb[220].mxu0  ;;  %v7456_v27 = vpop.f32.mrb[157].mxu1 }
 0x330   :  { %v7618_v52 = vpop.f32.mrb[221].mxu0  ;;  %v2133_v22 = vpop.f32.mrb[158].mxu1 }
 0x331   :  { %v2233_v16 = vadd.f32 %v2133_v22, %v9561_v24  ;;  %v9772_v61 = vpop.f32.mrb[222].mxu0  ;;  %v7457_v28 = vpop.f32.mrb[159].mxu1  ;;  %v9775_v35 = vadd.f32 %v9544_v60, %v2232_v0 }
 0x332   :  { %v7619_v12 = vpop.f32.mrb[223].mxu0 }
 0x333   :  { %v9778_v49 = vadd.f32 %v9547_v58, %v2233_v16 }
 0x336   :  { %v2138_v39 = vpop.f32.mrb[160].mxu1 }
 0x337   :  { %v2234_v51 = vadd.f32 %v2138_v39, %v9575_v44  ;;  %v9781_v38 = vpop.f32.mrb[224].mxu0  ;;  %v7460_v27 = vpop.f32.mrb[161].mxu1 }
 0x338   :  { %v7622_v52 = vpop.f32.mrb[225].mxu0  ;;  %v2141_v54 = vpop.f32.mrb[162].mxu1 }
 0x339   :  { %v2235_v24 = vadd.f32 %v2141_v54, %v9580_v7  ;;  %v9784_v22 = vpop.f32.mrb[226].mxu0  ;;  %v7461_v45 = vpop.f32.mrb[163].mxu1  ;;  %v9787_v60 = vadd.f32 %v9569_v37, %v2234_v51 }
 0x33a   :  { %v7623_v42 = vpop.f32.mrb[227].mxu0 }
 0x33b   :  { %v9790_v58 = vadd.f32 %v9572_v19, %v2235_v24 }
 0x33e   :  { %v2146_v0 = vpop.f32.mrb[164].mxu1 }
 0x33f   :  { %v2236_v44 = vadd.f32 %v2146_v0, %v9592_v18  ;;  %v9793_v16 = vpop.f32.mrb[228].mxu0  ;;  %v7464_v28 = vpop.f32.mrb[165].mxu1 }
 0x340   :  { %v7626_v12 = vpop.f32.mrb[229].mxu0  ;;  %v2149_v39 = vpop.f32.mrb[166].mxu1 }
 0x341   :  { %v2237_v7 = vadd.f32 %v2149_v39, %v9597_v59  ;;  %v9796_v27 = vpop.f32.mrb[230].mxu0  ;;  %v7465_v52 = vpop.f32.mrb[167].mxu1  ;;  %v9799_v37 = vadd.f32 %v9586_v48, %v2236_v44 }
 0x342   :  { %v7627_v51 = vpop.f32.mrb[231].mxu0 }
 0x343   :  { %v9802_v19 = vadd.f32 %v9589_v10, %v2237_v7 }
 0x346   :  { %v2154_v54 = vpop.f32.mrb[168].mxu1 }
 0x347   :  { %v2238_v18 = vadd.f32 %v2154_v54, %v9609_v47  ;;  %v9805_v24 = vpop.f32.mrb[232].mxu0  ;;  %v7468_v45 = vpop.f32.mrb[169].mxu1 }
 0x348   :  { %v7630_v42 = vpop.f32.mrb[233].mxu0  ;;  %v2157_v0 = vpop.f32.mrb[170].mxu1 }
 0x349   :  { %v2239_v59 = vadd.f32 %v2157_v0, %v9614_v23  ;;  %v9808_v28 = vpop.f32.mrb[234].mxu0  ;;  %v7469_v12 = vpop.f32.mrb[171].mxu1  ;;  %v9811_v48 = vadd.f32 %v9603_v46, %v2238_v18 }
 0x34a   :  { %v7631_v44 = vpop.f32.mrb[235].mxu0 }
 0x34b   :  { %v9814_v10 = vadd.f32 %v9606_v1, %v2239_v59 }
 0x34e   :  { %v2162_v39 = vpop.f32.mrb[172].mxu1 }
 0x34f   :  { %v2240_v47 = vadd.f32 %v2162_v39, %v9626_v13  ;;  %v9817_v7 = vpop.f32.mrb[236].mxu0  ;;  %v7472_v52 = vpop.f32.mrb[173].mxu1 }
 0x350   :  { %v7634_v51 = vpop.f32.mrb[237].mxu0  ;;  %v2165_v54 = vpop.f32.mrb[174].mxu1 }
 0x351   :  { %v2241_v23 = vadd.f32 %v2165_v54, %v9631_v57  ;;  %v9820_v45 = vpop.f32.mrb[238].mxu0  ;;  %v7473_v42 = vpop.f32.mrb[175].mxu1  ;;  %v9823_v46 = vadd.f32 %v9620_v33, %v2240_v47 }
 0x352   :  { %v7635_v18 = vpop.f32.mrb[239].mxu0 }
 0x353   :  { %v9826_v1 = vadd.f32 %v9623_v41, %v2241_v23 }
 0x356   :  { %v2170_v0 = vpop.f32.mrb[176].mxu1 }
 0x357   :  { %v2242_v13 = vadd.f32 %v2170_v0, %v9643_v43  ;;  %v9829_v59 = vpop.f32.mrb[240].mxu0  ;;  %v7476_v12 = vpop.f32.mrb[177].mxu1 }
 0x358   :  { %v7638_v44 = vpop.f32.mrb[241].mxu0  ;;  %v2173_v39 = vpop.f32.mrb[178].mxu1 }
 0x359   :  { %v2243_v57 = vadd.f32 %v2173_v39, %v9648_v25  ;;  %v9832_v52 = vpop.f32.mrb[242].mxu0  ;;  %v7477_v51 = vpop.f32.mrb[179].mxu1  ;;  %v9835_v33 = vadd.f32 %v9637_v55, %v2242_v13 }
 0x35a   :  { %v7639_v47 = vpop.f32.mrb[243].mxu0 }
 0x35b   :  { %v9838_v41 = vadd.f32 %v9640_v11, %v2243_v57 }
 0x35e   :  { %v2178_v54 = vpop.f32.mrb[180].mxu1 }
 0x35f   :  { %v2244_v43 = vadd.f32 %v2178_v54, %v9660_v20  ;;  %v9841_v23 = vpop.f32.mrb[244].mxu0  ;;  %v7480_v42 = vpop.f32.mrb[181].mxu1 }
 0x360   :  { %v7642_v18 = vpop.f32.mrb[245].mxu0  ;;  %v2181_v0 = vpop.f32.mrb[182].mxu1 }
 0x361   :  { %v2245_v25 = vadd.f32 %v2181_v0, %v9665_v30  ;;  %v9844_v12 = vpop.f32.mrb[246].mxu0  ;;  %v7481_v44 = vpop.f32.mrb[183].mxu1  ;;  %v9847_v55 = vadd.f32 %v9654_v4, %v2244_v43 }
 0x362   :  { %v7643_v13 = vpop.f32.mrb[247].mxu0 }
 0x363   :  { %v9850_v11 = vadd.f32 %v9657_v40, %v2245_v25 }
 0x366   :  { %v2186_v39 = vpop.f32.mrb[184].mxu1 }
 0x367   :  { %v2246_v20 = vadd.f32 %v2186_v39, %v9680_v31  ;;  %v9853_v57 = vpop.f32.mrb[248].mxu0  ;;  %v7484_v51 = vpop.f32.mrb[185].mxu1 }
 0x368   :  { %v7646_v47 = vpop.f32.mrb[249].mxu0  ;;  %v2189_v54 = vpop.f32.mrb[186].mxu1 }
 0x369   :  { %v2247_v30 = vadd.f32 %v2189_v54, %v9688_v34  ;;  %v9856_v42 = vpop.f32.mrb[250].mxu0  ;;  %v7485_v18 = vpop.f32.mrb[187].mxu1  ;;  %v9859_v4 = vadd.f32 %v9671_v8, %v2246_v20 }
 0x36a   :  { %v7647_v43 = vpop.f32.mrb[251].mxu0 }
 0x36b   :  { %v9862_v40 = vadd.f32 %v9677_v5, %v2247_v30 }
 0x36e   :  { %v2194_v0 = vpop.f32.mrb[188].mxu1 }
 0x36f   :  { %v2248_v31 = vadd.f32 %v2194_v0, %v9702_v6  ;;  %v9865_v25 = vpop.f32.mrb[252].mxu0  ;;  %v7488_v44 = vpop.f32.mrb[189].mxu1 }
 0x370   :  { %v7650_v13 = vpop.f32.mrb[253].mxu0  ;;  %v2197_v39 = vpop.f32.mrb[190].mxu1 }
 0x371   :  { %v2249_v34 = vadd.f32 %v2197_v39, %v9707_v17  ;;  %v9868_v51 = vpop.f32.mrb[254].mxu0  ;;  %v7489_v47 = vpop.f32.mrb[191].mxu1  ;;  %v9871_v8 = vadd.f32 %v9696_v2, %v2248_v31 }
 0x372   :  { %v7651_v20 = vpop.f32.mrb[255].mxu0 }
 0x373   :  { %v9874_v5 = vadd.f32 %v9699_v15, %v2249_v34 }
 0x376   :  { %v2202_v54 = vpop.f32.mrb[192].mxu1 }
 0x377   :  { %v2250_v6 = vadd.f32 %v2202_v54, %v9718_v50  ;;  %v9877_v30 = vpop.f32.mrb[0].mxu0  ;;  %v7492_v18 = vpop.f32.mrb[193].mxu1 }
 0x378   :  { %v7654_v43 = vpop.f32.mrb[1].mxu0  ;;  %v2205_v0 = vpop.f32.mrb[194].mxu1 }
 0x379   :  { %v2251_v17 = vadd.f32 %v2205_v0, %v9725_v63  ;;  %v9880_v44 = vpop.f32.mrb[2].mxu0  ;;  %v7493_v13 = vpop.f32.mrb[195].mxu1  ;;  %v9883_v2 = vadd.f32 %v9712_v32, %v2250_v6 }
 0x37a   :  { %v7655_v31 = vpop.f32.mrb[3].mxu0 }
 0x37b   :  { %v9886_v15 = vadd.f32 %v9715_v62, %v2251_v17 }
 0x37e   :  { %v2210_v39 = vpop.f32.mrb[196].mxu1 }
 0x37f   :  { %v2252_v50 = vadd.f32 %v2210_v39, %v9736_v56  ;;  %v9889_v34 = vpop.f32.mrb[4].mxu0  ;;  %v7496_v47 = vpop.f32.mrb[197].mxu1 }
 0x380   :  { %v7658_v20 = vpop.f32.mrb[5].mxu0  ;;  %v2213_v54 = vpop.f32.mrb[198].mxu1 }
 0x381   :  { %v2253_v63 = vadd.f32 %v2213_v54, %v9741_v3  ;;  %v9892_v18 = vpop.f32.mrb[6].mxu0  ;;  %v7497_v43 = vpop.f32.mrb[199].mxu1  ;;  %v9895_v32 = vadd.f32 %v9730_v9, %v2252_v50  ;;  %v11369_v54 = vld [vmem:[#allocation9_spill] sm:$0xff] }
 0x382   :  { %v7659_v6 = vpop.f32.mrb[7].mxu0  ;;  %v11370_v43 = vld [vmem:[#allocation12_spill] sm:$0xff] }
 0x383   :  { %v9898_v62 = vadd.f32 %v9733_v26, %v2253_v63 }
 0x386   :  { %v2218_v0 = vpop.f32.mrb[200].mxu1 }
 0x387   :  { %v2254_v56 = vadd.f32 %v2218_v0, %v9752_v53  ;;  %v9901_v17 = vpop.f32.mrb[8].mxu0  ;;  %v7500_v13 = vpop.f32.mrb[201].mxu1 }
 0x388   :  { %11368 = vst [vmem:[#allocation11_spill] sm:$0xff] %v9901_v17  ;;  %v7662_v31 = vpop.f32.mrb[9].mxu0  ;;  %v2221_v39 = vpop.f32.mrb[202].mxu1 }
 0x389   :  { %v2255_v3 = vadd.f32 %v2221_v39, %v9758_v29  ;;  %v9904_v47 = vpop.f32.mrb[10].mxu0  ;;  %v7501_v20 = vpop.f32.mrb[203].mxu1  ;;  %v9907_v9 = vadd.f32 %v11369_v54, %v2254_v56 }
 0x38a   :  { %v7663_v50 = vpop.f32.mrb[11].mxu0 }
 0x38b   :  { %v9910_v26 = vadd.f32 %v11370_v43, %v2255_v3  ;;  %v9922_v3 = vld [vmem:[%s11371_s2] ss:$0 sm:$0xff]  ;;  %s8229_s2 = smov 96  }
 0x38e   :  { %v2226_v63 = vpop.f32.mrb[204].mxu1 }
 0x38f   :  { %v2256_v53 = vadd.f32 %v2226_v63, %v9766_v14  ;;  %v9913_v6 = vpop.f32.mrb[12].mxu0  ;;  %v7504_v0 = vpop.f32.mrb[205].mxu1 }
 0x390   :  { %v7666_v13 = vpop.f32.mrb[13].mxu0  ;;  %v2229_v31 = vpop.f32.mrb[206].mxu1 }
 0x391   :  { %v2883_v17 = vpop.f32.mrb[14].mxu0  ;;  %v7505_v29 = vpop.f32.mrb[207].mxu1  ;;  %v9916_v39 = vadd.f32 %v9763_v21, %v2256_v53 }
 0x392   :  { %v7667_v20 = vpop.f32.mrb[15].mxu0 }
 0x396   :  { %v2600_v56 = vpop.f32.mrb[208].mxu1 }
 0x397   :  { %v2702_v54 = vadd.f32 %v2600_v56, %v9775_v35  ;;  %v7564_v50 = vpop.f32.mrb[209].mxu1  ;;  %v9931_v35 = vld [vmem:[%s11372_s4] ss:$0 sm:$0xff] }
 0x398   :  { %v2603_v14 = vpop.f32.mrb[210].mxu1  ;;  %v9939_v56 = vld [vmem:[%s11373_s1] ss:$0 sm:$0xff] }
 0x399   :  { %v2886_v43 = vadd.f32 %v9769_v36, %v2702_v54  ;;  %v2703_v63 = vadd.f32 %v2603_v14, %v9778_v49  ;;  %v7565_v17 = vpop.f32.mrb[211].mxu1 }
 0x39b   :  { %v2918_v0 = vadd.f32 %v9922_v3, %v2886_v43  ;;  %v2887_v21 = vadd.f32 %v9772_v61, %v2703_v63 }
 0x39d   :  { %v2943_v53 = vmax.f32 %v2918_v0, 0.0  ;;  %v2919_v13 = vadd.f32 %v9922_v3, %v2887_v21  ;;  %v8050_v21 = vld [vmem:[%s11215_s11 + $0x30] sm:$0xff]  }
 0x39e   :  { %v2608_v31 = vpop.f32.mrb[212].mxu1 }
 0x39f   :  { %v2975_v29 = vmul.f32 %v9931_v35, %v2943_v53  ;;  %v2944_v20 = vmax.f32 %v2919_v13, 0.0  ;;  %v2704_v36 = vadd.f32 %v2608_v31, %v9787_v60  ;;  %v7568_v49 = vpop.f32.mrb[213].mxu1 }
 0x3a0   :  { %v2611_v61 = vpop.f32.mrb[214].mxu1 }
 0x3a1   :  { %v2976_v54 = vmul.f32 %v9931_v35, %v2944_v20  ;;  %v2888_v50 = vadd.f32 %v9781_v38, %v2704_v36  ;;  %v2705_v14 = vadd.f32 %v2611_v61, %v9790_v58  ;;  %v7569_v43 = vpop.f32.mrb[215].mxu1  ;;  %v3007_v63 = vadd.f32 %v9939_v56, %v2975_v29  ;;  %v8052_v61 = vld [vmem:[%s11215_s11 + $0x38] sm:$0xff]  }
 0x3a3   :  { %v3008_v17 = vadd.f32 %v9939_v56, %v2976_v54  ;;  %v2920_v60 = vadd.f32 %v9922_v3, %v2888_v50  ;;  %v2889_v0 = vadd.f32 %v9784_v22, %v2705_v14  ;;  %v11374_v22 = vmov 0.0  }
 0x3a5   :  { %v3032_v53 = vpack.c.bf16 %v3008_v17, %v3007_v63  ;;  %v2945_v13 = vmax.f32 %v2920_v60, 0.0  ;;  %v2921_v38 = vadd.f32 %v9922_v3, %v2889_v0 }
 0x3a6   :  { %v2616_v31 = vpop.f32.mrb[216].mxu1 }
 0x3a7   :  { %v2977_v58 = vmul.f32 %v9931_v35, %v2945_v13  ;;  %v2946_v20 = vmax.f32 %v2921_v38, 0.0  ;;  %v2706_v29 = vadd.f32 %v2616_v31, %v9799_v37  ;;  %v7572_v36 = vpop.f32.mrb[217].mxu1  ;;  %7721 = vmatmul.mubr.msk.bf16.vlgmr.msra.gmra.mrb[16].mxu0 %vm3095_vm5, %v3032_v53 }
 0x3a8   :  { %v2619_v49 = vpop.f32.mrb[218].mxu1  ;;  %7724 = vmatprep.mubr.msk.bf16.mxu0 %vm8225_vm1, %v11374_v22  ;;  %7813 = vmatpush3.bf16.msra.mxu0 %v8050_v21 }
 0x3a9   :  { %v2978_v54 = vmul.f32 %v9931_v35, %v2946_v20  ;;  %v2890_v50 = vadd.f32 %v9793_v16, %v2706_v29  ;;  %v2707_v14 = vadd.f32 %v2619_v49, %v9802_v19  ;;  %v7573_v43 = vpop.f32.mrb[219].mxu1  ;;  %7814 = vmatprep.subr.bf16.mxu0 %v11374_v22  ;;  %v3009_v37 = vadd.f32 %v9939_v56, %v2977_v58  ;;  %v8049_v29 = vld [vmem:[%s11215_s11 + $0x20] sm:$0xff]  }
 0x3aa   :  { %v3062_v19 = vrot.slane %v3032_v53, 1 }
 0x3ab   :  { %v9966_v63 = vadd.f32 %v9939_v56, %v2978_v54  ;;  %v2922_v17 = vadd.f32 %v9922_v3, %v2890_v50  ;;  %v2891_v60 = vadd.f32 %v9796_v27, %v2707_v14 }
 0x3ac   :  { %7815 = vmatpush3.bf16.msra.mxu0 %v8052_v61 }
 0x3ad   :  { %v3033_v0 = vpack.c.bf16 %v9966_v63, %v3009_v37  ;;  %v2947_v21 = vmax.f32 %v2922_v17, 0.0  ;;  %v2923_v16 = vadd.f32 %v9922_v3, %v2891_v60 }
 0x3ae   :  { %v2624_v13 = vpop.f32.mrb[220].mxu1 }
 0x3af   :  { %v3063_v38 = vrot.slane %v3033_v0, 1  ;;  %v2979_v31 = vmul.f32 %v9931_v35, %v2947_v21  ;;  %v2948_v20 = vmax.f32 %v2923_v16, 0.0  ;;  %v7576_v58 = vpop.f32.mrb[221].mxu1  ;;  %7725 = vmatmul.mubr.msk.bf16.gmra.mrb[20].mxu0 %vm3095_vm5, %v3033_v0  ;;  %v2708_v27 = vadd.f32 %v2624_v13, %v9811_v48 }
 0x3b0   :  { %v2627_v36 = vpop.f32.mrb[222].mxu1  ;;  %7728 = vmatprep.mubr.msk.bf16.mxu0 %vm8225_vm1, %v11374_v22  ;;  %v3422_v21 = vrot.slane %v3033_v0, 3 }
 0x3b1   :  { %v3064_v49 = vsel %vm930_vm2, %v3062_v19, %v3063_v38  ;;  %v9982_v53 = vadd.f32 %v9939_v56, %v2979_v31  ;;  %v2980_v61 = vmul.f32 %v9931_v35, %v2948_v20  ;;  %v2709_v54 = vadd.f32 %v2627_v36, %v9814_v10  ;;  %v7577_v50 = vpop.f32.mrb[223].mxu1  ;;  %v8051_v10 = vld [vmem:[%s11215_s11 + $0x28] sm:$0xff]   ;;  %s8228_s11 = smov 64  }
 0x3b2   :  { %v2892_v14 = vadd.f32 %v9805_v24, %v2708_v27  ;;  %7673 = vmatmul.mubr.msk.bf16.vlgmr.msra.gmra.mrb[4].mxu1 %vm3095_vm5, %v3064_v49 }
 0x3b3   :  { %v3631_v48 = vpack.c.bf16 %v9982_v53, %v9966_v63  ;;  %v9991_v43 = vadd.f32 %v9939_v56, %v2980_v61  ;;  %v2893_v37 = vadd.f32 %v9808_v28, %v2709_v54  ;;  %7765 = vmatpush3.bf16.msra.mxu1 %v8049_v29  ;;  %7676 = vmatprep.mubr.msk.bf16.mxu1 %vm8225_vm1, %v11374_v22 }
 0x3b4   :  { %v2924_v24 = vadd.f32 %v9922_v3, %v2892_v14  ;;  %7766 = vmatprep.subr.bf16.mxu1 %v11374_v22 }
 0x3b5   :  { %v3034_v17 = vpack.c.bf16 %v9991_v43, %v9982_v53  ;;  %v2925_v60 = vadd.f32 %v9922_v3, %v2893_v37 }
 0x3b6   :  { %v2949_v16 = vmax.f32 %v2924_v24, 0.0  ;;  %v2632_v28 = vpop.f32.mrb[224].mxu1 }
 0x3b7   :  { %v3065_v13 = vrot.slane %v3034_v17, 1  ;;  %v3423_v19 = vrot.slane %v3034_v17, 3  ;;  %v2950_v31 = vmax.f32 %v2925_v60, 0.0  ;;  %v2710_v20 = vadd.f32 %v2632_v28, %v9823_v46  ;;  %v7580_v58 = vpop.f32.mrb[225].mxu1  ;;  %7729 = vmatmul.mubr.msk.bf16.gmra.mrb[24].mxu0 %vm3095_vm5, %v3034_v17  ;;  %7767 = vmatpush3.bf16.msra.mxu1 %v8051_v10 }
 0x3b8   :  { %v2981_v29 = vmul.f32 %v9931_v35, %v2949_v16  ;;  %v2635_v27 = vpop.f32.mrb[226].mxu1  ;;  %7732 = vmatprep.mubr.msk.bf16.mxu0 %vm8225_vm1, %v11374_v22 }
 0x3b9   :  { %v10010_v36 = vsel %vm1558_vm4, %v3422_v21, %v3423_v19  ;;  %v2982_v0 = vmul.f32 %v9931_v35, %v2950_v31  ;;  %v2894_v49 = vadd.f32 %v9817_v7, %v2710_v20  ;;  %v2711_v61 = vadd.f32 %v2635_v27, %v9826_v1  ;;  %v7581_v46 = vpop.f32.mrb[227].mxu1 }
 0x3ba   :  { %v10016_v54 = vadd.f32 %v9939_v56, %v2981_v29  ;;  %v3066_v50 = vsel %vm930_vm2, %v3063_v38, %v3065_v13 }
 0x3bb   :  { %v10020_v14 = vadd.f32 %v9939_v56, %v2982_v0  ;;  %v2926_v37 = vadd.f32 %v9922_v3, %v2894_v49  ;;  %v2895_v10 = vadd.f32 %v9820_v45, %v2711_v61  ;;  %7677 = vmatmul.mubr.msk.bf16.gmra.mrb[8].mxu1 %vm3095_vm5, %v3066_v50 }
 0x3bc   :  { %v3632_v7 = vpack.c.bf16 %v10016_v54, %v9991_v43  ;;  %7680 = vmatprep.mubr.msk.bf16.mxu1 %vm8225_vm1, %v11374_v22 }
 0x3bd   :  { %v3035_v1 = vpack.c.bf16 %v10020_v14, %v10016_v54  ;;  %v2951_v24 = vmax.f32 %v2926_v37, 0.0  ;;  %v2927_v38 = vadd.f32 %v9922_v3, %v2895_v10 }
 0x3be   :  { %v2640_v17 = vpop.f32.mrb[228].mxu1 }
 0x3bf   :  { %v3067_v60 = vrot.slane %v3035_v1, 1  ;;  %v3425_v21 = vrot.slane %v3035_v1, 3  ;;  %v2983_v16 = vmul.f32 %v9931_v35, %v2951_v24  ;;  %v2952_v45 = vmax.f32 %v2927_v38, 0.0  ;;  %v7584_v28 = vpop.f32.mrb[229].mxu1  ;;  %7733 = vmatmul.mubr.msk.bf16.gmra.mrb[28].mxu0 %vm3095_vm5, %v3035_v1 }
 0x3c0   :  { %v2712_v31 = vadd.f32 %v2640_v17, %v9835_v33  ;;  %v2643_v20 = vpop.f32.mrb[230].mxu1  ;;  %7736 = vmatprep.mubr.msk.bf16.mxu0 %vm8225_vm1, %v11374_v22 }
 0x3c1   :  { %v10038_v58 = vadd.f32 %v9939_v56, %v2983_v16  ;;  %v2984_v29 = vmul.f32 %v9931_v35, %v2952_v45  ;;  %v2713_v27 = vadd.f32 %v2643_v20, %v9838_v41  ;;  %v7585_v0 = vpop.f32.mrb[231].mxu1  ;;  %v3068_v49 = vsel %vm930_vm2, %v3065_v13, %v3067_v60 }
 0x3c2   :  { %v2896_v61 = vadd.f32 %v9829_v59, %v2712_v31  ;;  %v10045_v46 = vsel %vm1558_vm4, %v3423_v19, %v3425_v21 }
 0x3c3   :  { %v3633_v33 = vpack.c.bf16 %v10038_v58, %v10020_v14  ;;  %v10050_v50 = vadd.f32 %v9939_v56, %v2984_v29  ;;  %v2897_v37 = vadd.f32 %v9832_v52, %v2713_v27  ;;  %7681 = vmatmul.mubr.msk.bf16.gmra.mrb[12].mxu1 %vm3095_vm5, %v3068_v49 }
 0x3c4   :  { %v2928_v41 = vadd.f32 %v9922_v3, %v2896_v61  ;;  %7684 = vmatprep.mubr.msk.bf16.mxu1 %vm8225_vm1, %v11374_v22 }
 0x3c5   :  { %v3036_v59 = vpack.c.bf16 %v10050_v50, %v10038_v58  ;;  %v2929_v13 = vadd.f32 %v9922_v3, %v2897_v37 }
 0x3c6   :  { %v2953_v19 = vmax.f32 %v2928_v41, 0.0  ;;  %v2648_v10 = vpop.f32.mrb[232].mxu1 }
 0x3c7   :  { %v3069_v1 = vrot.slane %v3036_v59, 1  ;;  %v3427_v24 = vrot.slane %v3036_v59, 3  ;;  %v2954_v38 = vmax.f32 %v2929_v13, 0.0  ;;  %v2714_v17 = vadd.f32 %v2648_v10, %v9847_v55  ;;  %v7588_v52 = vpop.f32.mrb[233].mxu1  ;;  %7737 = vmatmul.mubr.msk.bf16.gmra.mrb[32].mxu0 %vm3095_vm5, %v3036_v59 }
 0x3c8   :  { %v2985_v16 = vmul.f32 %v9931_v35, %v2953_v19  ;;  %v2651_v45 = vpop.f32.mrb[234].mxu1  ;;  %7740 = vmatprep.mubr.msk.bf16.mxu0 %vm8225_vm1, %v11374_v22 }
 0x3c9   :  { %v2986_v28 = vmul.f32 %v9931_v35, %v2954_v38  ;;  %v2898_v31 = vadd.f32 %v9841_v23, %v2714_v17  ;;  %v2715_v20 = vadd.f32 %v2651_v45, %v9850_v11  ;;  %v7589_v29 = vpop.f32.mrb[235].mxu1  ;;  %v3070_v27 = vsel %vm930_vm2, %v3067_v60, %v3069_v1 }
 0x3ca   :  { %v10070_v55 = vadd.f32 %v9939_v56, %v2985_v16  ;;  %v10073_v0 = vsel %vm1558_vm4, %v3425_v21, %v3427_v24 }
 0x3cb   :  { %v10076_v49 = vadd.f32 %v9939_v56, %v2986_v28  ;;  %v2930_v61 = vadd.f32 %v9922_v3, %v2898_v31  ;;  %v2899_v37 = vadd.f32 %v9844_v12, %v2715_v20  ;;  %7685 = vmatmul.mubr.msk.bf16.gmra.mrb[16].mxu1 %vm3095_vm5, %v3070_v27 }
 0x3cc   :  { %v3634_v23 = vpack.c.bf16 %v10070_v55, %v10050_v50  ;;  %7688 = vmatprep.mubr.msk.bf16.mxu1 %vm8225_vm1, %v11374_v22 }
 0x3cd   :  { %v3037_v11 = vpack.c.bf16 %v10076_v49, %v10070_v55  ;;  %v2955_v60 = vmax.f32 %v2930_v61, 0.0  ;;  %v2931_v21 = vadd.f32 %v9922_v3, %v2899_v37 }
 0x3ce   :  { %v2656_v41 = vpop.f32.mrb[236].mxu1 }
 0x3cf   :  { %v3071_v59 = vrot.slane %v3037_v11, 1  ;;  %v3429_v13 = vrot.slane %v3037_v11, 3  ;;  %v2987_v19 = vmul.f32 %v9931_v35, %v2955_v60  ;;  %v2956_v12 = vmax.f32 %v2931_v21, 0.0  ;;  %v7592_v10 = vpop.f32.mrb[237].mxu1  ;;  %7741 = vmatmul.mubr.msk.bf16.gmra.mrb[36].mxu0 %vm3095_vm5, %v3037_v11 }
 0x3d0   :  { %v2716_v38 = vadd.f32 %v2656_v41, %v9859_v4  ;;  %v2659_v17 = vpop.f32.mrb[238].mxu1  ;;  %7744 = vmatprep.mubr.msk.bf16.mxu0 %vm8225_vm1, %v11374_v22 }
 0x3d1   :  { %v10094_v52 = vadd.f32 %v9939_v56, %v2987_v19  ;;  %v2988_v16 = vmul.f32 %v9931_v35, %v2956_v12  ;;  %v2717_v45 = vadd.f32 %v2659_v17, %v9862_v40  ;;  %v7593_v28 = vpop.f32.mrb[239].mxu1  ;;  %v3072_v31 = vsel %vm930_vm2, %v3069_v1, %v3071_v59 }
 0x3d2   :  { %v2900_v20 = vadd.f32 %v9853_v57, %v2716_v38  ;;  %v10101_v29 = vsel %vm1558_vm4, %v3427_v24, %v3429_v13 }
 0x3d3   :  { %v3635_v4 = vpack.c.bf16 %v10094_v52, %v10076_v49  ;;  %v10106_v27 = vadd.f32 %v9939_v56, %v2988_v16  ;;  %v2901_v61 = vadd.f32 %v9856_v42, %v2717_v45  ;;  %7689 = vmatmul.mubr.msk.bf16.gmra.mrb[20].mxu1 %vm3095_vm5, %v3072_v31 }
 0x3d4   :  { %v2932_v40 = vadd.f32 %v9922_v3, %v2900_v20  ;;  %7692 = vmatprep.mubr.msk.bf16.mxu1 %vm8225_vm1, %v11374_v22 }
 0x3d5   :  { %v3038_v57 = vpack.c.bf16 %v10106_v27, %v10094_v52  ;;  %v2933_v1 = vadd.f32 %v9922_v3, %v2901_v61 }
 0x3d6   :  { %v2957_v24 = vmax.f32 %v2932_v40, 0.0  ;;  %v2664_v37 = vpop.f32.mrb[240].mxu1 }
 0x3d7   :  { %v3073_v11 = vrot.slane %v3038_v57, 1  ;;  %v3431_v60 = vrot.slane %v3038_v57, 3  ;;  %v2958_v21 = vmax.f32 %v2933_v1, 0.0  ;;  %v2718_v41 = vadd.f32 %v2664_v37, %v9871_v8  ;;  %v7596_v42 = vpop.f32.mrb[241].mxu1  ;;  %7745 = vmatmul.mubr.msk.bf16.gmra.mrb[40].mxu0 %vm3095_vm5, %v3038_v57 }
 0x3d8   :  { %v2989_v19 = vmul.f32 %v9931_v35, %v2957_v24  ;;  %v2667_v12 = vpop.f32.mrb[242].mxu1  ;;  %7748 = vmatprep.mubr.msk.bf16.mxu0 %vm8225_vm1, %v11374_v22 }
 0x3d9   :  { %v2990_v10 = vmul.f32 %v9931_v35, %v2958_v21  ;;  %v2902_v38 = vadd.f32 %v9865_v25, %v2718_v41  ;;  %v2719_v17 = vadd.f32 %v2667_v12, %v9874_v5  ;;  %v7597_v16 = vpop.f32.mrb[243].mxu1  ;;  %v3074_v45 = vsel %vm930_vm2, %v3071_v59, %v3073_v11 }
 0x3da   :  { %v10126_v8 = vadd.f32 %v9939_v56, %v2989_v19  ;;  %v10129_v28 = vsel %vm1558_vm4, %v3429_v13, %v3431_v60 }
 0x3db   :  { %v10132_v31 = vadd.f32 %v9939_v56, %v2990_v10  ;;  %v2934_v20 = vadd.f32 %v9922_v3, %v2902_v38  ;;  %v2903_v61 = vadd.f32 %v9868_v51, %v2719_v17  ;;  %7693 = vmatmul.mubr.msk.bf16.gmra.mrb[24].mxu1 %vm3095_vm5, %v3074_v45 }
 0x3dc   :  { %v3636_v25 = vpack.c.bf16 %v10126_v8, %v10106_v27  ;;  %7696 = vmatprep.mubr.msk.bf16.mxu1 %vm8225_vm1, %v11374_v22 }
 0x3dd   :  { %v3039_v5 = vpack.c.bf16 %v10132_v31, %v10126_v8  ;;  %v2959_v59 = vmax.f32 %v2934_v20, 0.0  ;;  %v2935_v13 = vadd.f32 %v9922_v3, %v2903_v61 }
 0x3de   :  { %v2672_v40 = vpop.f32.mrb[244].mxu1 }
 0x3df   :  { %v3075_v57 = vrot.slane %v3039_v5, 1  ;;  %v3433_v1 = vrot.slane %v3039_v5, 3  ;;  %v2991_v24 = vmul.f32 %v9931_v35, %v2959_v59  ;;  %v2960_v51 = vmax.f32 %v2935_v13, 0.0  ;;  %v7600_v37 = vpop.f32.mrb[245].mxu1  ;;  %7749 = vmatmul.mubr.msk.bf16.gmra.mrb[44].mxu0 %vm3095_vm5, %v3039_v5 }
 0x3e0   :  { %v2720_v21 = vadd.f32 %v2672_v40, %v9883_v2  ;;  %v2675_v41 = vpop.f32.mrb[246].mxu1  ;;  %7752 = vmatprep.mubr.msk.bf16.mxu0 %vm8225_vm1, %v11374_v22 }
 0x3e1   :  { %v10150_v42 = vadd.f32 %v9939_v56, %v2991_v24  ;;  %v2992_v19 = vmul.f32 %v9931_v35, %v2960_v51  ;;  %v2721_v12 = vadd.f32 %v2675_v41, %v9886_v15  ;;  %v7601_v10 = vpop.f32.mrb[247].mxu1  ;;  %v3076_v38 = vsel %vm930_vm2, %v3073_v11, %v3075_v57 }
 0x3e2   :  { %v2904_v17 = vadd.f32 %v9877_v30, %v2720_v21  ;;  %v10157_v16 = vsel %vm1558_vm4, %v3431_v60, %v3433_v1 }
 0x3e3   :  { %v3637_v2 = vpack.c.bf16 %v10150_v42, %v10132_v31  ;;  %v10162_v45 = vadd.f32 %v9939_v56, %v2992_v19  ;;  %v2905_v20 = vadd.f32 %v9880_v44, %v2721_v12  ;;  %7697 = vmatmul.mubr.msk.bf16.gmra.mrb[28].mxu1 %vm3095_vm5, %v3076_v38 }
 0x3e4   :  { %v2936_v15 = vadd.f32 %v9922_v3, %v2904_v17  ;;  %7700 = vmatprep.mubr.msk.bf16.mxu1 %vm8225_vm1, %v11374_v22 }
 0x3e5   :  { %v3040_v30 = vpack.c.bf16 %v10162_v45, %v10150_v42  ;;  %v2937_v11 = vadd.f32 %v9922_v3, %v2905_v20 }
 0x3e6   :  { %v2961_v60 = vmax.f32 %v2936_v15, 0.0  ;;  %v2680_v61 = vpop.f32.mrb[248].mxu1 }
 0x3e7   :  { %v3077_v5 = vrot.slane %v3040_v30, 1  ;;  %v3435_v59 = vrot.slane %v3040_v30, 3  ;;  %v2962_v13 = vmax.f32 %v2937_v11, 0.0  ;;  %v2722_v40 = vadd.f32 %v2680_v61, %v9895_v32  ;;  %v7604_v44 = vpop.f32.mrb[249].mxu1  ;;  %7753 = vmatmul.mubr.msk.bf16.gmra.mrb[48].mxu0 %vm3095_vm5, %v3040_v30 }
 0x3e8   :  { %v2993_v24 = vmul.f32 %v9931_v35, %v2961_v60  ;;  %v2683_v51 = vpop.f32.mrb[250].mxu1  ;;  %7756 = vmatprep.mubr.msk.bf16.mxu0 %vm8225_vm1, %v11374_v22 }
 0x3e9   :  { %v2994_v37 = vmul.f32 %v9931_v35, %v2962_v13  ;;  %v2906_v21 = vadd.f32 %v9889_v34, %v2722_v40  ;;  %v2723_v41 = vadd.f32 %v2683_v51, %v9898_v62  ;;  %v7605_v19 = vpop.f32.mrb[251].mxu1  ;;  %v3078_v12 = vsel %vm930_vm2, %v3075_v57, %v3077_v5 }
 0x3ea   :  { %v10182_v32 = vadd.f32 %v9939_v56, %v2993_v24  ;;  %v10185_v10 = vsel %vm1558_vm4, %v3433_v1, %v3435_v59 }
 0x3eb   :  { %v10188_v38 = vadd.f32 %v9939_v56, %v2994_v37  ;;  %v2938_v17 = vadd.f32 %v9922_v3, %v2906_v21  ;;  %v2907_v20 = vadd.f32 %v9892_v18, %v2723_v41  ;;  %7701 = vmatmul.mubr.msk.bf16.gmra.mrb[32].mxu1 %vm3095_vm5, %v3078_v12  ;;  %v11375_v41 = vld [vmem:[#allocation11_spill] sm:$0xff] }
 0x3ec   :  { %v3638_v34 = vpack.c.bf16 %v10182_v32, %v10162_v45  ;;  %7704 = vmatprep.mubr.msk.bf16.mxu1 %vm8225_vm1, %v11374_v22 }
 0x3ed   :  { %v3041_v62 = vpack.c.bf16 %v10188_v38, %v10182_v32  ;;  %v2963_v57 = vmax.f32 %v2938_v17, 0.0  ;;  %v2939_v1 = vadd.f32 %v9922_v3, %v2907_v20 }
 0x3ee   :  { %v2688_v15 = vpop.f32.mrb[252].mxu1 }
 0x3ef   :  { %v3079_v30 = vrot.slane %v3041_v62, 1  ;;  %v3437_v11 = vrot.slane %v3041_v62, 3  ;;  %v2995_v60 = vmul.f32 %v9931_v35, %v2963_v57  ;;  %v2964_v18 = vmax.f32 %v2939_v1, 0.0  ;;  %v7608_v61 = vpop.f32.mrb[253].mxu1  ;;  %7757 = vmatmul.mubr.msk.bf16.gmra.mrb[52].mxu0 %vm3095_vm5, %v3041_v62 }
 0x3f0   :  { %v2724_v13 = vadd.f32 %v2688_v15, %v9907_v9  ;;  %v2691_v40 = vpop.f32.mrb[254].mxu1  ;;  %7760 = vmatprep.mubr.msk.bf16.mxu0 %vm8225_vm1, %v11374_v22 }
 0x3f1   :  { %v10206_v44 = vadd.f32 %v9939_v56, %v2995_v60  ;;  %v2996_v24 = vmul.f32 %v9931_v35, %v2964_v18  ;;  %v2725_v51 = vadd.f32 %v2691_v40, %v9910_v26  ;;  %v7609_v37 = vpop.f32.mrb[255].mxu1  ;;  %v3080_v21 = vsel %vm930_vm2, %v3077_v5, %v3079_v30 }
 0x3f2   :  { %v2908_v19 = vadd.f32 %v11375_v41, %v2724_v13  ;;  %v10213_v12 = vsel %vm1558_vm4, %v3435_v59, %v3437_v11 }
 0x3f3   :  { %v3639_v9 = vpack.c.bf16 %v10206_v44, %v10188_v38  ;;  %v10218_v17 = vadd.f32 %v9939_v56, %v2996_v24  ;;  %v2909_v20 = vadd.f32 %v9904_v47, %v2725_v51  ;;  %7705 = vmatmul.mubr.msk.bf16.gmra.mrb[36].mxu1 %vm3095_vm5, %v3080_v21 }
 0x3f4   :  { %v2940_v26 = vadd.f32 %v9922_v3, %v2908_v19  ;;  %7708 = vmatprep.mubr.msk.bf16.mxu1 %vm8225_vm1, %v11374_v22 }
 0x3f5   :  { %v3042_v5 = vpack.c.bf16 %v10218_v17, %v10206_v44  ;;  %v2941_v59 = vadd.f32 %v9922_v3, %v2909_v20 }
 0x3f6   :  { %v2965_v62 = vmax.f32 %v2940_v26, 0.0  ;;  %v2696_v57 = vpop.f32.mrb[0].mxu1 }
 0x3f7   :  { %v3081_v1 = vrot.slane %v3042_v5, 1  ;;  %v3439_v15 = vrot.slane %v3042_v5, 3  ;;  %v2966_v60 = vmax.f32 %v2941_v59, 0.0  ;;  %v2726_v18 = vadd.f32 %v2696_v57, %v9916_v39  ;;  %v7612_v47 = vpop.f32.mrb[1].mxu1  ;;  %7761 = vmatmul.mubr.msk.bf16.gmra.mrb[56].mxu0 %vm3095_vm5, %v3042_v5 }
 0x3f8   :  { %v2997_v61 = vmul.f32 %v9931_v35, %v2965_v62  ;;  %v2699_v13 = vpop.f32.mrb[2].mxu1  ;;  %7816 = vmatprep.mubr.msk.bf16.mxu0 %vm8225_vm1, %v11374_v22 }
 0x3f9   :  { %v2998_v40 = vmul.f32 %v9931_v35, %v2966_v60  ;;  %v2910_v24 = vadd.f32 %v9913_v6, %v2726_v18  ;;  %v7613_v51 = vpop.f32.mrb[3].mxu1  ;;  %v3082_v37 = vsel %vm930_vm2, %v3079_v30, %v3081_v1  ;;  %v3440_v21 = vsel %vm1558_vm4, %v3437_v11, %v3439_v15 }
 0x3fa   :  { %v3029_v39 = vadd.f32 %v9939_v56, %v2997_v61 }
 0x3fb   :  { %v3030_v41 = vadd.f32 %v9939_v56, %v2998_v40  ;;  %v2942_v19 = vadd.f32 %v9922_v3, %v2910_v24  ;;  %7709 = vmatmul.mubr.msk.bf16.gmra.mrb[40].mxu1 %vm3095_vm5, %v3082_v37 }
 0x3fc   :  { %v3640_v20 = vpack.c.bf16 %v3029_v39, %v10218_v17  ;;  %7712 = vmatprep.mubr.msk.bf16.mxu1 %vm8225_vm1, %v11374_v22 }
 0x3fd   :  { %v3416_v26 = vpack.c.bf16 %v3030_v41, %v3029_v39  ;;  %v2967_v6 = vmax.f32 %v2942_v19, 0.0 }
 0x3ff   :  { %v3441_v5 = vrot.slane %v3416_v26, 3  ;;  %v2999_v30 = vmul.f32 %v9931_v35, %v2967_v6  ;;  %7817 = vmatmul.mubr.msk.bf16.vlgmr.msra.gmra.mrb[60].mxu0 %vm3095_vm5, %v3631_v48 }
 0x400   :  { %7820 = vmatprep.mubr.msk.bf16.mxu0 %vm8225_vm1, %v11374_v22 }
 0x401   :  { %v3031_v3 = vadd.f32 %v9939_v56, %v2999_v30  ;;  %v3442_v11 = vsel %vm1558_vm4, %v3439_v15, %v3441_v5 }
 0x403   :  { %v3641_v17 = vpack.c.bf16 %v3031_v3, %v3030_v41  ;;  %7713 = vmatmul.mubr.msk.bf16.gmra.mrb[44].mxu1 %vm3095_vm5, %v3081_v1 }
 0x404   :  { %7768 = vmatprep.mubr.msk.bf16.mxu1 %vm8225_vm1, %v11374_v22 }
 0x407   :  { %7821 = vmatmul.mubr.msk.bf16.gmra.mrb[64].mxu0 %vm3095_vm5, %v3632_v7 }
 0x408   :  { %7824 = vmatprep.mubr.msk.bf16.mxu0 %vm8225_vm1, %v11374_v22 }
 0x40b   :  { %7769 = vmatmul.mubr.msk.bf16.vlgmr.msra.gmra.mrb[48].mxu1 %vm3095_vm5, %v10010_v36 }
 0x40c   :  { %7772 = vmatprep.mubr.msk.bf16.mxu1 %vm8225_vm1, %v11374_v22 }
 0x40f   :  { %7825 = vmatmul.mubr.msk.bf16.gmra.mrb[68].mxu0 %vm3095_vm5, %v3633_v33 }
 0x410   :  { %7828 = vmatprep.mubr.msk.bf16.mxu0 %vm8225_vm1, %v11374_v22 }
 0x413   :  { %7773 = vmatmul.mubr.msk.bf16.gmra.mrb[52].mxu1 %vm3095_vm5, %v10045_v46 }
 0x414   :  { %7776 = vmatprep.mubr.msk.bf16.mxu1 %vm8225_vm1, %v11374_v22 }
 0x417   :  { %7829 = vmatmul.mubr.msk.bf16.gmra.mrb[72].mxu0 %vm3095_vm5, %v3634_v23 }
 0x418   :  { %7832 = vmatprep.mubr.msk.bf16.mxu0 %vm8225_vm1, %v11374_v22 }
 0x41b   :  { %7777 = vmatmul.mubr.msk.bf16.gmra.mrb[56].mxu1 %vm3095_vm5, %v10073_v0 }
 0x41c   :  { %7780 = vmatprep.mubr.msk.bf16.mxu1 %vm8225_vm1, %v11374_v22 }
 0x41f   :  { %7833 = vmatmul.mubr.msk.bf16.gmra.mrb[76].mxu0 %vm3095_vm5, %v3635_v4 }
 0x420   :  { %7836 = vmatprep.mubr.msk.bf16.mxu0 %vm8225_vm1, %v11374_v22 }
 0x423   :  { %7781 = vmatmul.mubr.msk.bf16.gmra.mrb[60].mxu1 %vm3095_vm5, %v10101_v29 }
 0x424   :  { %7784 = vmatprep.mubr.msk.bf16.mxu1 %vm8225_vm1, %v11374_v22 }
 0x427   :  { %7837 = vmatmul.mubr.msk.bf16.gmra.mrb[80].mxu0 %vm3095_vm5, %v3636_v25 }
 0x428   :  { %7840 = vmatprep.mubr.msk.bf16.mxu0 %vm8225_vm1, %v11374_v22 }
 0x42b   :  { %7785 = vmatmul.mubr.msk.bf16.gmra.mrb[64].mxu1 %vm3095_vm5, %v10129_v28 }
 0x42c   :  { %7788 = vmatprep.mubr.msk.bf16.mxu1 %vm8225_vm1, %v11374_v22 }
 0x42f   :  { %7841 = vmatmul.mubr.msk.bf16.gmra.mrb[84].mxu0 %vm3095_vm5, %v3637_v2 }
 0x430   :  { %7844 = vmatprep.mubr.msk.bf16.mxu0 %vm8225_vm1, %v11374_v22 }
 0x433   :  { %7789 = vmatmul.mubr.msk.bf16.gmra.mrb[68].mxu1 %vm3095_vm5, %v10157_v16 }
 0x434   :  { %7792 = vmatprep.mubr.msk.bf16.mxu1 %vm8225_vm1, %v11374_v22 }
 0x437   :  { %7845 = vmatmul.mubr.msk.bf16.gmra.mrb[88].mxu0 %vm3095_vm5, %v3638_v34 }
 0x438   :  { %7848 = vmatprep.mubr.msk.bf16.mxu0 %vm8225_vm1, %v11374_v22 }
 0x43b   :  { %7793 = vmatmul.mubr.msk.bf16.gmra.mrb[72].mxu1 %vm3095_vm5, %v10185_v10 }
 0x43c   :  { %7796 = vmatprep.mubr.msk.bf16.mxu1 %vm8225_vm1, %v11374_v22 }
 0x43f   :  { %7849 = vmatmul.mubr.msk.bf16.gmra.mrb[92].mxu0 %vm3095_vm5, %v3639_v9 }
 0x440   :  { %7852 = vmatprep.mubr.msk.bf16.mxu0 %vm8225_vm1, %v11374_v22 }
 0x443   :  { %7797 = vmatmul.mubr.msk.bf16.gmra.mrb[76].mxu1 %vm3095_vm5, %v10213_v12 }
 0x444   :  { %7800 = vmatprep.mubr.msk.bf16.mxu1 %vm8225_vm1, %v11374_v22 }
 0x447   :  { %7853 = vmatmul.mubr.msk.bf16.gmra.mrb[96].mxu0 %vm3095_vm5, %v3640_v20 }
 0x448   :  { %7856 = vmatprep.mubr.msk.bf16.mxu0 %vm8225_vm1, %v11374_v22 }
 0x44b   :  { %7801 = vmatmul.mubr.msk.bf16.gmra.mrb[80].mxu1 %vm3095_vm5, %v3440_v21 }
 0x44c   :  { %7804 = vmatprep.mubr.msk.bf16.mxu1 %vm8225_vm1, %v11374_v22 }
 0x44f   :  { %7857 = vmatmul.mubr.msk.bf16.gmra.mrb[100].mxu0 %vm3095_vm5, %v3641_v17 }
 0x453   :  { %7805 = vmatmul.mubr.msk.bf16.gmra.mrb[84].mxu1 %vm3095_vm5, %v3442_v11 }
 0x454   :  { %7808 = vmatprep.mubr.msk.bf16.mxu1 %vm8225_vm1, %v11374_v22 }
 0x45b   :  { %7809 = vmatmul.mubr.msk.bf16.gmra.mrb[88].mxu1 %vm3095_vm5, %v3441_v5 }
 0x47a   :  { %v3329_v35 = vpop.f32.mrb[16].mxu0 }
 0x47b   :  { %v7722_v56 = vpop.f32.mrb[17].mxu0 }
 0x47c   :  { %v3332_v63 = vpop.f32.mrb[18].mxu0 }
 0x47d   :  { %v7723_v53 = vpop.f32.mrb[19].mxu0 }
 0x482   :  { %v3337_v48 = vpop.f32.mrb[20].mxu0 }
 0x483   :  { %v7726_v43 = vpop.f32.mrb[21].mxu0 }
 0x484   :  { %v3340_v36 = vpop.f32.mrb[22].mxu0 }
 0x485   :  { %v3163_v54 = vpop.f32.mrb[4].mxu1  ;;  %v7727_v14 = vpop.f32.mrb[23].mxu0 }
 0x486   :  { %v10347_v7 = vadd.f32 %v3329_v35, %v3163_v54  ;;  %v7674_v58 = vpop.f32.mrb[5].mxu1 }
 0x487   :  { %v3166_v46 = vpop.f32.mrb[6].mxu1 }
 0x488   :  { %v10349_v33 = vadd.f32 %v3332_v63, %v3166_v46  ;;  %v7675_v50 = vpop.f32.mrb[7].mxu1 }
 0x48a   :  { %v3345_v55 = vpop.f32.mrb[24].mxu0 }
 0x48b   :  { %v7730_v0 = vpop.f32.mrb[25].mxu0 }
 0x48c   :  { %v3348_v49 = vpop.f32.mrb[26].mxu0 }
 0x48d   :  { %v7731_v23 = vpop.f32.mrb[27].mxu0 }
 0x48e   :  { %v3171_v52 = vpop.f32.mrb[8].mxu1 }
 0x48f   :  { %v10351_v29 = vadd.f32 %v3337_v48, %v3171_v52  ;;  %v7678_v4 = vpop.f32.mrb[9].mxu1 }
 0x490   :  { %v3174_v27 = vpop.f32.mrb[10].mxu1 }
 0x491   :  { %v10353_v8 = vadd.f32 %v3340_v36, %v3174_v27  ;;  %v7679_v28 = vpop.f32.mrb[11].mxu1 }
 0x492   :  { %v3353_v31 = vpop.f32.mrb[28].mxu0 }
 0x493   :  { %v7734_v25 = vpop.f32.mrb[29].mxu0 }
 0x494   :  { %v3356_v42 = vpop.f32.mrb[30].mxu0 }
 0x495   :  { %v7735_v16 = vpop.f32.mrb[31].mxu0 }
 0x496   :  { %v3179_v2 = vpop.f32.mrb[12].mxu1  ;;  %v8053_v16 = vld [vmem:[%s11223_s19 + $0x140] sm:$0xff]  }
 0x497   :  { %v10355_v45 = vadd.f32 %v3345_v55, %v3179_v2  ;;  %v7682_v32 = vpop.f32.mrb[13].mxu1  ;;  %v8054_v2 = vld [vmem:[%s11223_s19 + $0x100] sm:$0xff]   ;;  %7030 = vmatprep.subr.bf16.mxu0 %v8053_v16 }
 0x498   :  { %v3182_v10 = vpop.f32.mrb[14].mxu1  ;;  %7031 = vmatpush3.bf16.msra.mxu0 %v8054_v2 }
 0x499   :  { %v10357_v38 = vadd.f32 %v3348_v49, %v3182_v10  ;;  %v7683_v34 = vpop.f32.mrb[15].mxu1 }
 0x49a   :  { %v3361_v44 = vpop.f32.mrb[32].mxu0 }
 0x49b   :  { %v7738_v12 = vpop.f32.mrb[33].mxu0 }
 0x49c   :  { %v3364_v9 = vpop.f32.mrb[34].mxu0 }
 0x49d   :  { %v7739_v59 = vpop.f32.mrb[35].mxu0 }
 0x49e   :  { %v3187_v62 = vpop.f32.mrb[16].mxu1 }
 0x49f   :  { %v10359_v57 = vadd.f32 %v3353_v31, %v3187_v62  ;;  %v7686_v1 = vpop.f32.mrb[17].mxu1 }
 0x4a0   :  { %v3190_v15 = vpop.f32.mrb[18].mxu1 }
 0x4a1   :  { %v10361_v60 = vadd.f32 %v3356_v42, %v3190_v15  ;;  %v7687_v18 = vpop.f32.mrb[19].mxu1 }
 0x4a2   :  { %v3369_v47 = vpop.f32.mrb[36].mxu0 }
 0x4a3   :  { %v7742_v61 = vpop.f32.mrb[37].mxu0 }
 0x4a4   :  { %v3372_v13 = vpop.f32.mrb[38].mxu0 }
 0x4a5   :  { %v7743_v40 = vpop.f32.mrb[39].mxu0 }
 0x4a6   :  { %v3195_v24 = vpop.f32.mrb[20].mxu1 }
 0x4a7   :  { %v10363_v51 = vadd.f32 %v3361_v44, %v3195_v24  ;;  %v7690_v37 = vpop.f32.mrb[21].mxu1  ;;  %v8055_v24 = vld [vmem:[%s11223_s19 + $0x148] sm:$0xff]  }
 0x4a8   :  { %v3198_v21 = vpop.f32.mrb[22].mxu1  ;;  %v8056_v37 = vld [vmem:[%s11223_s19 + $0x108] sm:$0xff]   ;;  %7032 = vmatprep.subr.bf16.mxu0 %v8055_v24 }
 0x4a9   :  { %v10365_v39 = vadd.f32 %v3364_v9, %v3198_v21  ;;  %v7691_v41 = vpop.f32.mrb[23].mxu1  ;;  %7033 = vmatpush3.bf16.msra.mxu0 %v8056_v37 }
 0x4aa   :  { %v3377_v19 = vpop.f32.mrb[40].mxu0 }
 0x4ab   :  { %v7746_v20 = vpop.f32.mrb[41].mxu0 }
 0x4ac   :  { %v3380_v26 = vpop.f32.mrb[42].mxu0 }
 0x4ad   :  { %v7747_v6 = vpop.f32.mrb[43].mxu0 }
 0x4ae   :  { %v3203_v5 = vpop.f32.mrb[24].mxu1 }
 0x4af   :  { %v10367_v30 = vadd.f32 %v3369_v47, %v3203_v5  ;;  %v7694_v3 = vpop.f32.mrb[25].mxu1 }
 0x4b0   :  { %v3206_v11 = vpop.f32.mrb[26].mxu1 }
 0x4b1   :  { %v10369_v17 = vadd.f32 %v3372_v13, %v3206_v11  ;;  %v7695_v35 = vpop.f32.mrb[27].mxu1 }
 0x4b2   :  { %v3385_v56 = vpop.f32.mrb[44].mxu0 }
 0x4b3   :  { %v7750_v63 = vpop.f32.mrb[45].mxu0 }
 0x4b4   :  { %v3388_v53 = vpop.f32.mrb[46].mxu0 }
 0x4b5   :  { %v7751_v48 = vpop.f32.mrb[47].mxu0 }
 0x4b6   :  { %v3211_v43 = vpop.f32.mrb[28].mxu1 }
 0x4b7   :  { %v10371_v36 = vadd.f32 %v3377_v19, %v3211_v43  ;;  %v7698_v54 = vpop.f32.mrb[29].mxu1 }
 0x4b8   :  { %v3214_v14 = vpop.f32.mrb[30].mxu1 }
 0x4b9   :  { %v10373_v58 = vadd.f32 %v3380_v26, %v3214_v14  ;;  %v7699_v46 = vpop.f32.mrb[31].mxu1  ;;  %v8058_v14 = vld [vmem:[%s11223_s19 + $0x110] sm:$0xff]  }
 0x4ba   :  { %v3393_v50 = vpop.f32.mrb[48].mxu0 }
 0x4bb   :  { %v7754_v55 = vpop.f32.mrb[49].mxu0 }
 0x4bc   :  { %v3396_v0 = vpop.f32.mrb[50].mxu0 }
 0x4bd   :  { %v7755_v49 = vpop.f32.mrb[51].mxu0 }
 0x4be   :  { %v3219_v23 = vpop.f32.mrb[32].mxu1 }
 0x4bf   :  { %v10375_v52 = vadd.f32 %v3385_v56, %v3219_v23  ;;  %v7702_v4 = vpop.f32.mrb[33].mxu1  ;;  %v8057_v56 = vld [vmem:[%s11223_s19 + $0x150] sm:$0xff]   ;;  %v10413_v23 = vld [vmem:[%s11216_s12] ss:$0 sm:$0xff] }
 0x4c0   :  { %v3222_v27 = vpop.f32.mrb[34].mxu1  ;;  %7034 = vmatprep.subr.bf16.mxu0 %v8057_v56 }
 0x4c1   :  { %v10377_v28 = vadd.f32 %v3388_v53, %v3222_v27  ;;  %v7703_v31 = vpop.f32.mrb[35].mxu1  ;;  %7035 = vmatpush3.bf16.msra.mxu0 %v8058_v14 }
 0x4c2   :  { %v3401_v25 = vpop.f32.mrb[52].mxu0 }
 0x4c3   :  { %v7758_v42 = vpop.f32.mrb[53].mxu0 }
 0x4c4   :  { %v3404_v32 = vpop.f32.mrb[54].mxu0 }
 0x4c5   :  { %v7759_v10 = vpop.f32.mrb[55].mxu0 }
 0x4c6   :  { %v3227_v34 = vpop.f32.mrb[36].mxu1  ;;  %v8060_v10 = vld [vmem:[%s11223_s19 + $0x118] sm:$0xff]  }
 0x4c7   :  { %v10385_v44 = vadd.f32 %v3393_v50, %v3227_v34  ;;  %v7706_v12 = vpop.f32.mrb[37].mxu1  ;;  %v8061_v34 = vld [vmem:[%s11223_s19 + $0x160] sm:$0xff]  }
 0x4c8   :  { %v3230_v9 = vpop.f32.mrb[38].mxu1 }
 0x4c9   :  { %v10387_v59 = vadd.f32 %v3396_v0, %v3230_v9  ;;  %v7707_v62 = vpop.f32.mrb[39].mxu1 }
 0x4ca   :  { %v3409_v1 = vpop.f32.mrb[56].mxu0 }
 0x4cb   :  { %v7762_v15 = vpop.f32.mrb[57].mxu0 }
 0x4cc   :  { %v3412_v18 = vpop.f32.mrb[58].mxu0 }
 0x4cd   :  { %v7763_v47 = vpop.f32.mrb[59].mxu0 }
 0x4ce   :  { %v3235_v61 = vpop.f32.mrb[40].mxu1  ;;  %v8062_v47 = vld [vmem:[%s11223_s19 + $0x120] sm:$0xff]  }
 0x4cf   :  { %v10389_v13 = vadd.f32 %v3401_v25, %v3235_v61  ;;  %v7710_v40 = vpop.f32.mrb[41].mxu1 }
 0x4d0   :  { %v3238_v21 = vpop.f32.mrb[42].mxu1 }
 0x4d1   :  { %v10397_v41 = vadd.f32 %v3404_v32, %v3238_v21  ;;  %v7711_v19 = vpop.f32.mrb[43].mxu1 }
 0x4d2   :  { %v3725_v20 = vpop.f32.mrb[60].mxu0 }
 0x4d3   :  { %v7818_v26 = vpop.f32.mrb[61].mxu0 }
 0x4d4   :  { %v3728_v6 = vpop.f32.mrb[62].mxu0 }
 0x4d5   :  { %v7819_v5 = vpop.f32.mrb[63].mxu0 }
 0x4d6   :  { %v3243_v3 = vpop.f32.mrb[44].mxu1 }
 0x4d7   :  { %v10399_v11 = vadd.f32 %v3409_v1, %v3243_v3  ;;  %v7714_v35 = vpop.f32.mrb[45].mxu1 }
 0x4d8   :  { %v3246_v63 = vpop.f32.mrb[46].mxu1 }
 0x4d9   :  { %v10404_v53 = vadd.f32 %v3412_v18, %v3246_v63  ;;  %v7715_v48 = vpop.f32.mrb[47].mxu1  ;;  %v10435_v18 = vld [vmem:[%s11218_s14] ss:$0 sm:$0xff] }
 0x4da   :  { %v3733_v43 = vpop.f32.mrb[64].mxu0 }
 0x4db   :  { %v7822_v54 = vpop.f32.mrb[65].mxu0 }
 0x4dc   :  { %v3736_v46 = vpop.f32.mrb[66].mxu0 }
 0x4dd   :  { %v7823_v50 = vpop.f32.mrb[67].mxu0 }
 0x4de   :  { %v3522_v55 = vpop.f32.mrb[48].mxu1 }
 0x4df   :  { %v3609_v0 = vadd.f32 %v3522_v55, %v10347_v7  ;;  %v7770_v49 = vpop.f32.mrb[49].mxu1  ;;  %v8059_v7 = vld [vmem:[%s11223_s19 + $0x158] sm:$0xff]  }
 0x4e0   :  { %v3525_v4 = vpop.f32.mrb[50].mxu1  ;;  %7036 = vmatprep.subr.bf16.mxu0 %v8059_v7 }
 0x4e1   :  { %v3812_v27 = vadd.f32 %v3725_v20, %v3609_v0  ;;  %v3610_v31 = vadd.f32 %v3525_v4, %v10349_v33  ;;  %v7771_v25 = vpop.f32.mrb[51].mxu1  ;;  %v10429_v33 = vld [vmem:[%s11217_s13] ss:$0 sm:$0xff]  ;;  %7037 = vmatpush3.bf16.msra.mxu0 %v8060_v10  ;;  %s6330_s13 = sshll.u32 %s8230_s5, 4  ;;  %s6331_s13 = int_to_ptr.vmem [resolvable:$true] %s6330_s13 }
 0x4e2   :  { %v3741_v42 = vpop.f32.mrb[68].mxu0  ;;  %7038 = vmatprep.subr.bf16.mxu0 %v8061_v34  ;;  %p8204_p1 = scmp.lt.s32.totalorder %s6331_s13, %s6331_s13 }
 0x4e3   :  { %v3841_v16 = vadd.f32 %v10413_v23, %v3812_v27  ;;  %v3813_v2 = vadd.f32 %v3728_v6, %v3610_v31  ;;  %v7826_v32 = vpop.f32.mrb[69].mxu0 }
 0x4e4   :  { %v3744_v12 = vpop.f32.mrb[70].mxu0 }
 0x4e5   :  { %v3863_v9 = vmax.f32 %v3841_v16, 0.0  ;;  %v3842_v62 = vadd.f32 %v10413_v23, %v3813_v2  ;;  %v7827_v1 = vpop.f32.mrb[71].mxu0  ;;  %7039 = vmatpush3.bf16.msra.mxu0 %v8062_v47 }
 0x4e6   :  { %v3530_v15 = vpop.f32.mrb[52].mxu1 }
 0x4e7   :  { %v3892_v61 = vmul.f32 %v10429_v33, %v3863_v9  ;;  %v3864_v40 = vmax.f32 %v3842_v62, 0.0  ;;  %v3611_v24 = vadd.f32 %v3530_v15, %v10351_v29  ;;  %v7774_v37 = vpop.f32.mrb[53].mxu1 }
 0x4e8   :  { %v3533_v21 = vpop.f32.mrb[54].mxu1 }
 0x4e9   :  { %v3893_v19 = vmul.f32 %v10429_v33, %v3864_v40  ;;  %v3814_v20 = vadd.f32 %v3733_v43, %v3611_v24  ;;  %v3612_v26 = vadd.f32 %v3533_v21, %v10353_v8  ;;  %v7775_v6 = vpop.f32.mrb[55].mxu1  ;;  %v10445_v5 = vadd.f32 %v10435_v18, %v3892_v61 }
 0x4ea   :  { %v3749_v3 = vpop.f32.mrb[72].mxu0  ;;  %v8226_v43 = vmov 1983009808   ;;  %v3949_v8 = vlaneseq }
 0x4eb   :  { %v3843_v35 = vadd.f32 %v10413_v23, %v3814_v20  ;;  %v3815_v56 = vadd.f32 %v3736_v46, %v3612_v26  ;;  %v7830_v63 = vpop.f32.mrb[73].mxu0  ;;  %v10449_v29 = vadd.f32 %v10435_v18, %v3893_v19  ;;  %3944 = vst.msk [vmem:[#allocation2] sm:$0x3] %vm3943_vm6, %v10445_v5  ;;  %v3947_v54 = vunpack.c.l.s4 %v8226_v43 }
 0x4ec   :  { %v3752_v48 = vpop.f32.mrb[74].mxu0  ;;  %v3950_v16 = vshrl.u32 %v3949_v8, 7  ;;  %v8063_v8 = vld [vmem:[%s11223_s19 + $0x168] sm:$0xff]  }
 0x4ed   :  { %v3865_v14 = vmax.f32 %v3843_v35, 0.0  ;;  %v3844_v50 = vadd.f32 %v10413_v23, %v3815_v56  ;;  %v7831_v55 = vpop.f32.mrb[75].mxu0  ;;  %3978 = vst.msk [vmem:[#allocation2 + $0x2] sm:$0x3] %vm3943_vm6, %v10449_v29  ;;  %v3948_v25 = vunpack.c.0.s8 %v3947_v54  ;;  %7040 = vmatprep.subr.bf16.mxu0 %v8063_v8 }
 0x4ee   :  { %v3538_v0 = vpop.f32.mrb[56].mxu1 }
 0x4ef   :  { %v3894_v46 = vmul.f32 %v10429_v33, %v3865_v14  ;;  %v3866_v49 = vmax.f32 %v3844_v50, 0.0  ;;  %v3613_v4 = vadd.f32 %v3538_v0, %v10355_v45  ;;  %v7778_v27 = vpop.f32.mrb[57].mxu1  ;;  %v10466_v61 = vsub.s32 %v3948_v25, %v3950_v16 }
 0x4f0   :  { %v3541_v31 = vpop.f32.mrb[58].mxu1 }
 0x4f1   :  { %v3895_v2 = vmul.f32 %v10429_v33, %v3866_v49  ;;  %v10459_v32 = vadd.f32 %v3741_v42, %v3613_v4  ;;  %v3614_v7 = vadd.f32 %v3541_v31, %v10357_v38  ;;  %v7779_v10 = vpop.f32.mrb[59].mxu1  ;;  %v3923_v34 = vadd.f32 %v10435_v18, %v3894_v46 }
 0x4f2   :  { %v3757_v9 = vpop.f32.mrb[76].mxu0 }
 0x4f3   :  { %v3817_v62 = vadd.f32 %v3744_v12, %v3614_v7  ;;  %v7834_v1 = vpop.f32.mrb[77].mxu0  ;;  %v10464_v15 = vadd.f32 %v10435_v18, %v3895_v2  ;;  %v4010_v45 = vcombine.high %v3923_v34, %v3923_v34 }
 0x4f4   :  { %v3760_v47 = vpop.f32.mrb[78].mxu0 }
 0x4f5   :  { %v3846_v40 = vadd.f32 %v10413_v23, %v3817_v62  ;;  %v7835_v24 = vpop.f32.mrb[79].mxu0  ;;  %v4038_v42 = vcombine.high %v10464_v15, %v10464_v15  ;;  %v4017_v37 = vrot.slane %v4010_v45, %v10466_v61 }
 0x4f6   :  { %v3546_v38 = vpop.f32.mrb[60].mxu1 }
 0x4f7   :  { %v3868_v21 = vmax.f32 %v3846_v40, 0.0  ;;  %v3615_v12 = vadd.f32 %v3546_v38, %v10359_v57  ;;  %v7782_v19 = vpop.f32.mrb[61].mxu1  ;;  %v10474_v26 = vrot.slane %v4038_v42, %v10466_v61  ;;  %v4018_v6 = vcombine.high %v4017_v37, %v4017_v37  ;;  %v8064_v57 = vld [vmem:[%s11223_s19 + $0x128] sm:$0xff]  }
 0x4f8   :  { %v3549_v20 = vpop.f32.mrb[62].mxu1  ;;  %7041 = vmatpush3.bf16.msra.mxu0 %v8064_v57 }
 0x4f9   :  { %v3897_v35 = vmul.f32 %v10429_v33, %v3868_v21  ;;  %v3818_v56 = vadd.f32 %v3749_v3, %v3615_v12  ;;  %v3616_v63 = vadd.f32 %v3549_v20, %v10361_v60  ;;  %v7783_v43 = vpop.f32.mrb[63].mxu1  ;;  %4020 = vst.msk [vmem:[#allocation2 + $0x4] sm:$0x3] %vm3943_vm6, %v4018_v6  ;;  %v4050_v14 = vcombine.high %v10474_v26, %v10474_v26 }
 0x4fa   :  { %v3765_v54 = vpop.f32.mrb[80].mxu0  ;;  %v8066_v43 = vld [vmem:[%s11223_s19 + $0x130] sm:$0xff]  }
 0x4fb   :  { %v3847_v50 = vadd.f32 %v10413_v23, %v3818_v56  ;;  %v3819_v3 = vadd.f32 %v3752_v48, %v3616_v63  ;;  %v7838_v55 = vpop.f32.mrb[81].mxu0  ;;  %v3926_v60 = vadd.f32 %v10435_v18, %v3897_v35  ;;  %4052 = vst.msk [vmem:[#allocation2 + $0x6] sm:$0x3] %vm3943_vm6, %v4050_v14  ;;  %v8065_v63 = vld [vmem:[%s11223_s19 + $0x170] sm:$0xff]  }
 0x4fc   :  { %v3768_v0 = vpop.f32.mrb[82].mxu0  ;;  %7042 = vmatprep.subr.bf16.mxu0 %v8065_v63 }
 0x4fd   :  { %v3869_v46 = vmax.f32 %v3847_v50, 0.0  ;;  %v3848_v49 = vadd.f32 %v10413_v23, %v3819_v3  ;;  %v7839_v4 = vpop.f32.mrb[83].mxu0  ;;  %v4083_v27 = vcombine.high %v3926_v60, %v3926_v60  ;;  %7043 = vmatpush3.bf16.msra.mxu0 %v8066_v43  ;;  %v8067_v43 = vld [vmem:[%s11223_s19 + $0x178] sm:$0xff]  }
 0x4fe   :  { %v3554_v31 = vpop.f32.mrb[64].mxu1  ;;  %7044 = vmatprep.subr.bf16.mxu0 %v8067_v43 }
 0x4ff   :  { %v3898_v25 = vmul.f32 %v10429_v33, %v3869_v46  ;;  %v3870_v16 = vmax.f32 %v3848_v49, 0.0  ;;  %v3617_v2 = vadd.f32 %v3554_v31, %v10363_v51  ;;  %v7786_v48 = vpop.f32.mrb[65].mxu1  ;;  %v4090_v7 = vrot.slane %v4083_v27, %v10466_v61 }
 0x500   :  { %v3557_v10 = vpop.f32.mrb[66].mxu1 }
 0x501   :  { %v3899_v34 = vmul.f32 %v10429_v33, %v3870_v16  ;;  %v3820_v62 = vadd.f32 %v3757_v9, %v3617_v2  ;;  %v3618_v1 = vadd.f32 %v3557_v10, %v10365_v39  ;;  %v7787_v45 = vpop.f32.mrb[67].mxu1  ;;  %v4093_v40 = vcombine.high %v4090_v7, %v4090_v7  ;;  %4092 = vst.msk [vmem:[#allocation2 + $0x8] sm:$0x3] %vm3943_vm6, %v4090_v7 }
 0x502   :  { %v10497_v24 = vpop.f32.mrb[84].mxu0  ;;  %v3927_v42 = vadd.f32 %v10435_v18, %v3898_v25 }
 0x503   :  { %v3849_v38 = vadd.f32 %v10413_v23, %v3820_v62  ;;  %v3821_v51 = vadd.f32 %v3760_v47, %v3618_v1  ;;  %4094 = vrot.lane.b32.xlu1 %v4093_v40, %s8227_s8  ;;  %v7842_v37 = vpop.f32.mrb[85].mxu0  ;;  %v3928_v21 = vadd.f32 %v10435_v18, %v3899_v34 }
 0x504   :  { %v10503_v9 = vpop.f32.mrb[86].mxu0  ;;  %v4105_v39 = vrot.slane %v3927_v42, %v10466_v61  ;;  %v4115_v12 = vcombine.high %v3927_v42, %v3927_v42 }
 0x505   :  { %v3871_v19 = vmax.f32 %v3849_v38, 0.0  ;;  %v3850_v20 = vadd.f32 %v10413_v23, %v3821_v51  ;;  %v7843_v6 = vpop.f32.mrb[87].mxu0  ;;  %v4137_v35 = vrot.slane %v3928_v21, %v10466_v61 }
 0x506   :  { %v3562_v56 = vpop.f32.mrb[68].mxu1  ;;  %v4122_v47 = vrot.slane %v4115_v12, %v10466_v61  ;;  %v4110_v55 = vcombine.high %v4105_v39, %v4105_v39 }
 0x507   :  { %v3900_v8 = vmul.f32 %v10429_v33, %v3871_v19  ;;  %v3872_v57 = vmax.f32 %v3850_v20, 0.0  ;;  %v3619_v14 = vadd.f32 %v3562_v56, %v10367_v30  ;;  %4106 = vrot.lane.b32.xlu1 %v4105_v39, %s8228_s11  ;;  %4138 = vrot.lane.b32.xlu0 %v4137_v35, %s8228_s11  ;;  %v7790_v50 = vpop.f32.mrb[69].mxu1  ;;  %v4142_v1 = vcombine.high %v4137_v35, %v4137_v35 }
 0x508   :  { %v3565_v3 = vpop.f32.mrb[70].mxu1  ;;  %v4125_v60 = vcombine.high %v4122_v47, %v4122_v47  ;;  %4124 = vst.msk [vmem:[#allocation2 + $0xa] sm:$0x3] %vm3943_vm6, %v4122_v47 }
 0x509   :  { %v3901_v46 = vmul.f32 %v10429_v33, %v3872_v57  ;;  %v3822_v49 = vadd.f32 %v3765_v54, %v3619_v14  ;;  %v3620_v4 = vadd.f32 %v3565_v3, %v10369_v17  ;;  %v7791_v27 = vpop.f32.mrb[71].mxu1  ;;  %v3929_v30 = vadd.f32 %v10435_v18, %v3900_v8  ;;  %v8068_v8 = vld [vmem:[%s11223_s19 + $0x138] sm:$0xff]  }
 0x50a   :  { %v10523_v31 = vpop.f32.mrb[88].mxu0  ;;  %7045 = vmatpush3.bf16.msra.mxu0 %v8068_v8 }
 0x50b   :  { %v3851_v25 = vadd.f32 %v10413_v23, %v3822_v49  ;;  %v3823_v16 = vadd.f32 %v3768_v0, %v3620_v4  ;;  %4111 = vrot.lane.b32.xlu1 %v4110_v55, %s8229_s2  ;;  %4126 = vrot.lane.b32.xlu0 %v4125_v60, %s8227_s8  ;;  %v7846_v2 = vpop.f32.mrb[89].mxu0  ;;  %v4158_v48 = vcombine.high %v3929_v30, %v3929_v30 }
 0x50c   :  { %v10528_v7 = vpop.f32.mrb[90].mxu0  ;;  %v3930_v17 = vadd.f32 %v10435_v18, %v3901_v46  ;;  %v4154_v54 = vrot.slane %v3929_v30, %v10466_v61 }
 0x50d   :  { %v3873_v10 = vmax.f32 %v3851_v25, 0.0  ;;  %v3852_v34 = vadd.f32 %v10413_v23, %v3823_v16  ;;  %v7847_v62 = vpop.f32.mrb[91].mxu0  ;;  %v4165_v0 = vrot.slane %v4158_v48, %v10466_v61 }
 0x50e   :  { %v3570_v45 = vpop.f32.mrb[72].mxu1  ;;  %v4190_v40 = vcombine.high %v3930_v17, %v3930_v17  ;;  %v4182_v42 = vrot.slane %v3930_v17, %v10466_v61  ;;  %v4155_v38 = vcombine.high %v4154_v54, %v4154_v54 }
 0x50f   :  { %v3874_v51 = vmax.f32 %v3852_v34, 0.0  ;;  %v3621_v37 = vadd.f32 %v3570_v45, %v10371_v36  ;;  %4143 = vrot.lane.b32.xlu0 %v4142_v1, %s8229_s2  ;;  %4166 = vrot.lane.b32.xlu1 %v4165_v0, %s8227_s8  ;;  %v7794_v21 = vpop.f32.mrb[73].mxu1  ;;  %v3902_v39 = vmul.f32 %v10429_v33, %v3873_v10  ;;  %v4170_v19 = vcombine.high %v4165_v0, %v4165_v0 }
 0x510   :  { %v3573_v12 = vpop.f32.mrb[74].mxu1  ;;  %4157 = vst.msk [vmem:[#allocation2 + $0xc] sm:$0x3] %vm3943_vm6, %v4155_v38  ;;  %v4187_v20 = vcombine.high %v4182_v42, %v4182_v42  ;;  %v4197_v36 = vrot.slane %v4190_v40, %v10466_v61 }
 0x511   :  { %v3903_v6 = vmul.f32 %v10429_v33, %v3874_v51  ;;  %v3824_v35 = vadd.f32 %v10497_v24, %v3621_v37  ;;  %v3622_v56 = vadd.f32 %v3573_v12, %v10373_v58  ;;  %v7795_v47 = vpop.f32.mrb[75].mxu1  ;;  %v3931_v50 = vadd.f32 %v10435_v18, %v3902_v39 }
 0x512   :  { %v10544_v63 = vpop.f32.mrb[92].mxu0  ;;  %4189 = vst.msk [vmem:[#allocation2 + $0xe] sm:$0x3] %vm3943_vm6, %v4187_v20  ;;  %v4202_v49 = vcombine.high %v4197_v36, %v4197_v36 }
 0x513   :  { %v3853_v57 = vadd.f32 %v10413_v23, %v3824_v35  ;;  %v3825_v24 = vadd.f32 %v10503_v9, %v3622_v56  ;;  %4171 = vrot.lane.b32.xlu1 %v4170_v19, %s8228_s11  ;;  %4198 = vrot.lane.b32.xlu0 %v4197_v36, %s8227_s8  ;;  %v7850_v58 = vpop.f32.mrb[93].mxu0  ;;  %v3932_v3 = vadd.f32 %v10435_v18, %v3903_v6 }
 0x514   :  { %v10557_v14 = vpop.f32.mrb[94].mxu0  ;;  %v4214_v48 = vrot.slane %v3931_v50, %v10466_v61 }
 0x515   :  { %v3875_v55 = vmax.f32 %v3853_v57, 0.0  ;;  %v3854_v60 = vadd.f32 %v10413_v23, %v3825_v24  ;;  %v7851_v46 = vpop.f32.mrb[95].mxu0  ;;  %v4227_v9 = vrot.slane %v3932_v3, %v10466_v61  ;;  %4219 = vst.msk [vmem:[#allocation2 + $0x10] sm:$0x3] %vm3943_vm6, %v3932_v3  ;;  %v4233_v54 = vcombine.high %v3932_v3, %v3932_v3 }
 0x516   :  { %v3578_v4 = vpop.f32.mrb[76].mxu1 }
 0x517   :  { %v3904_v27 = vmul.f32 %v10429_v33, %v3875_v55  ;;  %v3876_v30 = vmax.f32 %v3854_v60, 0.0  ;;  %v3623_v25 = vadd.f32 %v3578_v4, %v10375_v52  ;;  %4203 = vrot.lane.b32.xlu0 %v4202_v49, %s8228_s11  ;;  %4183 = vrot.lane.b32.xlu1 %v4182_v42, %s8229_s2  ;;  %v7798_v16 = vpop.f32.mrb[77].mxu1  ;;  %v4228_v17 = vcombine.high %v4227_v9, %v4227_v9 }
 0x518   :  { %v3581_v2 = vpop.f32.mrb[78].mxu1  ;;  %v4240_v51 = vrot.slane %v4233_v54, %v10466_v61 }
 0x519   :  { %v3905_v10 = vmul.f32 %v10429_v33, %v3876_v30  ;;  %v3826_v34 = vadd.f32 %v10523_v31, %v3623_v25  ;;  %v3624_v62 = vadd.f32 %v3581_v2, %v10377_v28  ;;  %v7799_v1 = vpop.f32.mrb[79].mxu1  ;;  %v3933_v0 = vadd.f32 %v10435_v18, %v3904_v27  ;;  %v8069_v28 = vld [vmem:[%s11223_s19 + $0x240] sm:$0xff]  }
 0x51a   :  { %v10573_v52 = vpop.f32.mrb[96].mxu0  ;;  %7074 = vmatprep.subr.bf16.mxu0 %v8069_v28  ;;  %v4245_v8 = vcombine.high %v4240_v51, %v4240_v51 }
 0x51b   :  { %v3855_v45 = vadd.f32 %v10413_v23, %v3826_v34  ;;  %v3827_v40 = vadd.f32 %v10528_v7, %v3624_v62  ;;  %4215 = vrot.lane.b32.xlu0 %v4214_v48, %s8229_s2  ;;  %4229 = vrot.lane.b32.xlu1 %v4228_v17, %s8227_s8  ;;  %v7854_v42 = vpop.f32.mrb[97].mxu0  ;;  %v4258_v38 = vrot.slane %v3933_v0, %v10466_v61 }
 0x51c   :  { %4250 = vst.msk [vmem:[#allocation2 + $0x12] sm:$0x3] %vm3943_vm6, %v3933_v0  ;;  %v3800_v31 = vpop.f32.mrb[98].mxu0  ;;  %v4264_v37 = vcombine.high %v3933_v0, %v3933_v0  ;;  %v3934_v21 = vadd.f32 %v10435_v18, %v3905_v10 }
 0x51d   :  { %v3877_v7 = vmax.f32 %v3855_v45, 0.0  ;;  %v3856_v39 = vadd.f32 %v10413_v23, %v3827_v40  ;;  %v7855_v12 = vpop.f32.mrb[99].mxu0  ;;  %v4259_v19 = vcombine.high %v4258_v38, %v4258_v38 }
 0x51e   :  { %v3586_v20 = vpop.f32.mrb[80].mxu1  ;;  %v4282_v6 = vcombine.high %v3934_v21, %v3934_v21  ;;  %v4271_v57 = vrot.slane %v4264_v37, %v10466_v61 }
 0x51f   :  { %v3906_v35 = vmul.f32 %v10429_v33, %v3877_v7  ;;  %v3878_v56 = vmax.f32 %v3856_v39, 0.0  ;;  %v3625_v47 = vadd.f32 %v3586_v20, %v10385_v44  ;;  %4241 = vrot.lane.b32.xlu1 %v4240_v51, %s8228_s11  ;;  %4260 = vrot.lane.b32.xlu0 %v4259_v19, %s8227_s8  ;;  %v7802_v36 = vpop.f32.mrb[81].mxu1 }
 0x520   :  { %v3589_v43 = vpop.f32.mrb[82].mxu1  ;;  %v4289_v24 = vrot.slane %v4282_v6, %v10466_v61  ;;  %v4276_v48 = vcombine.high %v4271_v57, %v4271_v57 }
 0x521   :  { %v3907_v58 = vmul.f32 %v10429_v33, %v3878_v56  ;;  %v3828_v50 = vadd.f32 %v10544_v63, %v3625_v47  ;;  %v3626_v3 = vadd.f32 %v3589_v43, %v10387_v59  ;;  %v7803_v55 = vpop.f32.mrb[83].mxu1  ;;  %v3935_v44 = vadd.f32 %v10435_v18, %v3906_v35 }
 0x522   :  { %v3805_v60 = vpop.f32.mrb[100].mxu0  ;;  %v4290_v46 = vcombine.high %v4289_v24, %v4289_v24 }
 0x523   :  { %v3857_v49 = vadd.f32 %v10413_v23, %v3828_v50  ;;  %v3829_v4 = vadd.f32 %v10557_v14, %v3626_v3  ;;  %4246 = vrot.lane.b32.xlu1 %v4245_v8, %s8229_s2  ;;  %4272 = vrot.lane.b32.xlu0 %v4271_v57, %s8228_s11  ;;  %v7858_v9 = vpop.f32.mrb[101].mxu0  ;;  %v4300_v30 = vrot.slane %v3935_v44, %v10466_v61 }
 0x524   :  { %v3808_v27 = vpop.f32.mrb[102].mxu0  ;;  %v3936_v63 = vadd.f32 %v10435_v18, %v3907_v58  ;;  %v4310_v59 = vcombine.high %v3935_v44, %v3935_v44  ;;  %4292 = vst.msk [vmem:[#allocation2 + $0x14] sm:$0x3] %vm3943_vm6, %v4290_v46 }
 0x525   :  { %v3879_v25 = vmax.f32 %v3857_v49, 0.0  ;;  %v3858_v16 = vadd.f32 %v10413_v23, %v3829_v4  ;;  %v7859_v2 = vpop.f32.mrb[103].mxu0  ;;  %v4305_v0 = vcombine.high %v4300_v30, %v4300_v30 }
 0x526   :  { %v3594_v17 = vpop.f32.mrb[84].mxu1  ;;  %v4317_v14 = vrot.slane %v4310_v59, %v10466_v61  ;;  %v4332_v45 = vrot.slane %v3936_v63, %v10466_v61  ;;  %v4342_v39 = vcombine.high %v3936_v63, %v3936_v63 }
 0x527   :  { %v3908_v54 = vmul.f32 %v10429_v33, %v3879_v25  ;;  %v3880_v10 = vmax.f32 %v3858_v16, 0.0  ;;  %v3627_v34 = vadd.f32 %v3594_v17, %v10389_v13  ;;  %4277 = vrot.lane.b32.xlu0 %v4276_v48, %s8229_s2  ;;  %4301 = vrot.lane.b32.xlu1 %v4300_v30, %s8227_s8  ;;  %v7806_v62 = vpop.f32.mrb[85].mxu1 }
 0x528   :  { %v3597_v1 = vpop.f32.mrb[86].mxu1  ;;  %v4322_v40 = vcombine.high %v4317_v14, %v4317_v14  ;;  %v4349_v57 = vrot.slane %v4342_v39, %v10466_v61  ;;  %v3845_v62 = vadd.f32 %v10413_v23, %v10459_v32  ;;  %v3952_v32 = vrot.slane %v10445_v5, %v10466_v61 }
 0x529   :  { %v3909_v42 = vmul.f32 %v10429_v33, %v3880_v10  ;;  %v3830_v38 = vadd.f32 %v10573_v52, %v3627_v34  ;;  %v3628_v28 = vadd.f32 %v3597_v1, %v10397_v41  ;;  %v7807_v51 = vpop.f32.mrb[87].mxu1  ;;  %v3937_v37 = vadd.f32 %v10435_v18, %v3908_v54 }
 0x52a   :  { %4324 = vst.msk [vmem:[#allocation2 + $0x16] sm:$0x3] %vm3943_vm6, %v4322_v40  ;;  %v4337_v41 = vcombine.high %v4332_v45, %v4332_v45  ;;  %v8089_v40 = vld [vmem:[%s11223_s19 + $0x40] sm:$0xff]   ;;  %v8093_v51 = vld [vmem:[%s11223_s19 + $0x48] sm:$0xff]   ;;  %v3986_v39 = vrot.slane %v10449_v29, %v10466_v61 }
 0x52b   :  { %v3859_v13 = vadd.f32 %v10413_v23, %v3830_v38  ;;  %v3831_v21 = vadd.f32 %v3800_v31, %v3628_v28  ;;  %4306 = vrot.lane.b32.xlu1 %v4305_v0, %s8228_s11  ;;  %4333 = vrot.lane.b32.xlu0 %v4332_v45, %s8227_s8  ;;  %v3938_v7 = vadd.f32 %v10435_v18, %v3909_v42  ;;  %v8091_v42 = vld [vmem:[%s11223_s19] sm:$0xff]   ;;  %v3867_v38 = vmax.f32 %v3845_v62, 0.0 }
 0x52c   :  { %v4355_v12 = vcombine.high %v3937_v37, %v3937_v37  ;;  %6986 = vmatprep.subr.bf16.mxu1 %v8089_v40  ;;  %v8095_v37 = vld [vmem:[%s11223_s19 + $0x8] sm:$0xff]   ;;  %v8070_v40 = vld [vmem:[%s11223_s19 + $0x200] sm:$0xff]  }
 0x52d   :  { %v3881_v19 = vmax.f32 %v3859_v13, 0.0  ;;  %v3860_v52 = vadd.f32 %v10413_v23, %v3831_v21  ;;  %v4387_v20 = vcombine.high %v3938_v7, %v3938_v7  ;;  %v4377_v3 = vrot.slane %v3938_v7, %v10466_v61  ;;  %6987 = vmatpush3.bf16.msra.mxu1 %v8091_v42 }
 0x52e   :  { %v3602_v6 = vpop.f32.mrb[88].mxu1  ;;  %v4362_v35 = vrot.slane %v4355_v12, %v10466_v61  ;;  %6988 = vmatprep.subr.bf16.mxu1 %v8093_v51  ;;  %v3896_v13 = vmul.f32 %v10429_v33, %v3867_v38  ;;  %v3953_v21 = vcombine.high %v3952_v32, %v3952_v32  ;;  %v8097_v12 = vld [vmem:[%s11223_s19 + $0x50] sm:$0xff]   ;;  %v8071_v38 = vld [vmem:[%s11223_s19 + $0x248] sm:$0xff]  }
 0x52f   :  { %v3882_v56 = vmax.f32 %v3860_v52, 0.0  ;;  %v3629_v47 = vadd.f32 %v3602_v6, %v10399_v11  ;;  %4318 = vrot.lane.b32.xlu1 %v4317_v14, %s8229_s2  ;;  %4338 = vrot.lane.b32.xlu0 %v4337_v41, %s8228_s11  ;;  %v7810_v31 = vpop.f32.mrb[89].mxu1  ;;  %v4394_v36 = vrot.slane %v4387_v20, %v10466_v61  ;;  %v3910_v43 = vmul.f32 %v10429_v33, %v3881_v19  ;;  %v8101_v6 = vld [vmem:[%s11223_s19 + $0x58] sm:$0xff]   ;;  %v8073_v51 = vld [vmem:[%s11223_s19 + $0x250] sm:$0xff]  }
 0x530   :  { %v3605_v8 = vpop.f32.mrb[90].mxu1  ;;  %4364 = vst.msk [vmem:[#allocation2 + $0x18] sm:$0x3] %vm3943_vm6, %v4362_v35  ;;  %v4365_v9 = vcombine.high %v4362_v35, %v4362_v35  ;;  %v4382_v25 = vcombine.high %v4377_v3, %v4377_v3  ;;  %v4028_v19 = vrot.slane %v10464_v15, %v10466_v61  ;;  %v3987_v52 = vcombine.high %v3986_v39, %v3986_v39  ;;  %v8103_v35 = vld [vmem:[%s11223_s19 + $0x18] sm:$0xff]  }
 0x531   :  { %v3911_v24 = vmul.f32 %v10429_v33, %v3882_v56  ;;  %v3832_v58 = vadd.f32 %v3805_v60, %v3629_v47  ;;  %v3630_v50 = vadd.f32 %v3605_v8, %v10404_v53  ;;  %v7811_v11 = vpop.f32.mrb[91].mxu1  ;;  %4396 = vst.msk [vmem:[#allocation2 + $0x1a] sm:$0x3] %vm3943_vm6, %v4394_v36  ;;  %v3939_v49 = vadd.f32 %v10435_v18, %v3910_v43  ;;  %v8105_v56 = vld [vmem:[%s11223_s19 + $0x60] sm:$0xff]   ;;  %v8111_v43 = vld [vmem:[%s11223_s19 + $0x28] sm:$0xff]  }
 0x532   :  { %v4397_v60 = vcombine.high %v4394_v36, %v4394_v36  ;;  %6989 = vmatpush3.bf16.msra.mxu1 %v8095_v37  ;;  %v3959_v41 = vcombine.high %v10445_v5, %v10445_v5  ;;  %v3925_v20 = vadd.f32 %v10435_v18, %v3896_v13  ;;  %v8107_v47 = vld [vmem:[%s11223_s19 + $0x20] sm:$0xff]   ;;  %v4033_v31 = vcombine.high %v4028_v19, %v4028_v19 }
 0x533   :  { %v3861_v55 = vadd.f32 %v10413_v23, %v3832_v58  ;;  %v3833_v44 = vadd.f32 %v3808_v27, %v3630_v50  ;;  %4350 = vrot.lane.b32.xlu0 %v4349_v57, %s8229_s2  ;;  %4378 = vrot.lane.b32.xlu1 %v4377_v3, %s8228_s11  ;;  %v3940_v46 = vadd.f32 %v10435_v18, %v3911_v24  ;;  %v8113_v24 = vld [vmem:[%s11223_s19 + $0x70] sm:$0xff]   ;;  %v8115_v3 = vld [vmem:[%s11223_s19 + $0x78] sm:$0xff]  }
 0x534   :  { %v4409_v63 = vrot.slane %v3939_v49, %v10466_v61  ;;  %6990 = vmatprep.subr.bf16.mxu1 %v8097_v12  ;;  %v3966_v15 = vrot.slane %v3959_v41, %v10466_v61  ;;  %v4060_v5 = vrot.slane %v3925_v20, %v10466_v61  ;;  %v8114_v58 = vld [vmem:[%s11223_s19 + $0x30] sm:$0xff]   ;;  %v4070_v11 = vcombine.high %v3925_v20, %v3925_v20  ;;  %v8078_v20 = vld [vmem:[%s11223_s19 + $0x220] sm:$0xff]  }
 0x535   :  { %v3883_v4 = vmax.f32 %v3861_v55, 0.0  ;;  %v4426_v53 = vrot.slane %v3940_v46, %v10466_v61  ;;  %v3862_v59 = vadd.f32 %v10413_v23, %v3833_v44  ;;  %v4430_v16 = vcombine.high %v3940_v46, %v3940_v46  ;;  %v8116_v55 = vld [vmem:[%s11223_s19 + $0x38] sm:$0xff]   ;;  %v8117_v46 = vld [vmem:[%s11223_s19 + $0xc0] sm:$0xff]  }
 0x536   :  { %v4414_v17 = vcombine.high %v4409_v63, %v4409_v63  ;;  %v3972_v8 = vcombine.high %v3966_v15, %v3966_v15  ;;  %v4065_v57 = vcombine.high %v4060_v5, %v4060_v5  ;;  %v4077_v44 = vrot.slane %v4070_v11, %v10466_v61  ;;  %v8085_v11 = vld [vmem:[%s11223_s19 + $0x340] sm:$0xff]  }
 0x537   :  { %v3912_v30 = vmul.f32 %v10429_v33, %v3883_v4  ;;  %4398 = vrot.lane.b32.xlu0 %v4397_v60, %s8227_s8  ;;  %4366 = vrot.lane.b32.xlu1 %v4365_v9, %s8227_s8  ;;  %v4427_v27 = vcombine.high %v4426_v53, %v4426_v53  ;;  %v3884_v14 = vmax.f32 %v3862_v59, 0.0  ;;  %v4437_v54 = vrot.slane %v4430_v16, %v10466_v61 }
 0x539   :  { %v3941_v2 = vadd.f32 %v10435_v18, %v3912_v30  ;;  %4429 = vst.msk [vmem:[#allocation2 + $0x1c] sm:$0x3] %vm3943_vm6, %v4427_v27  ;;  %v3913_v1 = vmul.f32 %v10429_v33, %v3884_v14  ;;  %v4442_v0 = vcombine.high %v4437_v54, %v4437_v54  ;;  %v8099_v33 = vld [vmem:[%s11223_s19 + $0x10] sm:$0xff]  }
 0x53a   :  { %6991 = vmatpush3.bf16.msra.mxu1 %v8099_v33  ;;  %v8076_v33 = vld [vmem:[%s11223_s19 + $0x218] sm:$0xff]  }
 0x53b   :  { %4383 = vrot.lane.b32.xlu1 %v4382_v25, %s8229_s2  ;;  %4410 = vrot.lane.b32.xlu0 %v4409_v63, %s8228_s11  ;;  %v4454_v48 = vrot.slane %v3941_v2, %v10466_v61  ;;  %v4462_v10 = vcombine.high %v3941_v2, %v3941_v2  ;;  %v3942_v28 = vadd.f32 %v10435_v18, %v3913_v1 }
 0x53c   :  { %6992 = vmatprep.subr.bf16.mxu1 %v8101_v6  ;;  %v3992_v18 = vcombine.high %v10449_v29, %v10449_v29  ;;  %v8109_v29 = vld [vmem:[%s11223_s19 + $0x68] sm:$0xff]  }
 0x53d   :  { %v4459_v34 = vcombine.high %v4454_v48, %v4454_v48  ;;  %v4469_v45 = vrot.slane %v4462_v10, %v10466_v61  ;;  %v4486_v7 = vrot.slane %v3942_v28, %v10466_v61  ;;  %v8072_v28 = vld [vmem:[%s11223_s19 + $0x208] sm:$0xff]  }
 0x53e   :  { %6993 = vmatpush3.bf16.msra.mxu1 %v8103_v35  ;;  %v3999_v36 = vrot.slane %v3992_v18, %v10466_v61  ;;  %v8079_v6 = vld [vmem:[%s11223_s19 + $0x268] sm:$0xff]  }
 0x53f   :  { %4415 = vrot.lane.b32.xlu0 %v4414_v17, %s8229_s2  ;;  %4438 = vrot.lane.b32.xlu1 %v4437_v54, %s8227_s8  ;;  %4461 = vst.msk [vmem:[#allocation2 + $0x1e] sm:$0x3] %vm3943_vm6, %v4459_v34  ;;  %v4474_v23 = vcombine.high %v4469_v45, %v4469_v45  ;;  %v8080_v18 = vld [vmem:[%s11223_s19 + $0x228] sm:$0xff]  }
 0x540   :  { %6994 = vmatprep.subr.bf16.mxu1 %v8105_v56  ;;  %v4004_v50 = vcombine.high %v3999_v36, %v3999_v36 }
 0x542   :  { %6995 = vmatpush3.bf16.msra.mxu1 %v8107_v47  ;;  %v8081_v47 = vld [vmem:[%s11223_s19 + $0x270] sm:$0xff]  }
 0x543   :  { %4443 = vrot.lane.b32.xlu1 %v4442_v0, %s8228_s11  ;;  %4470 = vrot.lane.b32.xlu0 %v4469_v45, %s8227_s8 }
 0x544   :  { %6996 = vmatprep.subr.bf16.mxu1 %v8109_v29 }
 0x546   :  { %6997 = vmatpush3.bf16.msra.mxu1 %v8111_v43 }
 0x547   :  { %4475 = vrot.lane.b32.xlu0 %v4474_v23, %s8228_s11  ;;  %4455 = vrot.lane.b32.xlu1 %v4454_v48, %s8229_s2 }
 0x548   :  { %6998 = vmatprep.subr.bf16.mxu1 %v8113_v24 }
 0x54a   :  { %6999 = vmatpush3.bf16.msra.mxu1 %v8114_v58 }
 0x54b   :  { %3954 = vrot.lane.b32.xlu1 %v3953_v21, %s8227_s8  ;;  %4487 = vrot.lane.b32.xlu0 %v4486_v7, %s8229_s2  ;;  %v8074_v21 = vld [vmem:[%s11223_s19 + $0x210] sm:$0xff]   ;;  %v8075_v7 = vld [vmem:[%s11223_s19 + $0x258] sm:$0xff]  }
 0x54c   :  { %7000 = vmatprep.subr.bf16.mxu1 %v8115_v3 }
 0x54e   :  { %7001 = vmatpush3.bf16.msra.mxu1 %v8116_v55 }
 0x54f   :  { %4029 = vrot.lane.b32.xlu1 %v4028_v19, %s8227_s8  ;;  %3988 = vrot.lane.b32.xlu0 %v3987_v52, %s8227_s8  ;;  %v8077_v19 = vld [vmem:[%s11223_s19 + $0x260] sm:$0xff]  }
 0x550   :  { %7008 = vmatprep.subr.bf16.mxu1 %v8117_v46 }
 0x553   :  { %3967 = vrot.lane.b32.xlu1 %v3966_v15, %s8228_s11  ;;  %4061 = vrot.lane.b32.xlu0 %v4060_v5, %s8227_s8  ;;  %s11376_s8 = sld [smem:[#allocation37_spill]] }
 0x557   :  { %4034 = vrot.lane.b32.xlu1 %v4033_v31, %s8228_s11  ;;  %4000 = vrot.lane.b32.xlu0 %v3999_v36, %s8228_s11 }
 0x55b   :  { %3973 = vrot.lane.b32.xlu1 %v3972_v8, %s8229_s2  ;;  %4066 = vrot.lane.b32.xlu0 %v4065_v57, %s8228_s11  ;;  %v8082_v8 = vld [vmem:[%s11223_s19 + $0x230] sm:$0xff]   ;;  %v8083_v57 = vld [vmem:[%s11223_s19 + $0x278] sm:$0xff]  }
 0x55f   :  { %4046 = vrot.lane.b32.xlu1 %v10474_v26, %s8229_s2  ;;  %4005 = vrot.lane.b32.xlu0 %v4004_v50, %s8229_s2  ;;  %v8084_v50 = vld [vmem:[%s11223_s19 + $0x238] sm:$0xff]  }
 0x563   :  { %4078 = vrot.lane.b32.xlu0 %v4077_v44, %s8229_s2  ;;  %v8086_v44 = vld [vmem:[%s11223_s19 + $0x300] sm:$0xff]  }
 0x575   :  { %v4095_v49 = vpop.permute.xlu1 %4094 }
 0x576   :  { %4097 = vst.msk [vmem:[#allocation2 + $0x8] sm:$0x3] %vm3957_vm7, %v4095_v49  ;;  %v8087_v49 = vld [vmem:[%s11223_s19 + $0x348] sm:$0xff]  }
 0x579   :  { %v4107_v4 = vpop.permute.xlu1 %4106  ;;  %v4139_v26 = vpop.permute.xlu0 %4138 }
 0x57a   :  { %4109 = vst.msk [vmem:[#allocation2 + $0x8] sm:$0x3] %vm3970_vm8, %v4107_v4 }
 0x57d   :  { %v4112_v60 = vpop.permute.xlu1 %4111  ;;  %v4127_v9 = vpop.permute.xlu0 %4126 }
 0x57e   :  { %4114 = vst.msk [vmem:[#allocation2 + $0x8] sm:$0x3] %vm3976_vm9, %v4112_v60  ;;  %v8088_v60 = vld [vmem:[%s11223_s19 + $0x308] sm:$0xff]  }
 0x57f   :  { %4129 = vst.msk [vmem:[#allocation2 + $0xa] sm:$0x3] %vm3957_vm7, %v4127_v9  ;;  %v8090_v9 = vld [vmem:[%s11223_s19 + $0x350] sm:$0xff]  }
 0x580   :  { %4141 = vst.msk [vmem:[#allocation2 + $0xa] sm:$0x3] %vm3970_vm8, %v4139_v26 }
 0x581   :  { %v4144_v53 = vpop.permute.xlu0 %4143  ;;  %v4167_v30 = vpop.permute.xlu1 %4166 }
 0x582   :  { %4146 = vst.msk [vmem:[#allocation2 + $0xa] sm:$0x3] %vm3976_vm9, %v4144_v53 }
 0x583   :  { %4169 = vst.msk [vmem:[#allocation2 + $0xc] sm:$0x3] %vm3957_vm7, %v4167_v30 }
 0x585   :  { %v4172_v27 = vpop.permute.xlu1 %4171  ;;  %v4199_v63 = vpop.permute.xlu0 %4198 }
 0x586   :  { %4174 = vst.msk [vmem:[#allocation2 + $0xc] sm:$0x3] %vm3970_vm8, %v4172_v27  ;;  %v8092_v27 = vld [vmem:[%s11223_s19 + $0x310] sm:$0xff]  }
 0x587   :  { %4201 = vst.msk [vmem:[#allocation2 + $0xe] sm:$0x3] %vm3957_vm7, %v4199_v63  ;;  %v8094_v63 = vld [vmem:[%s11223_s19 + $0x358] sm:$0xff]  }
 0x589   :  { %v4204_v59 = vpop.permute.xlu0 %4203  ;;  %v4184_v25 = vpop.permute.xlu1 %4183 }
 0x58a   :  { %4206 = vst.msk [vmem:[#allocation2 + $0xe] sm:$0x3] %vm3970_vm8, %v4204_v59 }
 0x58b   :  { %4186 = vst.msk [vmem:[#allocation2 + $0xc] sm:$0x3] %vm3976_vm9, %v4184_v25 }
 0x58d   :  { %v4216_v16 = vpop.permute.xlu0 %4215  ;;  %v4230_v2 = vpop.permute.xlu1 %4229 }
 0x58e   :  { %4218 = vst.msk [vmem:[#allocation2 + $0xe] sm:$0x3] %vm3976_vm9, %v4216_v16 }
 0x58f   :  { %4232 = vst.msk [vmem:[#allocation2 + $0x10] sm:$0x3] %vm3957_vm7, %v4230_v2  ;;  %v8096_v2 = vld [vmem:[%s11223_s19 + $0x318] sm:$0xff]  }
 0x591   :  { %v4242_v48 = vpop.permute.xlu1 %4241  ;;  %v4261_v17 = vpop.permute.xlu0 %4260 }
 0x592   :  { %4244 = vst.msk [vmem:[#allocation2 + $0x10] sm:$0x3] %vm3970_vm8, %v4242_v48 }
 0x593   :  { %4263 = vst.msk [vmem:[#allocation2 + $0x12] sm:$0x3] %vm3957_vm7, %v4261_v17  ;;  %v8098_v17 = vld [vmem:[%s11223_s19 + $0x360] sm:$0xff]  }
 0x595   :  { %v4247_v14 = vpop.permute.xlu1 %4246  ;;  %v4273_v54 = vpop.permute.xlu0 %4272  ;;  %v10759_v10 = vld [vmem:[#allocation2 + $0x8] sm:$0xff] }
 0x596   :  { %4249 = vst.msk [vmem:[#allocation2 + $0x10] sm:$0x3] %vm3976_vm9, %v4247_v14  ;;  %v4523_v34 = vrot.slane %v10759_v10, %v10466_v61 }
 0x597   :  { %4275 = vst.msk [vmem:[#allocation2 + $0x12] sm:$0x3] %vm3970_vm8, %v4273_v54 }
 0x598   :  { %v4531_v62 = vcombine.high %v4523_v34, %v4523_v34  ;;  %v4587_v42 = vpack.c.bf16 %v4523_v34, %v4523_v34 }
 0x599   :  { %v4278_v1 = vpop.permute.xlu0 %4277  ;;  %v4302_v0 = vpop.permute.xlu1 %4301 }
 0x59a   :  { %4280 = vst.msk [vmem:[#allocation2 + $0x12] sm:$0x3] %vm3976_vm9, %v4278_v1  ;;  %v4588_v45 = vpack.c.bf16 %v4531_v62, %v4531_v62  ;;  %v8100_v1 = vld [vmem:[%s11223_s19 + $0x320] sm:$0xff]  }
 0x59b   :  { %4304 = vst.msk [vmem:[#allocation2 + $0x14] sm:$0x3] %vm3957_vm7, %v4302_v0  ;;  %v8102_v0 = vld [vmem:[%s11223_s19 + $0x368] sm:$0xff]  }
 0x59c   :  { %5742 = vmatprep.mubr.bf16.mxu0 %v4588_v45 }
 0x59d   :  { %5743 = vmatmul.mubr.bf16.vlgmr.msra.gmra.mrb[104].mxu0 %v4587_v42  ;;  %v4307_v23 = vpop.permute.xlu1 %4306  ;;  %v4334_v32 = vpop.permute.xlu0 %4333  ;;  %v8104_v42 = vld [vmem:[%s11223_s19 + $0x328] sm:$0xff]  }
 0x59e   :  { %7075 = vmatpush3.bf16.msra.mxu0 %v8070_v40  ;;  %4309 = vst.msk [vmem:[#allocation2 + $0x14] sm:$0x3] %vm3970_vm8, %v4307_v23 }
 0x59f   :  { %4336 = vst.msk [vmem:[#allocation2 + $0x16] sm:$0x3] %vm3957_vm7, %v4334_v32  ;;  %7076 = vmatprep.subr.bf16.mxu0 %v8071_v38  ;;  %v8106_v38 = vld [vmem:[%s11223_s19 + $0x370] sm:$0xff]  }
 0x5a1   :  { %v4319_v37 = vpop.permute.xlu1 %4318  ;;  %v4339_v13 = vpop.permute.xlu0 %4338 }
 0x5a2   :  { %7077 = vmatpush3.bf16.msra.mxu0 %v8072_v28  ;;  %4321 = vst.msk [vmem:[#allocation2 + $0x14] sm:$0x3] %vm3976_vm9, %v4319_v37  ;;  %v8108_v28 = vld [vmem:[%s11223_s19 + $0x330] sm:$0xff]  }
 0x5a3   :  { %4341 = vst.msk [vmem:[#allocation2 + $0x16] sm:$0x3] %vm3970_vm8, %v4339_v13  ;;  %7078 = vmatprep.subr.bf16.mxu0 %v8073_v51  ;;  %v8110_v51 = vld [vmem:[%s11223_s19 + $0x378] sm:$0xff]  }
 0x5a4   :  { %v8112_v13 = vld [vmem:[%s11223_s19 + $0x338] sm:$0xff]  }
 0x5a5   :  { %v4351_v39 = vpop.permute.xlu0 %4350  ;;  %v4379_v12 = vpop.permute.xlu1 %4378 }
 0x5a6   :  { %7079 = vmatpush3.bf16.msra.mxu0 %v8074_v21  ;;  %4353 = vst.msk [vmem:[#allocation2 + $0x16] sm:$0x3] %vm3976_vm9, %v4351_v39  ;;  %v5953_v21 = vld [vmem:[%s11219_s15] sm:$0x1] }
 0x5a7   :  { %7080 = vmatprep.subr.bf16.mxu0 %v8075_v7  ;;  %v5967_v39 = vsel %vm5965_vm10, %v5953_v21, 0  ;;  %v8156_v21 = vld [vmem:[%s11223_s19 + $0x2d8] sm:$0xff]  }
 0x5a9   :  { %v4399_v52 = vpop.permute.xlu0 %4398  ;;  %v4367_v41 = vpop.permute.xlu1 %4366 }
 0x5aa   :  { %7081 = vmatpush3.bf16.msra.mxu0 %v8076_v33  ;;  %4401 = vst.msk [vmem:[#allocation2 + $0x1a] sm:$0x3] %vm3957_vm7, %v4399_v52  ;;  %4369 = vst.msk [vmem:[#allocation2 + $0x18] sm:$0x3] %vm3957_vm7, %v4367_v41 }
 0x5ab   :  { %4381 = vst.msk [vmem:[#allocation2 + $0x18] sm:$0x3] %vm3970_vm8, %v4379_v12  ;;  %7082 = vmatprep.subr.bf16.mxu0 %v8077_v19  ;;  %v5951_v19 = vld [vmem:[%s11376_s8] sm:$0x3] }
 0x5ad   :  { %v4384_v35 = vpop.permute.xlu1 %4383  ;;  %v4411_v15 = vpop.permute.xlu0 %4410  ;;  %v10805_v5 = vld [vmem:[#allocation2 + $0x10] sm:$0xff] }
 0x5ae   :  { %7083 = vmatpush3.bf16.msra.mxu0 %v8078_v20  ;;  %4386 = vst.msk [vmem:[#allocation2 + $0x18] sm:$0x3] %vm3976_vm9, %v4384_v35  ;;  %v4540_v56 = vrot.slane %v10805_v5, %v10466_v61 }
 0x5af   :  { %4413 = vst.msk [vmem:[#allocation2 + $0x1a] sm:$0x3] %vm3970_vm8, %v4411_v15  ;;  %7084 = vmatprep.subr.bf16.mxu0 %v8079_v6  ;;  %v5952_v6 = vpack.c.bf16 %v5951_v19, %v5951_v19  ;;  %v8118_v15 = vld [vmem:[%s11223_s19 + $0x80] sm:$0xff]   ;;  %v8161_v19 = vld [vmem:[%s11223_s19 + $0x2a8] sm:$0xff]  }
 0x5b0   :  { %v4548_v31 = vcombine.high %v4540_v56, %v4540_v56  ;;  %v4591_v46 = vpack.c.bf16 %v4540_v56, %v4540_v56 }
 0x5b1   :  { %v4416_v36 = vpop.permute.xlu0 %4415  ;;  %v4439_v29 = vpop.permute.xlu1 %4438 }
 0x5b2   :  { %7085 = vmatpush3.bf16.msra.mxu0 %v8080_v18  ;;  %4418 = vst.msk [vmem:[#allocation2 + $0x1a] sm:$0x3] %vm3976_vm9, %v4416_v36  ;;  %v4592_v43 = vpack.c.bf16 %v4548_v31, %v4548_v31  ;;  %v8121_v36 = vld [vmem:[%s11223_s19 + $0x88] sm:$0xff]  }
 0x5b3   :  { %4441 = vst.msk [vmem:[#allocation2 + $0x1c] sm:$0x3] %vm3957_vm7, %v4439_v29  ;;  %7086 = vmatprep.subr.bf16.mxu0 %v8081_v47  ;;  %v8120_v47 = vld [vmem:[%s11223_s19 + $0xc8] sm:$0xff]   ;;  %v8122_v29 = vld [vmem:[%s11223_s19 + $0xd0] sm:$0xff]  }
 0x5b4   :  { %5822 = vmatprep.mubr.bf16.mxu0 %v4592_v43  ;;  %v8123_v43 = vld [vmem:[%s11223_s19 + $0x90] sm:$0xff]  }
 0x5b5   :  { %v4444_v24 = vpop.permute.xlu1 %4443  ;;  %v4471_v58 = vpop.permute.xlu0 %4470 }
 0x5b6   :  { %7087 = vmatpush3.bf16.msra.mxu0 %v8082_v8  ;;  %4446 = vst.msk [vmem:[#allocation2 + $0x1c] sm:$0x3] %vm3970_vm8, %v4444_v24  ;;  %v8124_v8 = vld [vmem:[%s11223_s19 + $0xd8] sm:$0xff]   ;;  %v8126_v24 = vld [vmem:[%s11223_s19 + $0xe0] sm:$0xff]  }
 0x5b7   :  { %4473 = vst.msk [vmem:[#allocation2 + $0x1e] sm:$0x3] %vm3957_vm7, %v4471_v58  ;;  %7088 = vmatprep.subr.bf16.mxu0 %v8083_v57  ;;  %v8125_v57 = vld [vmem:[%s11223_s19 + $0x98] sm:$0xff]   ;;  %v8127_v58 = vld [vmem:[%s11223_s19 + $0xa0] sm:$0xff]  }
 0x5b9   :  { %v4476_v3 = vpop.permute.xlu0 %4475  ;;  %v4456_v55 = vpop.permute.xlu1 %4455 }
 0x5ba   :  { %7089 = vmatpush3.bf16.msra.mxu0 %v8084_v50  ;;  %4478 = vst.msk [vmem:[#allocation2 + $0x1e] sm:$0x3] %vm3970_vm8, %v4476_v3  ;;  %v8128_v50 = vld [vmem:[%s11223_s19 + $0xe8] sm:$0xff]   ;;  %v8130_v3 = vld [vmem:[%s11223_s19 + $0xf0] sm:$0xff]  }
 0x5bb   :  { %4458 = vst.msk [vmem:[#allocation2 + $0x1c] sm:$0x3] %vm3976_vm9, %v4456_v55  ;;  %7118 = vmatprep.subr.bf16.mxu0 %v8085_v11  ;;  %v8129_v11 = vld [vmem:[%s11223_s19 + $0xa8] sm:$0xff]   ;;  %v4516_v55 = vcombine.high %v10759_v10, %v10759_v10  ;;  %v8134_v10 = vld [vmem:[%s11223_s19 + $0x1c0] sm:$0xff]  }
 0x5bd   :  { %5823 = vmatmul.mubr.bf16.vlgmr.msra.gmra.mrb[108].mxu0 %v4591_v46  ;;  %v3955_v4 = vpop.permute.xlu1 %3954  ;;  %v4488_v26 = vpop.permute.xlu0 %4487  ;;  %v8132_v46 = vld [vmem:[%s11223_s19 + $0xf8] sm:$0xff]  }
 0x5be   :  { %7119 = vmatpush3.bf16.msra.mxu0 %v8086_v44  ;;  %3958 = vst.msk [vmem:[#allocation2] sm:$0x3] %vm3957_vm7, %v3955_v4  ;;  %v8131_v44 = vld [vmem:[%s11223_s19 + $0xb0] sm:$0xff]   ;;  %v8133_v4 = vld [vmem:[%s11223_s19 + $0xb8] sm:$0xff]  }
 0x5bf   :  { %4490 = vst.msk [vmem:[#allocation2 + $0x1e] sm:$0x3] %vm3976_vm9, %v4488_v26  ;;  %7120 = vmatprep.subr.bf16.mxu0 %v8087_v49  ;;  %v4530_v49 = vrot.slane %v4516_v55, %v10466_v61  ;;  %v8177_v55 = vld [vmem:[%s11223_s19 + $0x3a8] sm:$0xff]  }
 0x5c1   :  { %v4030_v53 = vpop.permute.xlu1 %4029  ;;  %v3989_v30 = vpop.permute.xlu0 %3988  ;;  %v4532_v26 = vcombine.high %v4530_v49, %v4530_v49 }
 0x5c2   :  { %7121 = vmatpush3.bf16.msra.mxu0 %v8088_v60  ;;  %4032 = vst.msk [vmem:[#allocation2 + $0x4] sm:$0x3] %vm3957_vm7, %v4030_v53  ;;  %3991 = vst.msk [vmem:[#allocation2 + $0x2] sm:$0x3] %vm3957_vm7, %v3989_v30  ;;  %v8135_v60 = vld [vmem:[%s11223_s19 + $0x180] sm:$0xff]   ;;  %v8136_v53 = vld [vmem:[%s11223_s19 + $0x1c8] sm:$0xff]  }
 0x5c3   :  { %7122 = vmatprep.subr.bf16.mxu0 %v8090_v9  ;;  %v4590_v30 = vpack.c.bf16 %v4532_v26, %v4532_v26 }
 0x5c5   :  { %v3968_v59 = vpop.permute.xlu1 %3967  ;;  %v4062_v25 = vpop.permute.xlu0 %4061 }
 0x5c6   :  { %v10857_v16 = vld [vmem:[#allocation2 + $0x18] sm:$0xff]  ;;  %7123 = vmatpush3.bf16.msra.mxu0 %v8092_v27  ;;  %3971 = vst.msk [vmem:[#allocation2] sm:$0x3] %vm3970_vm8, %v3968_v59  ;;  %v8137_v27 = vld [vmem:[%s11223_s19 + $0x188] sm:$0xff]   ;;  %v8139_v59 = vld [vmem:[%s11223_s19 + $0x190] sm:$0xff]  }
 0x5c7   :  { %4064 = vst.msk [vmem:[#allocation2 + $0x6] sm:$0x3] %vm3957_vm7, %v4062_v25  ;;  %v4557_v48 = vrot.slane %v10857_v16, %v10466_v61  ;;  %7124 = vmatprep.subr.bf16.mxu0 %v8094_v63  ;;  %v8138_v63 = vld [vmem:[%s11223_s19 + $0x1d0] sm:$0xff]   ;;  %v8140_v25 = vld [vmem:[%s11223_s19 + $0x1d8] sm:$0xff]  }
 0x5c9   :  { %v4565_v14 = vcombine.high %v4557_v48, %v4557_v48  ;;  %v4035_v54 = vpop.permute.xlu1 %4034  ;;  %v4001_v34 = vpop.permute.xlu0 %4000  ;;  %v4595_v7 = vpack.c.bf16 %v4557_v48, %v4557_v48  ;;  %v8142_v48 = vld [vmem:[%s11223_s19 + $0x1e0] sm:$0xff]  }
 0x5ca   :  { %7125 = vmatpush3.bf16.msra.mxu0 %v8096_v2  ;;  %4037 = vst.msk [vmem:[#allocation2 + $0x4] sm:$0x3] %vm3970_vm8, %v4035_v54  ;;  %4003 = vst.msk [vmem:[#allocation2 + $0x2] sm:$0x3] %vm3970_vm8, %v4001_v34  ;;  %v8141_v2 = vld [vmem:[%s11223_s19 + $0x198] sm:$0xff]   ;;  %v8145_v54 = vld [vmem:[%s11223_s19 + $0x1a8] sm:$0xff]  }
 0x5cb   :  { %v4596_v62 = vpack.c.bf16 %v4565_v14, %v4565_v14  ;;  %7126 = vmatprep.subr.bf16.mxu0 %v8098_v17  ;;  %v8143_v17 = vld [vmem:[%s11223_s19 + $0x1a0] sm:$0xff]   ;;  %v8144_v14 = vld [vmem:[%s11223_s19 + $0x1e8] sm:$0xff]   ;;  %v8146_v34 = vld [vmem:[%s11223_s19 + $0x1f0] sm:$0xff]  }
 0x5cd   :  { %5902 = vmatprep.mubr.bf16.mxu0 %v4596_v62  ;;  %v3974_v45 = vpop.permute.xlu1 %3973  ;;  %v4067_v40 = vpop.permute.xlu0 %4066  ;;  %v4533_v62 = vcombine.high %v10805_v5, %v10805_v5  ;;  %v8150_v5 = vld [vmem:[%s11223_s19 + $0x2c0] sm:$0xff]  }
 0x5ce   :  { %7127 = vmatpush3.bf16.msra.mxu0 %v8100_v1  ;;  %3977 = vst.msk [vmem:[#allocation2] sm:$0x3] %vm3976_vm9, %v3974_v45  ;;  %v8147_v1 = vld [vmem:[%s11223_s19 + $0x1b0] sm:$0xff]  }
 0x5cf   :  { %4069 = vst.msk [vmem:[#allocation2 + $0x6] sm:$0x3] %vm3970_vm8, %v4067_v40  ;;  %7128 = vmatprep.subr.bf16.mxu0 %v8102_v0  ;;  %v8148_v0 = vld [vmem:[%s11223_s19 + $0x1f8] sm:$0xff]   ;;  %v4547_v45 = vrot.slane %v4533_v62, %v10466_v61  ;;  %v6711_v62 = vld [vmem:[%s11220_s16] ss:$0 sm:$0xff] }
 0x5d0   :  { %v8149_v40 = vld [vmem:[%s11223_s19 + $0x1b8] sm:$0xff]  }
 0x5d1   :  { %v4047_v23 = vpop.permute.xlu1 %4046  ;;  %v4006_v32 = vpop.permute.xlu0 %4005 }
 0x5d2   :  { %7129 = vmatpush3.bf16.msra.mxu0 %v8104_v42  ;;  %4049 = vst.msk [vmem:[#allocation2 + $0x4] sm:$0x3] %vm3976_vm9, %v4047_v23  ;;  %4008 = vst.msk [vmem:[#allocation2 + $0x2] sm:$0x3] %vm3976_vm9, %v4006_v32  ;;  %v4549_v42 = vcombine.high %v4547_v45, %v4547_v45  ;;  %v4589_v23 = vpack.c.bf16 %v4530_v49, %v4530_v49  ;;  %v8152_v32 = vld [vmem:[%s11223_s19 + $0x2c8] sm:$0xff]   ;;  %v8180_v49 = vld [vmem:[%s11223_s19 + $0x3f8] sm:$0xff]  }
 0x5d3   :  { %7130 = vmatprep.subr.bf16.mxu0 %v8106_v38  ;;  %v8151_v38 = vld [vmem:[%s11223_s19 + $0x280] sm:$0xff]  }
 0x5d5   :  { %v4079_v37 = vpop.permute.xlu0 %4078 }
 0x5d6   :  { %7131 = vmatpush3.bf16.msra.mxu0 %v8108_v28  ;;  %4081 = vst.msk [vmem:[#allocation2 + $0x6] sm:$0x3] %vm3976_vm9, %v4079_v37  ;;  %v4594_v28 = vpack.c.bf16 %v4549_v42, %v4549_v42  ;;  %v8154_v37 = vld [vmem:[%s11223_s19 + $0x2d0] sm:$0xff]  }
 0x5d7   :  { %7132 = vmatprep.subr.bf16.mxu0 %v8110_v51  ;;  %v8153_v51 = vld [vmem:[%s11223_s19 + $0x288] sm:$0xff]  }
 0x5da   :  { %7133 = vmatpush3.bf16.msra.mxu0 %v8112_v13  ;;  %v8155_v13 = vld [vmem:[%s11223_s19 + $0x290] sm:$0xff]  }
 0x5db   :  { %7860 = vmatprep.subr.bf16.mxu0 %v11374_v22 }
 0x5dd   :  { %5903 = vmatmul.mubr.bf16.vlgmr.msra.gmra.mrb[112].mxu0 %v4595_v7  ;;  %v4491_v12 = vld [vmem:[#allocation2] sm:$0xff]  ;;  %v8157_v7 = vld [vmem:[%s11223_s19 + $0x298] sm:$0xff]  }
 0x5de   :  { %7861 = vmatpush3.bf16.msra.mxu0 %v5967_v39  ;;  %7862 = vmatprep.mubr.msk.bf16.mxu0 %vm8225_vm1, %v11374_v22  ;;  %v4506_v33 = vrot.slane %v4491_v12, %v10466_v61  ;;  %v4499_v52 = vcombine.high %v4491_v12, %v4491_v12  ;;  %v8158_v39 = vld [vmem:[%s11223_s19 + $0x2e0] sm:$0xff]  }
 0x5df   :  { %7866 = vmatprep.subr.bf16.mxu0 %v11374_v22  ;;  %v8159_v12 = vld [vmem:[%s11223_s19 + $0x2a0] sm:$0xff]  }
 0x5e0   :  { %v4514_v41 = vcombine.high %v4506_v33, %v4506_v33  ;;  %v4513_v20 = vrot.slane %v4499_v52, %v10466_v61  ;;  %v4583_v56 = vpack.c.bf16 %v4506_v33, %v4506_v33  ;;  %v8160_v33 = vld [vmem:[%s11223_s19 + $0x2e8] sm:$0xff]   ;;  %v8182_v52 = vld [vmem:[%s11221_s17] sm:$0xff]  }
 0x5e2   :  { %v4584_v35 = vpack.c.bf16 %v4514_v41, %v4514_v41  ;;  %v4515_v18 = vcombine.high %v4513_v20, %v4513_v20  ;;  %v4585_v9 = vpack.c.bf16 %v4513_v20, %v4513_v20  ;;  %v8162_v41 = vld [vmem:[%s11223_s19 + $0x2f0] sm:$0xff]   ;;  %v4550_v20 = vcombine.high %v10857_v16, %v10857_v16  ;;  %v8165_v16 = vld [vmem:[%s11223_s19 + $0x2b8] sm:$0xff]  }
 0x5e4   :  { %5662 = vmatprep.mubr.bf16.mxu1 %v4584_v35  ;;  %v4586_v31 = vpack.c.bf16 %v4515_v18, %v4515_v18  ;;  %v8183_v35 = vld [vmem:[%s11221_s17 + $0x8] sm:$0xff]   ;;  %v4564_v18 = vrot.slane %v4550_v20, %v10466_v61  ;;  %v4593_v61 = vpack.c.bf16 %v4547_v45, %v4547_v45 }
 0x5e5   :  { %7863 = vmatmul.mubr.msk.bf16.vlgmr.msra.gmra.mrb[116].mxu0 %vm5961_vm11, %v5952_v6  ;;  %5663 = vmatmul.mubr.bf16.vlgmr.msra.gmra.mrb[92].mxu1 %v4583_v56  ;;  %v8163_v6 = vld [vmem:[%s11223_s19 + $0x2b0] sm:$0xff]   ;;  %v8166_v56 = vld [vmem:[%s11223_s19 + $0x3c0] sm:$0xff]  }
 0x5e6   :  { %7009 = vmatpush3.bf16.msra.mxu1 %v8118_v15  ;;  %5702 = vmatprep.mubr.bf16.mxu1 %v4586_v31  ;;  %v8164_v15 = vld [vmem:[%s11223_s19 + $0x2f8] sm:$0xff]   ;;  %v8167_v31 = vld [vmem:[%s11223_s19 + $0x380] sm:$0xff]  }
 0x5e7   :  { %7010 = vmatprep.subr.bf16.mxu1 %v8120_v47  ;;  %7870 = vmatprep.mubr.msk.bf16.mxu0 %vm8225_vm1, %v11374_v22  ;;  %v4566_v47 = vcombine.high %v4564_v18, %v4564_v18 }
 0x5e8   :  { %7867 = vmatpush3.bf16.msra.mxu0 %v8182_v52 }
 0x5e9   :  { %7868 = vmatprep.subr.bf16.mxu0 %v11374_v22 }
 0x5ea   :  { %7011 = vmatpush3.bf16.msra.mxu1 %v8121_v36  ;;  %v8168_v36 = vld [vmem:[%s11223_s19 + $0x3c8] sm:$0xff]  }
 0x5eb   :  { %7012 = vmatprep.subr.bf16.mxu1 %v8122_v29  ;;  %v4598_v29 = vpack.c.bf16 %v4566_v47, %v4566_v47 }
 0x5ec   :  { %7869 = vmatpush3.bf16.msra.mxu0 %v8183_v35 }
 0x5ed   :  { %7886 = vmatprep.subr.bf16.mxu0 %v11374_v22 }
 0x5ee   :  { %7013 = vmatpush3.bf16.msra.mxu1 %v8123_v43  ;;  %v8169_v43 = vld [vmem:[%s11223_s19 + $0x388] sm:$0xff]  }
 0x5ef   :  { %7014 = vmatprep.subr.bf16.mxu1 %v8124_v8  ;;  %v8170_v8 = vld [vmem:[%s11223_s19 + $0x3d0] sm:$0xff]  }
 0x5f2   :  { %7015 = vmatpush3.bf16.msra.mxu1 %v8125_v57  ;;  %v8171_v57 = vld [vmem:[%s11223_s19 + $0x390] sm:$0xff]  }
 0x5f3   :  { %7016 = vmatprep.subr.bf16.mxu1 %v8126_v24  ;;  %v8172_v24 = vld [vmem:[%s11223_s19 + $0x3d8] sm:$0xff]  }
 0x5f6   :  { %7017 = vmatpush3.bf16.msra.mxu1 %v8127_v58  ;;  %v8173_v58 = vld [vmem:[%s11223_s19 + $0x398] sm:$0xff]  }
 0x5f7   :  { %7018 = vmatprep.subr.bf16.mxu1 %v8128_v50  ;;  %v8174_v50 = vld [vmem:[%s11223_s19 + $0x3e0] sm:$0xff]  }
 0x5fa   :  { %7019 = vmatpush3.bf16.msra.mxu1 %v8129_v11  ;;  %v8175_v11 = vld [vmem:[%s11223_s19 + $0x3a0] sm:$0xff]  }
 0x5fb   :  { %7020 = vmatprep.subr.bf16.mxu1 %v8130_v3  ;;  %v8176_v3 = vld [vmem:[%s11223_s19 + $0x3e8] sm:$0xff]  }
 0x5fe   :  { %7021 = vmatpush3.bf16.msra.mxu1 %v8131_v44  ;;  %v8178_v44 = vld [vmem:[%s11223_s19 + $0x3f0] sm:$0xff]  }
 0x5ff   :  { %7022 = vmatprep.subr.bf16.mxu1 %v8132_v46  ;;  %v8179_v46 = vld [vmem:[%s11223_s19 + $0x3b0] sm:$0xff]  }
 0x602   :  { %7023 = vmatpush3.bf16.msra.mxu1 %v8133_v4  ;;  %v8181_v4 = vld [vmem:[%s11223_s19 + $0x3b8] sm:$0xff]  }
 0x603   :  { %7052 = vmatprep.subr.bf16.mxu1 %v8134_v10  ;;  %v4597_v10 = vpack.c.bf16 %v4564_v18, %v4564_v18 }
 0x605   :  { %5703 = vmatmul.mubr.bf16.vlgmr.msra.gmra.mrb[96].mxu1 %v4585_v9 }
 0x606   :  { %7053 = vmatpush3.bf16.msra.mxu1 %v8135_v60  ;;  %5782 = vmatprep.mubr.bf16.mxu1 %v4590_v30 }
 0x607   :  { %7054 = vmatprep.subr.bf16.mxu1 %v8136_v53 }
 0x60a   :  { %7055 = vmatpush3.bf16.msra.mxu1 %v8137_v27 }
 0x60b   :  { %7056 = vmatprep.subr.bf16.mxu1 %v8138_v63 }
 0x60e   :  { %7057 = vmatpush3.bf16.msra.mxu1 %v8139_v59 }
 0x60f   :  { %7058 = vmatprep.subr.bf16.mxu1 %v8140_v25 }
 0x612   :  { %7059 = vmatpush3.bf16.msra.mxu1 %v8141_v2 }
 0x613   :  { %7060 = vmatprep.subr.bf16.mxu1 %v8142_v48 }
 0x616   :  { %7061 = vmatpush3.bf16.msra.mxu1 %v8143_v17 }
 0x617   :  { %7062 = vmatprep.subr.bf16.mxu1 %v8144_v14 }
 0x61a   :  { %7063 = vmatpush3.bf16.msra.mxu1 %v8145_v54 }
 0x61b   :  { %7064 = vmatprep.subr.bf16.mxu1 %v8146_v34 }
 0x61e   :  { %7065 = vmatpush3.bf16.msra.mxu1 %v8147_v1 }
 0x61f   :  { %7066 = vmatprep.subr.bf16.mxu1 %v8148_v0 }
 0x622   :  { %7067 = vmatpush3.bf16.msra.mxu1 %v8149_v40 }
 0x623   :  { %7096 = vmatprep.subr.bf16.mxu1 %v8150_v5 }
 0x625   :  { %5783 = vmatmul.mubr.bf16.vlgmr.msra.gmra.mrb[100].mxu1 %v4589_v23 }
 0x626   :  { %7097 = vmatpush3.bf16.msra.mxu1 %v8151_v38  ;;  %5862 = vmatprep.mubr.bf16.mxu1 %v4594_v28 }
 0x627   :  { %7098 = vmatprep.subr.bf16.mxu1 %v8152_v32 }
 0x62a   :  { %7099 = vmatpush3.bf16.msra.mxu1 %v8153_v51 }
 0x62b   :  { %7100 = vmatprep.subr.bf16.mxu1 %v8154_v37  ;;  %v8184_v37 = vld [vmem:[%s11225_s21] sm:$0xff]  }
 0x62e   :  { %7101 = vmatpush3.bf16.msra.mxu1 %v8155_v13 }
 0x62f   :  { %7102 = vmatprep.subr.bf16.mxu1 %v8156_v21  ;;  %v8185_v21 = vld [vmem:[%s11225_s21 + $0x8] sm:$0xff]  }
 0x632   :  { %7103 = vmatpush3.bf16.msra.mxu1 %v8157_v7  ;;  %v8188_v7 = vld [vmem:[%s11226_s22] sm:$0xff]  }
 0x633   :  { %7104 = vmatprep.subr.bf16.mxu1 %v8158_v39  ;;  %v8186_v39 = vld [vmem:[%s11225_s21 + $0x10] sm:$0xff]  }
 0x636   :  { %7105 = vmatpush3.bf16.msra.mxu1 %v8159_v12  ;;  %v8189_v12 = vld [vmem:[%s11226_s22 + $0x8] sm:$0xff]  }
 0x637   :  { %7106 = vmatprep.subr.bf16.mxu1 %v8160_v33  ;;  %v8187_v33 = vld [vmem:[%s11225_s21 + $0x18] sm:$0xff]  }
 0x63a   :  { %7107 = vmatpush3.bf16.msra.mxu1 %v8161_v19  ;;  %v6582_v19 = vld [vmem:[%s11224_s20] ss:$0 sm:$0xff] }
 0x63b   :  { %7108 = vmatprep.subr.bf16.mxu1 %v8162_v41 }
 0x63e   :  { %7109 = vmatpush3.bf16.msra.mxu1 %v8163_v6 }
 0x63f   :  { %7110 = vmatprep.subr.bf16.mxu1 %v8164_v15 }
 0x642   :  { %7111 = vmatpush3.bf16.msra.mxu1 %v8165_v16 }
 0x643   :  { %7140 = vmatprep.subr.bf16.mxu1 %v8166_v56 }
 0x645   :  { %5863 = vmatmul.mubr.bf16.vlgmr.msra.gmra.mrb[104].mxu1 %v4593_v61 }
 0x646   :  { %7141 = vmatpush3.bf16.msra.mxu1 %v8167_v31  ;;  %5942 = vmatprep.mubr.bf16.mxu1 %v4598_v29 }
 0x647   :  { %7142 = vmatprep.subr.bf16.mxu1 %v8168_v36 }
 0x64a   :  { %7143 = vmatpush3.bf16.msra.mxu1 %v8169_v43 }
 0x64b   :  { %7144 = vmatprep.subr.bf16.mxu1 %v8170_v8  ;;  %v8190_v8 = vld [vmem:[%s11226_s22 + $0x10] sm:$0xff]  }
 0x64e   :  { %7145 = vmatpush3.bf16.msra.mxu1 %v8171_v57  ;;  %v8191_v57 = vld [vmem:[%s11226_s22 + $0x18] sm:$0xff]  }
 0x64f   :  { %7146 = vmatprep.subr.bf16.mxu1 %v8172_v24 }
 0x652   :  { %7147 = vmatpush3.bf16.msra.mxu1 %v8173_v58 }
 0x653   :  { %7148 = vmatprep.subr.bf16.mxu1 %v8174_v50 }
 0x656   :  { %7149 = vmatpush3.bf16.msra.mxu1 %v8175_v11 }
 0x657   :  { %7150 = vmatprep.subr.bf16.mxu1 %v8176_v3 }
 0x65a   :  { %7151 = vmatpush3.bf16.msra.mxu1 %v8177_v55 }
 0x65b   :  { %7152 = vmatprep.subr.bf16.mxu1 %v8178_v44 }
 0x65e   :  { %7153 = vmatpush3.bf16.msra.mxu1 %v8179_v46 }
 0x65f   :  { %7154 = vmatprep.subr.bf16.mxu1 %v8180_v49 }
 0x662   :  { %7155 = vmatpush3.bf16.msra.mxu1 %v8181_v4 }
 0x663   :  { %7874 = vmatprep.subr.bf16.mxu1 %v11374_v22 }
 0x665   :  { %5943 = vmatmul.mubr.bf16.vlgmr.msra.gmra.mrb[108].mxu1 %v4597_v10 }
 0x666   :  { %7882 = vmatprep.mubr.msk.bf16.mxu1 %vm8225_vm1, %v11374_v22  ;;  %7875 = vmatpush3.bf16.msra.mxu1 %v8188_v7 }
 0x667   :  { %7876 = vmatprep.subr.bf16.mxu1 %v11374_v22 }
 0x66a   :  { %7877 = vmatpush3.bf16.msra.mxu1 %v8189_v12 }
 0x66b   :  { %7878 = vmatprep.subr.bf16.mxu1 %v11374_v22 }
 0x66e   :  { %7879 = vmatpush3.bf16.msra.mxu1 %v8190_v8 }
 0x66f   :  { %7880 = vmatprep.subr.bf16.mxu1 %v11374_v22 }
 0x670   :  { %v7046_v26 = vpop.f32.mrb[104].mxu0 }
 0x671   :  { %v7047_v60 = vpop.f32.mrb[105].mxu0 }
 0x672   :  { %v7048_v9 = vadd.f32 %v7047_v60, %v7046_v26  ;;  %v7049_v53 = vpop.f32.mrb[106].mxu0  ;;  %7881 = vmatpush3.bf16.msra.mxu1 %v8191_v57 }
 0x673   :  { %v7050_v30 = vpop.f32.mrb[107].mxu0  ;;  %7898 = vmatprep.subr.bf16.mxu1 %v11374_v22 }
 0x674   :  { %v6713_v30 = vld [vmem:[%s11222_s18] ss:$0 sm:$0xff] }
 0x690   :  { %v7090_v27 = vpop.f32.mrb[108].mxu0 }
 0x691   :  { %v7091_v63 = vpop.f32.mrb[109].mxu0 }
 0x692   :  { %v7092_v59 = vadd.f32 %v7091_v63, %v7090_v27  ;;  %v7093_v25 = vpop.f32.mrb[110].mxu0 }
 0x693   :  { %v7094_v2 = vpop.f32.mrb[111].mxu0 }
 0x6b0   :  { %v7134_v48 = vpop.f32.mrb[112].mxu0 }
 0x6b1   :  { %v7135_v17 = vpop.f32.mrb[113].mxu0 }
 0x6b2   :  { %v11120_v14 = vadd.f32 %v7135_v17, %v7134_v48  ;;  %v7137_v54 = vpop.f32.mrb[114].mxu0 }
 0x6b3   :  { %v7138_v34 = vpop.f32.mrb[115].mxu0  ;;  %v8193_v54 = vld [vmem:[%s11228_s24 + $0x8] sm:$0xff]  }
 0x6b4   :  { %v8194_v34 = vld [vmem:[%s11228_s24 + $0x10] sm:$0xff]  }
 0x6b8   :  { %v6003_v1 = vpop.f32.mrb[116].mxu0  ;;  %v7002_v0 = vpop.f32.mrb[92].mxu1 }
 0x6b9   :  { %v6004_v45 = vadd.f32 %v6711_v62, %v6003_v1  ;;  %v7864_v40 = vpop.f32.mrb[117].mxu0  ;;  %v7003_v5 = vpop.f32.mrb[93].mxu1  ;;  %v8195_v62 = vld [vmem:[%s11228_s24 + $0x18] sm:$0xff]  }
 0x6ba   :  { %v7004_v42 = vadd.f32 %v7003_v5, %v7002_v0  ;;  %v6006_v38 = vpop.f32.mrb[118].mxu0  ;;  %v7005_v23 = vpop.f32.mrb[94].mxu1 }
 0x6bb   :  { %v6009_v32 = vmax.f32 %v6004_v45, 0.0  ;;  %v7865_v28 = vpop.f32.mrb[119].mxu0  ;;  %v7006_v51 = vpop.f32.mrb[95].mxu1 }
 0x6bc   :  { %v5665_v20 = vadd.f32 %v7004_v42, %v6582_v19  ;;  %v6727_v42 = vld [vmem:[%s11227_s23] ss:$0 sm:$0xff]  ;;  %s8199_s23 = scalar_lea.vmem %s6331_s13, 32 }
 0x6bd   :  { %v6010_v13 = vpack.c.bf16 %v6009_v32, %v6009_v32  ;;  %p8200_p0 = scmp.ne.s32.totalorder %s6331_s13, %s8199_s23  ;;  %p8205_p2 = scmp.lt.s32.totalorder %s8199_s23, %s8199_s23 }
 0x6bf   :  { %7871 = vmatmul.mubr.msk.bf16.vlgmr.msra.gmra.mrb[120].mxu0 %vm3095_vm5, %v6010_v13  ;;  %v6728_v13 = vld [vmem:[%s11229_s25] ss:$0 sm:$0xff]  ;;  %p8206_p3 = por %p8205_p2, %p8204_p1 }
 0x6c0   :  { %7887 = vmatpush3.bf16.msra.mxu0 %v8184_v37  ;;  %7894 = vmatprep.mubr.msk.bf16.mxu0 %vm8225_vm1, %v11374_v22 }
 0x6c1   :  { %7888 = vmatprep.subr.bf16.mxu0 %v11374_v22  ;;  %p8207_p4 = pnand %p8206_p3, %p8200_p0 }
 0x6c4   :  { %7889 = vmatpush3.bf16.msra.mxu0 %v8185_v21 }
 0x6c5   :  { %7890 = vmatprep.subr.bf16.mxu0 %v11374_v22 }
 0x6c8   :  { %7891 = vmatpush3.bf16.msra.mxu0 %v8186_v39 }
 0x6c9   :  { %7892 = vmatprep.subr.bf16.mxu0 %v11374_v22 }
 0x6cc   :  { %7893 = vmatpush3.bf16.msra.mxu0 %v8187_v33 }
 0x6d8   :  { %v7024_v52 = vpop.f32.mrb[96].mxu1 }
 0x6d9   :  { %v7025_v41 = vpop.f32.mrb[97].mxu1 }
 0x6da   :  { %v7026_v6 = vadd.f32 %v7025_v41, %v7024_v52  ;;  %v7027_v35 = vpop.f32.mrb[98].mxu1 }
 0x6db   :  { %v7028_v15 = vpop.f32.mrb[99].mxu1 }
 0x6dc   :  { %v5705_v18 = vadd.f32 %v7026_v6, %v5665_v20 }
 0x6de   :  { %v5745_v16 = vadd.f32 %v7048_v9, %v5705_v18 }
 0x6f8   :  { %v7068_v56 = vpop.f32.mrb[100].mxu1 }
 0x6f9   :  { %v7069_v47 = vpop.f32.mrb[101].mxu1 }
 0x6fa   :  { %v7070_v31 = vadd.f32 %v7069_v47, %v7068_v56  ;;  %v7071_v61 = vpop.f32.mrb[102].mxu1 }
 0x6fb   :  { %v7072_v36 = vpop.f32.mrb[103].mxu1 }
 0x6fc   :  { %v5785_v29 = vadd.f32 %v7070_v31, %v5745_v16 }
 0x6fe   :  { %v5825_v43 = vadd.f32 %v7092_v59, %v5785_v29 }
 0x718   :  { %v7112_v24 = vpop.f32.mrb[104].mxu1 }
 0x719   :  { %v7113_v58 = vpop.f32.mrb[105].mxu1 }
 0x71a   :  { %v7114_v50 = vadd.f32 %v7113_v58, %v7112_v24  ;;  %v7115_v11 = vpop.f32.mrb[106].mxu1 }
 0x71b   :  { %v7116_v3 = vpop.f32.mrb[107].mxu1 }
 0x71c   :  { %v5865_v55 = vadd.f32 %v7114_v50, %v5825_v43 }
 0x71e   :  { %v5905_v44 = vadd.f32 %v11120_v14, %v5865_v55  ;;  %v8192_v14 = vld [vmem:[%s11228_s24] sm:$0xff]  }
 0x738   :  { %v7156_v46 = vpop.f32.mrb[108].mxu1 }
 0x739   :  { %v7157_v49 = vpop.f32.mrb[109].mxu1 }
 0x73a   :  { %v7158_v4 = vadd.f32 %v7157_v49, %v7156_v46  ;;  %v7159_v10 = vpop.f32.mrb[110].mxu1 }
 0x73b   :  { %v7160_v26 = vpop.f32.mrb[111].mxu1 }
 0x73c   :  { %v5945_v60 = vadd.f32 %v7158_v4, %v5905_v44 }
 0x73e   :  { %v5950_v9 = vmax.f32 %v5945_v60, 0.0 }
 0x740   :  { %v6078_v53 = vpack.c.bf16 %v5950_v9, %v5950_v9 }
 0x742   :  { %7895 = vmatmul.mubr.msk.bf16.vlgmr.msra.gmra.mrb[124].mxu0 %vm6120_vm12, %v6078_v53 }
 0x792   :  { %v6071_v27 = vpop.f32.mrb[120].mxu0 }
 0x793   :  { %v6072_v63 = vadd.f32 %v6713_v30, %v6071_v27  ;;  %v7872_v59 = vpop.f32.mrb[121].mxu0 }
 0x794   :  { %v6074_v25 = vpop.f32.mrb[122].mxu0 }
 0x795   :  { %v6077_v2 = vmax.f32 %v6072_v63, 0.0  ;;  %v7873_v48 = vpop.f32.mrb[123].mxu0 }
 0x797   :  { %v6087_v17 = vpack.c.bf16 %v6077_v2, %v6077_v2 }
 0x799   :  { %7883 = vmatmul.mubr.msk.bf16.vlgmr.msra.gmra.mrb[112].mxu1 %vm6120_vm12, %v6087_v17 }
 0x79a   :  { %7899 = vmatpush3.bf16.msra.mxu1 %v8192_v14  ;;  %7906 = vmatprep.mubr.msk.bf16.mxu1 %vm8225_vm1, %v11374_v22 }
 0x79b   :  { %7900 = vmatprep.subr.bf16.mxu1 %v11374_v22 }
 0x79e   :  { %7901 = vmatpush3.bf16.msra.mxu1 %v8193_v54 }
 0x79f   :  { %7902 = vmatprep.subr.bf16.mxu1 %v11374_v22 }
 0x7a2   :  { %7903 = vmatpush3.bf16.msra.mxu1 %v8194_v34 }
 0x7a3   :  { %7904 = vmatprep.subr.bf16.mxu1 %v11374_v22 }
 0x7a6   :  { %7905 = vmatpush3.bf16.msra.mxu1 %v8195_v62 }
 0x815   :  { %v6225_v1 = vpop.f32.mrb[124].mxu0 }
 0x816   :  { %v7896_v0 = vpop.f32.mrb[125].mxu0 }
 0x817   :  { %v6228_v45 = vpop.f32.mrb[126].mxu0 }
 0x818   :  { %v7897_v40 = vpop.f32.mrb[127].mxu0 }
 0x86c   :  { %v6158_v5 = vpop.f32.mrb[112].mxu1 }
 0x86d   :  { %v6226_v38 = vadd.f32 %v6225_v1, %v6158_v5  ;;  %v7884_v23 = vpop.f32.mrb[113].mxu1 }
 0x86e   :  { %v6161_v32 = vpop.f32.mrb[114].mxu1 }
 0x86f   :  { %v6238_v28 = vadd.f32 %v6727_v42, %v6226_v38  ;;  %v7885_v51 = vpop.f32.mrb[115].mxu1 }
 0x871   :  { %v6239_v22 = vmax.f32 %v6238_v28, 0.0 }
 0x873   :  { %v6240_v37 = vpack.c.bf16 %v6239_v22, %v6239_v22 }
 0x875   :  { %7907 = vmatmul.mubr.msk.bf16.vlgmr.msra.gmra.mrb[116].mxu1 %vm6120_vm12, %v6240_v37 }
 0x948   :  { %v6317_v21 = vpop.f32.mrb[116].mxu1 }
 0x949   :  { %v6318_v7 = vadd.f32 %v6728_v13, %v6317_v21  ;;  %v7908_v39 = vpop.f32.mrb[117].mxu1 }
 0x94a   :  { %v6320_v12 = vpop.f32.mrb[118].mxu1 }
 0x94b   :  { %6323 = vst [vmem:[#allocation3] sm:$0x3] %v6318_v7  ;;  %v7909_v33 = vpop.f32.mrb[119].mxu1 }
 0x94c   :  { %8210 = shalt.err (!%p8207_p4)
}
 0x94d   :  { %s8211_s25 = scalar_lea.hbm %s11230_s26, 32 }
 0x94e   :  { %p8212_p5 = scmp.ne.s32.totalorder %s11230_s26, %s8211_s25  ;;  %p8215_p6 = scmp.lt.u32.totalorder %s8211_s25, %s11230_s26 }
 0x950   :  { %p8217_p7 = pnand %p8215_p6, %p8212_p5 }
 0x952   :  { %8220 = shalt.err (!%p8217_p7)
}
 0x953   :  { %6333 = dma.vmem_to_hbm [thread:$0]  %s6331_s13, 32, %s11230_s26, [#allocation4]  }
 0x954   :  { %8221 = dma.done.wait [#allocation4], 32  }
 0x955   :  { %8222 = vsyncadd [#allocation4], 4294967264 }
 0x956   :  { %6337 = vsyncpa [#allocation4], 1 }

</bundles_post_ra>
